<compile_context>
chip_gen: v7x
topology: tpu7x:2x2x1
jax: 0.10.0
libtpu: 0.0.40
codegen_flags: <defaults>
</compile_context>

<pallas_src>
import functools

import jax
import jax.numpy as jnp
import numpy as np
from jax.experimental import pallas as pl
from jax.experimental.pallas import tpu as pltpu

BN_EPS = 1e-5
C_PAD = 128                      # lane-padded output-channel width
VMEM_LIMIT = 32 * 1024 * 1024    # explicit scoped-VMEM budget (fits v5e/v6e/v7x)


def _conv_pool_blocks(xq_ref, w_ref, *, trh, wh, cin, cp):
    """3x3 conv outputs for one tile, rows ordered as 4 pool-position blocks.

    xq_ref: (1, 2, 2, trh+1, wh+1, cin) bf16 parity-split padded input tile:
            xq[a, b, i, j, :] == x_padded[2*i + a, 2*j + b, :] (plus row-block offset).
    w_ref:  (3, 3, cin, cp) bf16.
    Returns (4*trh*wh, cp) f32; row block p = 2*pi + pj holds the conv output at
    pixels (2*oh + pi, 2*ow + pj), rows ordered (oh, ow).
    """
    m = trh * wh
    acc = jnp.zeros((4 * m, cp), jnp.float32)
    for di in range(3):
        for dj in range(3):
            parts = []
            for pi in range(2):
                for pj in range(2):
                    a, ro = (pi + di) % 2, (pi + di) // 2
                    b, co = (pj + dj) % 2, (pj + dj) // 2
                    sl = xq_ref[0, a, b, ro:ro + trh, co:co + wh, :]   # (trh, wh, cin)
                    parts.append(sl.reshape(m, cin))
            lhs = jnp.concatenate(parts, axis=0)                       # (4m, cin) bf16
            acc = acc + jnp.dot(lhs, w_ref[di, dj],
                                preferred_element_type=jnp.float32)
    return acc


def _stats_kernel(xq_ref, w_ref, stats_ref, *, trh, wh, cin, cp):
    # Pass 1: per-channel sum / sum-of-squares of the conv output, accumulated
    # into a VMEM-resident output block (constant index map, "arbitrary" axis).
    y = _conv_pool_blocks(xq_ref, w_ref, trh=trh, wh=wh, cin=cin, cp=cp)
    s = jnp.sum(y, axis=0, keepdims=True)
    ss = jnp.sum(y * y, axis=0, keepdims=True)

    @pl.when(pl.program_id(0) == 0)
    def _():
        stats_ref[...] = jnp.zeros_like(stats_ref)

    stats_ref[...] += jnp.concatenate([s, ss], axis=0)


def _apply_kernel(xq_ref, w_ref, scale_ref, shift_ref, out_ref, *, trh, wh, cin, cp):
    # Pass 2: conv -> folded BN FMA -> ReLU -> 2x2 max-pool.
    y = _conv_pool_blocks(xq_ref, w_ref, trh=trh, wh=wh, cin=cin, cp=cp)
    y = jnp.maximum(y * scale_ref[...] + shift_ref[...], 0.0)
    m = trh * wh
    p0 = jnp.maximum(y[0 * m:1 * m, :], y[1 * m:2 * m, :])
    p1 = jnp.maximum(y[2 * m:3 * m, :], y[3 * m:4 * m, :])
    out_ref[...] = jnp.maximum(p0, p1)


def conv_block_forward(x_nchw, w, b, gamma, beta, *, row_block=None):
    """ConvBlock forward. x_nchw: (N, Cin, H, W) -> (N, Cout, H//2, W//2)."""
    N, Cin, H, W = x_nchw.shape
    Cout = w.shape[0]
    assert H % 2 == 0 and W % 2 == 0, "spatial dims must be even for 2x2 pooling"
    # TODO(synk): tile the output-channel axis (extra grid dim) for Cout > 128.
    assert Cout <= C_PAD
    Hh, Wh = H // 2, W // 2

    if row_block is None:
        row_block = Hh
        while row_block % 2 == 0 and row_block * Wh > 512:
            row_block //= 2
    assert Hh % row_block == 0
    nblk = Hh // row_block
    m = row_block * Wh
    assert m % 8 == 0, "pooled rows per tile must be a multiple of 8"
    grid = (N * nblk,)

    # ---- layout prep (cheap XLA, no 9x im2col expansion) ----
    # NCHW -> NHWC, pad by 1, split by (row, col) parity so the kernel only needs
    # unit-stride slices; then split into pooled-row tiles with a 1-row halo.
    x = jnp.transpose(x_nchw, (0, 2, 3, 1))
    xp = jnp.pad(x, ((0, 0), (1, 1), (1, 1), (0, 0)))            # (N, H+2, W+2, Cin)
    xq = jnp.stack(
        [jnp.stack([xp[:, a::2, b::2, :] for b in range(2)], axis=1)
         for a in range(2)], axis=1)                              # (N, 2, 2, Hh+1, Wh+1, Cin)
    xq = jnp.stack(
        [xq[:, :, :, t * row_block:t * row_block + row_block + 1, :, :]
         for t in range(nblk)], axis=1)                           # (N, nblk, 2, 2, rb+1, Wh+1, Cin)
    xq = xq.reshape(N * nblk, 2, 2, row_block + 1, Wh + 1, Cin).astype(jnp.bfloat16)

    # Conv weight (Cout, Cin, 3, 3) -> (3, 3, Cin, C_PAD), zero-padded lanes.
    w_p = jnp.transpose(w, (2, 3, 1, 0))
    w_p = jnp.pad(w_p, ((0, 0), (0, 0), (0, 0), (0, C_PAD - Cout))).astype(jnp.bfloat16)
    # Note: the conv bias `b` is intentionally not used -- train-mode BatchNorm
    # subtracts the batch mean, which cancels the bias exactly.
    del b

    xq_spec = pl.BlockSpec((1, 2, 2, row_block + 1, Wh + 1, Cin),
                           lambda g: (g, 0, 0, 0, 0, 0))
    w_spec = pl.BlockSpec((3, 3, Cin, C_PAD), lambda g: (0, 0, 0, 0))
    vec_spec = pl.BlockSpec((1, C_PAD), lambda g: (0, 0))
    kargs = dict(trh=row_block, wh=Wh, cin=Cin, cp=C_PAD)

    # ---- pass 1: BN batch statistics (resident accumulator, "arbitrary" grid) ----
    stats = pl.pallas_call(
        functools.partial(_stats_kernel, **kargs),
        out_shape=jax.ShapeDtypeStruct((2, C_PAD), jnp.float32),
        grid=grid,
        in_specs=[xq_spec, w_spec],
        out_specs=pl.BlockSpec((2, C_PAD), lambda g: (0, 0)),
        compiler_params=pltpu.CompilerParams(
            dimension_semantics=("arbitrary",),
            vmem_limit_bytes=VMEM_LIMIT),
    )(xq, w_p)

    # Fold BN into one FMA per element: y * scale + shift (padded lanes -> 0).
    cnt = jnp.float32(N * H * W)
    mean = stats[0] / cnt
    var = jnp.maximum(stats[1] / cnt - mean * mean, 0.0)
    gamma_p = jnp.pad(gamma.astype(jnp.float32), (0, C_PAD - Cout))
    beta_p = jnp.pad(beta.astype(jnp.float32), (0, C_PAD - Cout))
    scale = (gamma_p * jax.lax.rsqrt(var + BN_EPS)).reshape(1, C_PAD)
    shift = (beta_p - mean * scale[0]).reshape(1, C_PAD)

    # ---- pass 2: conv + BN + ReLU + pool ("parallel" grid -> megacore on v7x) ----
    out2d = pl.pallas_call(
        functools.partial(_apply_kernel, **kargs),
        out_shape=jax.ShapeDtypeStruct((N * Hh * Wh, C_PAD), jnp.float32),
        grid=grid,
        in_specs=[xq_spec, w_spec, vec_spec, vec_spec],
        out_specs=pl.BlockSpec((m, C_PAD), lambda g: (g, 0)),
        compiler_params=pltpu.CompilerParams(
            dimension_semantics=("parallel",),
            vmem_limit_bytes=VMEM_LIMIT),
    )(xq, w_p, scale, shift)

    out = out2d[:, :Cout].reshape(N, Hh, Wh, Cout)
    return jnp.transpose(out, (0, 3, 1, 2))                      # back to NCHW


def reference(x, w, b, gamma, beta):
    """Pure-JAX f32 reference matching the PyTorch module's forward (train-mode BN)."""
    y = jax.lax.conv_general_dilated(
        x, w, (1, 1), ((1, 1), (1, 1)),
        dimension_numbers=("NCHW", "OIHW", "NCHW"),
        precision=jax.lax.Precision.HIGHEST,
    ) + b[None, :, None, None]
    mean = jnp.mean(y, axis=(0, 2, 3), keepdims=True)
    var = jnp.mean((y - mean) ** 2, axis=(0, 2, 3), keepdims=True)
    yn = (y - mean) * jax.lax.rsqrt(var + BN_EPS)
    yn = yn * gamma[None, :, None, None] + beta[None, :, None, None]
    yr = jnp.maximum(yn, 0.0)
    return jax.lax.reduce_window(
        yr, -jnp.inf, jax.lax.max, (1, 1, 2, 2), (1, 1, 2, 2), "VALID"
    )


if __name__ == "__main__":
    key = jax.random.PRNGKey(0)
    k1, k2, k3, k4, k5 = jax.random.split(key, 5)

    N, Cin, H, W, Cout = 2, 4, 16, 16, 8
    x = jax.random.normal(k1, (N, Cin, H, W), jnp.float32)
    w = 0.1 * jax.random.normal(k2, (Cout, Cin, 3, 3), jnp.float32)
    b = 0.1 * jax.random.normal(k3, (Cout,), jnp.float32)
    gamma = 1.0 + 0.1 * jax.random.normal(k4, (Cout,), jnp.float32)
    beta = 0.1 * jax.random.normal(k5, (Cout,), jnp.float32)

    # row_block=4 -> 2 row tiles per image: exercises the tiled/pipelined path.
    fwd = jax.jit(functools.partial(conv_block_forward, row_block=4))
    out = fwd(x, w, b, gamma, beta)
    jax.block_until_ready(out)

    ref = reference(x, w, b, gamma, beta)
    # bf16 MXU inputs (single-pass matmul) vs. the f32-HIGHEST reference -> a
    # slightly looser tolerance than the pure-f32 version.
    np.testing.assert_allclose(np.asarray(out), np.asarray(ref), rtol=2e-2, atol=2e-2)
    print("KERNEL_OK")
</pallas_src>

<mosaic_0001>
module attributes {stable_mosaic.version = 11 : i64} {
  func.func @_stats_kernel(%arg0: i32, %arg1: memref<1x2x2x5x9x4xbf16, #tpu.memory_space<vmem>>, %arg2: memref<3x3x4x128xbf16, #tpu.memory_space<vmem>>, %arg3: memref<2x128xf32, #tpu.memory_space<vmem>>) attributes {dimension_semantics = [#tpu.dimension_semantics<arbitrary>], iteration_bounds = array<i64: 4>, scalar_prefetch = 0 : i64, scratch_operands = 0 : i64, tpu.core_type = #tpu.core_type<tc>, window_params = [{transform_indices = @transform_0, window_bounds = array<i64: 1, 2, 2, 5, 9, 4>}, {pipeline_mode = #tpu.pipeline_mode<synchronous>, transform_indices = @transform_1, window_bounds = array<i64: 3, 3, 4, 128>}, {pipeline_mode = #tpu.pipeline_mode<synchronous>, transform_indices = @transform_2, window_bounds = array<i64: 2, 128>}]} {
    %cst = arith.constant 0.000000e+00 : f32
    %0 = vector.broadcast %cst : f32 to vector<128x128xf32>
    %c0 = arith.constant 0 : index
    %c0_0 = arith.constant 0 : index
    %c0_1 = arith.constant 0 : index
    %c0_2 = arith.constant 0 : index
    %c0_3 = arith.constant 0 : index
    %c0_4 = arith.constant 0 : index
    %1 = vector.load %arg1[%c0, %c0_0, %c0_1, %c0_2, %c0_3, %c0_4] : memref<1x2x2x5x9x4xbf16, #tpu.memory_space<vmem>>, vector<1x1x1x4x8x4xbf16>
    %2 = vector.shape_cast %1 : vector<1x1x1x4x8x4xbf16> to vector<4x8x4xbf16>
    %3 = vector.shape_cast %2 : vector<4x8x4xbf16> to vector<32x4xbf16>
    %c0_5 = arith.constant 0 : index
    %c0_6 = arith.constant 0 : index
    %c1 = arith.constant 1 : index
    %c0_7 = arith.constant 0 : index
    %c0_8 = arith.constant 0 : index
    %c0_9 = arith.constant 0 : index
    %4 = vector.load %arg1[%c0_5, %c0_6, %c1, %c0_7, %c0_8, %c0_9] : memref<1x2x2x5x9x4xbf16, #tpu.memory_space<vmem>>, vector<1x1x1x4x8x4xbf16>
    %5 = vector.shape_cast %4 : vector<1x1x1x4x8x4xbf16> to vector<4x8x4xbf16>
    %6 = vector.shape_cast %5 : vector<4x8x4xbf16> to vector<32x4xbf16>
    %c0_10 = arith.constant 0 : index
    %c1_11 = arith.constant 1 : index
    %c0_12 = arith.constant 0 : index
    %c0_13 = arith.constant 0 : index
    %c0_14 = arith.constant 0 : index
    %c0_15 = arith.constant 0 : index
    %7 = vector.load %arg1[%c0_10, %c1_11, %c0_12, %c0_13, %c0_14, %c0_15] : memref<1x2x2x5x9x4xbf16, #tpu.memory_space<vmem>>, vector<1x1x1x4x8x4xbf16>
    %8 = vector.shape_cast %7 : vector<1x1x1x4x8x4xbf16> to vector<4x8x4xbf16>
    %9 = vector.shape_cast %8 : vector<4x8x4xbf16> to vector<32x4xbf16>
    %c0_16 = arith.constant 0 : index
    %c1_17 = arith.constant 1 : index
    %c1_18 = arith.constant 1 : index
    %c0_19 = arith.constant 0 : index
    %c0_20 = arith.constant 0 : index
    %c0_21 = arith.constant 0 : index
    %10 = vector.load %arg1[%c0_16, %c1_17, %c1_18, %c0_19, %c0_20, %c0_21] : memref<1x2x2x5x9x4xbf16, #tpu.memory_space<vmem>>, vector<1x1x1x4x8x4xbf16>
    %11 = vector.shape_cast %10 : vector<1x1x1x4x8x4xbf16> to vector<4x8x4xbf16>
    %12 = vector.shape_cast %11 : vector<4x8x4xbf16> to vector<32x4xbf16>
    %13 = tpu.concatenate %3, %6, %9, %12 in 0 : vector<32x4xbf16>, vector<32x4xbf16>, vector<32x4xbf16>, vector<32x4xbf16> -> vector<128x4xbf16>
    %c0_22 = arith.constant 0 : index
    %c0_23 = arith.constant 0 : index
    %c0_24 = arith.constant 0 : index
    %c0_25 = arith.constant 0 : index
    %14 = vector.load %arg2[%c0_22, %c0_23, %c0_24, %c0_25] : memref<3x3x4x128xbf16, #tpu.memory_space<vmem>>, vector<1x1x4x128xbf16>
    %15 = vector.shape_cast %14 : vector<1x1x4x128xbf16> to vector<4x128xbf16>
    %cst_26 = arith.constant dense<0.000000e+00> : vector<128x128xf32>
    %16 = tpu.matmul %13, %15, %cst_26 {dimension_numbers = #tpu.dot_dimension_numbers<[1], [0], [0], [1], [0, 0, 1, 1], [], []>} : vector<128x4xbf16>, vector<4x128xbf16>, vector<128x128xf32> -> vector<128x128xf32>
    %17 = arith.addf %0, %16 : vector<128x128xf32>
    %c0_27 = arith.constant 0 : index
    %c0_28 = arith.constant 0 : index
    %c1_29 = arith.constant 1 : index
    %c0_30 = arith.constant 0 : index
    %c0_31 = arith.constant 0 : index
    %c0_32 = arith.constant 0 : index
    %18 = vector.load %arg1[%c0_27, %c0_28, %c1_29, %c0_30, %c0_31, %c0_32] : memref<1x2x2x5x9x4xbf16, #tpu.memory_space<vmem>>, vector<1x1x1x4x8x4xbf16>
    %19 = vector.shape_cast %18 : vector<1x1x1x4x8x4xbf16> to vector<4x8x4xbf16>
    %20 = vector.shape_cast %19 : vector<4x8x4xbf16> to vector<32x4xbf16>
    %c0_33 = arith.constant 0 : index
    %c0_34 = arith.constant 0 : index
    %c0_35 = arith.constant 0 : index
    %c0_36 = arith.constant 0 : index
    %c1_37 = arith.constant 1 : index
    %c0_38 = arith.constant 0 : index
    %21 = vector.load %arg1[%c0_33, %c0_34, %c0_35, %c0_36, %c1_37, %c0_38] : memref<1x2x2x5x9x4xbf16, #tpu.memory_space<vmem>>, vector<1x1x1x4x8x4xbf16>
    %22 = vector.shape_cast %21 : vector<1x1x1x4x8x4xbf16> to vector<4x8x4xbf16>
    %23 = vector.shape_cast %22 : vector<4x8x4xbf16> to vector<32x4xbf16>
    %c0_39 = arith.constant 0 : index
    %c1_40 = arith.constant 1 : index
    %c1_41 = arith.constant 1 : index
    %c0_42 = arith.constant 0 : index
    %c0_43 = arith.constant 0 : index
    %c0_44 = arith.constant 0 : index
    %24 = vector.load %arg1[%c0_39, %c1_40, %c1_41, %c0_42, %c0_43, %c0_44] : memref<1x2x2x5x9x4xbf16, #tpu.memory_space<vmem>>, vector<1x1x1x4x8x4xbf16>
    %25 = vector.shape_cast %24 : vector<1x1x1x4x8x4xbf16> to vector<4x8x4xbf16>
    %26 = vector.shape_cast %25 : vector<4x8x4xbf16> to vector<32x4xbf16>
    %c0_45 = arith.constant 0 : index
    %c1_46 = arith.constant 1 : index
    %c0_47 = arith.constant 0 : index
    %c0_48 = arith.constant 0 : index
    %c1_49 = arith.constant 1 : index
    %c0_50 = arith.constant 0 : index
    %27 = vector.load %arg1[%c0_45, %c1_46, %c0_47, %c0_48, %c1_49, %c0_50] : memref<1x2x2x5x9x4xbf16, #tpu.memory_space<vmem>>, vector<1x1x1x4x8x4xbf16>
    %28 = vector.shape_cast %27 : vector<1x1x1x4x8x4xbf16> to vector<4x8x4xbf16>
    %29 = vector.shape_cast %28 : vector<4x8x4xbf16> to vector<32x4xbf16>
    %30 = tpu.concatenate %20, %23, %26, %29 in 0 : vector<32x4xbf16>, vector<32x4xbf16>, vector<32x4xbf16>, vector<32x4xbf16> -> vector<128x4xbf16>
    %c0_51 = arith.constant 0 : index
    %c1_52 = arith.constant 1 : index
    %c0_53 = arith.constant 0 : index
    %c0_54 = arith.constant 0 : index
    %31 = vector.load %arg2[%c0_51, %c1_52, %c0_53, %c0_54] : memref<3x3x4x128xbf16, #tpu.memory_space<vmem>>, vector<1x1x4x128xbf16>
    %32 = vector.shape_cast %31 : vector<1x1x4x128xbf16> to vector<4x128xbf16>
    %cst_55 = arith.constant dense<0.000000e+00> : vector<128x128xf32>
    %33 = tpu.matmul %30, %32, %cst_55 {dimension_numbers = #tpu.dot_dimension_numbers<[1], [0], [0], [1], [0, 0, 1, 1], [], []>} : vector<128x4xbf16>, vector<4x128xbf16>, vector<128x128xf32> -> vector<128x128xf32>
    %34 = arith.addf %17, %33 : vector<128x128xf32>
    %c0_56 = arith.constant 0 : index
    %c0_57 = arith.constant 0 : index
    %c0_58 = arith.constant 0 : index
    %c0_59 = arith.constant 0 : index
    %c1_60 = arith.constant 1 : index
    %c0_61 = arith.constant 0 : index
    %35 = vector.load %arg1[%c0_56, %c0_57, %c0_58, %c0_59, %c1_60, %c0_61] : memref<1x2x2x5x9x4xbf16, #tpu.memory_space<vmem>>, vector<1x1x1x4x8x4xbf16>
    %36 = vector.shape_cast %35 : vector<1x1x1x4x8x4xbf16> to vector<4x8x4xbf16>
    %37 = vector.shape_cast %36 : vector<4x8x4xbf16> to vector<32x4xbf16>
    %c0_62 = arith.constant 0 : index
    %c0_63 = arith.constant 0 : index
    %c1_64 = arith.constant 1 : index
    %c0_65 = arith.constant 0 : index
    %c1_66 = arith.constant 1 : index
    %c0_67 = arith.constant 0 : index
    %38 = vector.load %arg1[%c0_62, %c0_63, %c1_64, %c0_65, %c1_66, %c0_67] : memref<1x2x2x5x9x4xbf16, #tpu.memory_space<vmem>>, vector<1x1x1x4x8x4xbf16>
    %39 = vector.shape_cast %38 : vector<1x1x1x4x8x4xbf16> to vector<4x8x4xbf16>
    %40 = vector.shape_cast %39 : vector<4x8x4xbf16> to vector<32x4xbf16>
    %c0_68 = arith.constant 0 : index
    %c1_69 = arith.constant 1 : index
    %c0_70 = arith.constant 0 : index
    %c0_71 = arith.constant 0 : index
    %c1_72 = arith.constant 1 : index
    %c0_73 = arith.constant 0 : index
    %41 = vector.load %arg1[%c0_68, %c1_69, %c0_70, %c0_71, %c1_72, %c0_73] : memref<1x2x2x5x9x4xbf16, #tpu.memory_space<vmem>>, vector<1x1x1x4x8x4xbf16>
    %42 = vector.shape_cast %41 : vector<1x1x1x4x8x4xbf16> to vector<4x8x4xbf16>
    %43 = vector.shape_cast %42 : vector<4x8x4xbf16> to vector<32x4xbf16>
    %c0_74 = arith.constant 0 : index
    %c1_75 = arith.constant 1 : index
    %c1_76 = arith.constant 1 : index
    %c0_77 = arith.constant 0 : index
    %c1_78 = arith.constant 1 : index
    %c0_79 = arith.constant 0 : index
    %44 = vector.load %arg1[%c0_74, %c1_75, %c1_76, %c0_77, %c1_78, %c0_79] : memref<1x2x2x5x9x4xbf16, #tpu.memory_space<vmem>>, vector<1x1x1x4x8x4xbf16>
    %45 = vector.shape_cast %44 : vector<1x1x1x4x8x4xbf16> to vector<4x8x4xbf16>
    %46 = vector.shape_cast %45 : vector<4x8x4xbf16> to vector<32x4xbf16>
    %47 = tpu.concatenate %37, %40, %43, %46 in 0 : vector<32x4xbf16>, vector<32x4xbf16>, vector<32x4xbf16>, vector<32x4xbf16> -> vector<128x4xbf16>
    %c0_80 = arith.constant 0 : index
    %c2 = arith.constant 2 : index
    %c0_81 = arith.constant 0 : index
    %c0_82 = arith.constant 0 : index
    %48 = vector.load %arg2[%c0_80, %c2, %c0_81, %c0_82] : memref<3x3x4x128xbf16, #tpu.memory_space<vmem>>, vector<1x1x4x128xbf16>
    %49 = vector.shape_cast %48 : vector<1x1x4x128xbf16> to vector<4x128xbf16>
    %cst_83 = arith.constant dense<0.000000e+00> : vector<128x128xf32>
    %50 = tpu.matmul %47, %49, %cst_83 {dimension_numbers = #tpu.dot_dimension_numbers<[1], [0], [0], [1], [0, 0, 1, 1], [], []>} : vector<128x4xbf16>, vector<4x128xbf16>, vector<128x128xf32> -> vector<128x128xf32>
    %51 = arith.addf %34, %50 : vector<128x128xf32>
    %c0_84 = arith.constant 0 : index
    %c1_85 = arith.constant 1 : index
    %c0_86 = arith.constant 0 : index
    %c0_87 = arith.constant 0 : index
    %c0_88 = arith.constant 0 : index
    %c0_89 = arith.constant 0 : index
    %52 = vector.load %arg1[%c0_84, %c1_85, %c0_86, %c0_87, %c0_88, %c0_89] : memref<1x2x2x5x9x4xbf16, #tpu.memory_space<vmem>>, vector<1x1x1x4x8x4xbf16>
    %53 = vector.shape_cast %52 : vector<1x1x1x4x8x4xbf16> to vector<4x8x4xbf16>
    %54 = vector.shape_cast %53 : vector<4x8x4xbf16> to vector<32x4xbf16>
    %c0_90 = arith.constant 0 : index
    %c1_91 = arith.constant 1 : index
    %c1_92 = arith.constant 1 : index
    %c0_93 = arith.constant 0 : index
    %c0_94 = arith.constant 0 : index
    %c0_95 = arith.constant 0 : index
    %55 = vector.load %arg1[%c0_90, %c1_91, %c1_92, %c0_93, %c0_94, %c0_95] : memref<1x2x2x5x9x4xbf16, #tpu.memory_space<vmem>>, vector<1x1x1x4x8x4xbf16>
    %56 = vector.shape_cast %55 : vector<1x1x1x4x8x4xbf16> to vector<4x8x4xbf16>
    %57 = vector.shape_cast %56 : vector<4x8x4xbf16> to vector<32x4xbf16>
    %c0_96 = arith.constant 0 : index
    %c0_97 = arith.constant 0 : index
    %c0_98 = arith.constant 0 : index
    %c1_99 = arith.constant 1 : index
    %c0_100 = arith.constant 0 : index
    %c0_101 = arith.constant 0 : index
    %58 = vector.load %arg1[%c0_96, %c0_97, %c0_98, %c1_99, %c0_100, %c0_101] : memref<1x2x2x5x9x4xbf16, #tpu.memory_space<vmem>>, vector<1x1x1x4x8x4xbf16>
    %59 = vector.shape_cast %58 : vector<1x1x1x4x8x4xbf16> to vector<4x8x4xbf16>
    %60 = vector.shape_cast %59 : vector<4x8x4xbf16> to vector<32x4xbf16>
    %c0_102 = arith.constant 0 : index
    %c0_103 = arith.constant 0 : index
    %c1_104 = arith.constant 1 : index
    %c1_105 = arith.constant 1 : index
    %c0_106 = arith.constant 0 : index
    %c0_107 = arith.constant 0 : index
    %61 = vector.load %arg1[%c0_102, %c0_103, %c1_104, %c1_105, %c0_106, %c0_107] : memref<1x2x2x5x9x4xbf16, #tpu.memory_space<vmem>>, vector<1x1x1x4x8x4xbf16>
    %62 = vector.shape_cast %61 : vector<1x1x1x4x8x4xbf16> to vector<4x8x4xbf16>
    %63 = vector.shape_cast %62 : vector<4x8x4xbf16> to vector<32x4xbf16>
    %64 = tpu.concatenate %54, %57, %60, %63 in 0 : vector<32x4xbf16>, vector<32x4xbf16>, vector<32x4xbf16>, vector<32x4xbf16> -> vector<128x4xbf16>
    %c1_108 = arith.constant 1 : index
    %c0_109 = arith.constant 0 : index
    %c0_110 = arith.constant 0 : index
    %c0_111 = arith.constant 0 : index
    %65 = vector.load %arg2[%c1_108, %c0_109, %c0_110, %c0_111] : memref<3x3x4x128xbf16, #tpu.memory_space<vmem>>, vector<1x1x4x128xbf16>
    %66 = vector.shape_cast %65 : vector<1x1x4x128xbf16> to vector<4x128xbf16>
    %cst_112 = arith.constant dense<0.000000e+00> : vector<128x128xf32>
    %67 = tpu.matmul %64, %66, %cst_112 {dimension_numbers = #tpu.dot_dimension_numbers<[1], [0], [0], [1], [0, 0, 1, 1], [], []>} : vector<128x4xbf16>, vector<4x128xbf16>, vector<128x128xf32> -> vector<128x128xf32>
    %68 = arith.addf %51, %67 : vector<128x128xf32>
    %c0_113 = arith.constant 0 : index
    %c1_114 = arith.constant 1 : index
    %c1_115 = arith.constant 1 : index
    %c0_116 = arith.constant 0 : index
    %c0_117 = arith.constant 0 : index
    %c0_118 = arith.constant 0 : index
    %69 = vector.load %arg1[%c0_113, %c1_114, %c1_115, %c0_116, %c0_117, %c0_118] : memref<1x2x2x5x9x4xbf16, #tpu.memory_space<vmem>>, vector<1x1x1x4x8x4xbf16>
    %70 = vector.shape_cast %69 : vector<1x1x1x4x8x4xbf16> to vector<4x8x4xbf16>
    %71 = vector.shape_cast %70 : vector<4x8x4xbf16> to vector<32x4xbf16>
    %c0_119 = arith.constant 0 : index
    %c1_120 = arith.constant 1 : index
    %c0_121 = arith.constant 0 : index
    %c0_122 = arith.constant 0 : index
    %c1_123 = arith.constant 1 : index
    %c0_124 = arith.constant 0 : index
    %72 = vector.load %arg1[%c0_119, %c1_120, %c0_121, %c0_122, %c1_123, %c0_124] : memref<1x2x2x5x9x4xbf16, #tpu.memory_space<vmem>>, vector<1x1x1x4x8x4xbf16>
    %73 = vector.shape_cast %72 : vector<1x1x1x4x8x4xbf16> to vector<4x8x4xbf16>
    %74 = vector.shape_cast %73 : vector<4x8x4xbf16> to vector<32x4xbf16>
    %c0_125 = arith.constant 0 : index
    %c0_126 = arith.constant 0 : index
    %c1_127 = arith.constant 1 : index
    %c1_128 = arith.constant 1 : index
    %c0_129 = arith.constant 0 : index
    %c0_130 = arith.constant 0 : index
    %75 = vector.load %arg1[%c0_125, %c0_126, %c1_127, %c1_128, %c0_129, %c0_130] : memref<1x2x2x5x9x4xbf16, #tpu.memory_space<vmem>>, vector<1x1x1x4x8x4xbf16>
    %76 = vector.shape_cast %75 : vector<1x1x1x4x8x4xbf16> to vector<4x8x4xbf16>
    %77 = vector.shape_cast %76 : vector<4x8x4xbf16> to vector<32x4xbf16>
    %c0_131 = arith.constant 0 : index
    %c0_132 = arith.constant 0 : index
    %c0_133 = arith.constant 0 : index
    %c1_134 = arith.constant 1 : index
    %c1_135 = arith.constant 1 : index
    %c0_136 = arith.constant 0 : index
    %78 = vector.load %arg1[%c0_131, %c0_132, %c0_133, %c1_134, %c1_135, %c0_136] : memref<1x2x2x5x9x4xbf16, #tpu.memory_space<vmem>>, vector<1x1x1x4x8x4xbf16>
    %79 = vector.shape_cast %78 : vector<1x1x1x4x8x4xbf16> to vector<4x8x4xbf16>
    %80 = vector.shape_cast %79 : vector<4x8x4xbf16> to vector<32x4xbf16>
    %81 = tpu.concatenate %71, %74, %77, %80 in 0 : vector<32x4xbf16>, vector<32x4xbf16>, vector<32x4xbf16>, vector<32x4xbf16> -> vector<128x4xbf16>
    %c1_137 = arith.constant 1 : index
    %c1_138 = arith.constant 1 : index
    %c0_139 = arith.constant 0 : index
    %c0_140 = arith.constant 0 : index
    %82 = vector.load %arg2[%c1_137, %c1_138, %c0_139, %c0_140] : memref<3x3x4x128xbf16, #tpu.memory_space<vmem>>, vector<1x1x4x128xbf16>
    %83 = vector.shape_cast %82 : vector<1x1x4x128xbf16> to vector<4x128xbf16>
    %cst_141 = arith.constant dense<0.000000e+00> : vector<128x128xf32>
    %84 = tpu.matmul %81, %83, %cst_141 {dimension_numbers = #tpu.dot_dimension_numbers<[1], [0], [0], [1], [0, 0, 1, 1], [], []>} : vector<128x4xbf16>, vector<4x128xbf16>, vector<128x128xf32> -> vector<128x128xf32>
    %85 = arith.addf %68, %84 : vector<128x128xf32>
    %c0_142 = arith.constant 0 : index
    %c1_143 = arith.constant 1 : index
    %c0_144 = arith.constant 0 : index
    %c0_145 = arith.constant 0 : index
    %c1_146 = arith.constant 1 : index
    %c0_147 = arith.constant 0 : index
    %86 = vector.load %arg1[%c0_142, %c1_143, %c0_144, %c0_145, %c1_146, %c0_147] : memref<1x2x2x5x9x4xbf16, #tpu.memory_space<vmem>>, vector<1x1x1x4x8x4xbf16>
    %87 = vector.shape_cast %86 : vector<1x1x1x4x8x4xbf16> to vector<4x8x4xbf16>
    %88 = vector.shape_cast %87 : vector<4x8x4xbf16> to vector<32x4xbf16>
    %c0_148 = arith.constant 0 : index
    %c1_149 = arith.constant 1 : index
    %c1_150 = arith.constant 1 : index
    %c0_151 = arith.constant 0 : index
    %c1_152 = arith.constant 1 : index
    %c0_153 = arith.constant 0 : index
    %89 = vector.load %arg1[%c0_148, %c1_149, %c1_150, %c0_151, %c1_152, %c0_153] : memref<1x2x2x5x9x4xbf16, #tpu.memory_space<vmem>>, vector<1x1x1x4x8x4xbf16>
    %90 = vector.shape_cast %89 : vector<1x1x1x4x8x4xbf16> to vector<4x8x4xbf16>
    %91 = vector.shape_cast %90 : vector<4x8x4xbf16> to vector<32x4xbf16>
    %c0_154 = arith.constant 0 : index
    %c0_155 = arith.constant 0 : index
    %c0_156 = arith.constant 0 : index
    %c1_157 = arith.constant 1 : index
    %c1_158 = arith.constant 1 : index
    %c0_159 = arith.constant 0 : index
    %92 = vector.load %arg1[%c0_154, %c0_155, %c0_156, %c1_157, %c1_158, %c0_159] : memref<1x2x2x5x9x4xbf16, #tpu.memory_space<vmem>>, vector<1x1x1x4x8x4xbf16>
    %93 = vector.shape_cast %92 : vector<1x1x1x4x8x4xbf16> to vector<4x8x4xbf16>
    %94 = vector.shape_cast %93 : vector<4x8x4xbf16> to vector<32x4xbf16>
    %c0_160 = arith.constant 0 : index
    %c0_161 = arith.constant 0 : index
    %c1_162 = arith.constant 1 : index
    %c1_163 = arith.constant 1 : index
    %c1_164 = arith.constant 1 : index
    %c0_165 = arith.constant 0 : index
    %95 = vector.load %arg1[%c0_160, %c0_161, %c1_162, %c1_163, %c1_164, %c0_165] : memref<1x2x2x5x9x4xbf16, #tpu.memory_space<vmem>>, vector<1x1x1x4x8x4xbf16>
    %96 = vector.shape_cast %95 : vector<1x1x1x4x8x4xbf16> to vector<4x8x4xbf16>
    %97 = vector.shape_cast %96 : vector<4x8x4xbf16> to vector<32x4xbf16>
    %98 = tpu.concatenate %88, %91, %94, %97 in 0 : vector<32x4xbf16>, vector<32x4xbf16>, vector<32x4xbf16>, vector<32x4xbf16> -> vector<128x4xbf16>
    %c1_166 = arith.constant 1 : index
    %c2_167 = arith.constant 2 : index
    %c0_168 = arith.constant 0 : index
    %c0_169 = arith.constant 0 : index
    %99 = vector.load %arg2[%c1_166, %c2_167, %c0_168, %c0_169] : memref<3x3x4x128xbf16, #tpu.memory_space<vmem>>, vector<1x1x4x128xbf16>
    %100 = vector.shape_cast %99 : vector<1x1x4x128xbf16> to vector<4x128xbf16>
    %cst_170 = arith.constant dense<0.000000e+00> : vector<128x128xf32>
    %101 = tpu.matmul %98, %100, %cst_170 {dimension_numbers = #tpu.dot_dimension_numbers<[1], [0], [0], [1], [0, 0, 1, 1], [], []>} : vector<128x4xbf16>, vector<4x128xbf16>, vector<128x128xf32> -> vector<128x128xf32>
    %102 = arith.addf %85, %101 : vector<128x128xf32>
    %c0_171 = arith.constant 0 : index
    %c0_172 = arith.constant 0 : index
    %c0_173 = arith.constant 0 : index
    %c1_174 = arith.constant 1 : index
    %c0_175 = arith.constant 0 : index
    %c0_176 = arith.constant 0 : index
    %103 = vector.load %arg1[%c0_171, %c0_172, %c0_173, %c1_174, %c0_175, %c0_176] : memref<1x2x2x5x9x4xbf16, #tpu.memory_space<vmem>>, vector<1x1x1x4x8x4xbf16>
    %104 = vector.shape_cast %103 : vector<1x1x1x4x8x4xbf16> to vector<4x8x4xbf16>
    %105 = vector.shape_cast %104 : vector<4x8x4xbf16> to vector<32x4xbf16>
    %c0_177 = arith.constant 0 : index
    %c0_178 = arith.constant 0 : index
    %c1_179 = arith.constant 1 : index
    %c1_180 = arith.constant 1 : index
    %c0_181 = arith.constant 0 : index
    %c0_182 = arith.constant 0 : index
    %106 = vector.load %arg1[%c0_177, %c0_178, %c1_179, %c1_180, %c0_181, %c0_182] : memref<1x2x2x5x9x4xbf16, #tpu.memory_space<vmem>>, vector<1x1x1x4x8x4xbf16>
    %107 = vector.shape_cast %106 : vector<1x1x1x4x8x4xbf16> to vector<4x8x4xbf16>
    %108 = vector.shape_cast %107 : vector<4x8x4xbf16> to vector<32x4xbf16>
    %c0_183 = arith.constant 0 : index
    %c1_184 = arith.constant 1 : index
    %c0_185 = arith.constant 0 : index
    %c1_186 = arith.constant 1 : index
    %c0_187 = arith.constant 0 : index
    %c0_188 = arith.constant 0 : index
    %109 = vector.load %arg1[%c0_183, %c1_184, %c0_185, %c1_186, %c0_187, %c0_188] : memref<1x2x2x5x9x4xbf16, #tpu.memory_space<vmem>>, vector<1x1x1x4x8x4xbf16>
    %110 = vector.shape_cast %109 : vector<1x1x1x4x8x4xbf16> to vector<4x8x4xbf16>
    %111 = vector.shape_cast %110 : vector<4x8x4xbf16> to vector<32x4xbf16>
    %c0_189 = arith.constant 0 : index
    %c1_190 = arith.constant 1 : index
    %c1_191 = arith.constant 1 : index
    %c1_192 = arith.constant 1 : index
    %c0_193 = arith.constant 0 : index
    %c0_194 = arith.constant 0 : index
    %112 = vector.load %arg1[%c0_189, %c1_190, %c1_191, %c1_192, %c0_193, %c0_194] : memref<1x2x2x5x9x4xbf16, #tpu.memory_space<vmem>>, vector<1x1x1x4x8x4xbf16>
    %113 = vector.shape_cast %112 : vector<1x1x1x4x8x4xbf16> to vector<4x8x4xbf16>
    %114 = vector.shape_cast %113 : vector<4x8x4xbf16> to vector<32x4xbf16>
    %115 = tpu.concatenate %105, %108, %111, %114 in 0 : vector<32x4xbf16>, vector<32x4xbf16>, vector<32x4xbf16>, vector<32x4xbf16> -> vector<128x4xbf16>
    %c2_195 = arith.constant 2 : index
    %c0_196 = arith.constant 0 : index
    %c0_197 = arith.constant 0 : index
    %c0_198 = arith.constant 0 : index
    %116 = vector.load %arg2[%c2_195, %c0_196, %c0_197, %c0_198] : memref<3x3x4x128xbf16, #tpu.memory_space<vmem>>, vector<1x1x4x128xbf16>
    %117 = vector.shape_cast %116 : vector<1x1x4x128xbf16> to vector<4x128xbf16>
    %cst_199 = arith.constant dense<0.000000e+00> : vector<128x128xf32>
    %118 = tpu.matmul %115, %117, %cst_199 {dimension_numbers = #tpu.dot_dimension_numbers<[1], [0], [0], [1], [0, 0, 1, 1], [], []>} : vector<128x4xbf16>, vector<4x128xbf16>, vector<128x128xf32> -> vector<128x128xf32>
    %119 = arith.addf %102, %118 : vector<128x128xf32>
    %c0_200 = arith.constant 0 : index
    %c0_201 = arith.constant 0 : index
    %c1_202 = arith.constant 1 : index
    %c1_203 = arith.constant 1 : index
    %c0_204 = arith.constant 0 : index
    %c0_205 = arith.constant 0 : index
    %120 = vector.load %arg1[%c0_200, %c0_201, %c1_202, %c1_203, %c0_204, %c0_205] : memref<1x2x2x5x9x4xbf16, #tpu.memory_space<vmem>>, vector<1x1x1x4x8x4xbf16>
    %121 = vector.shape_cast %120 : vector<1x1x1x4x8x4xbf16> to vector<4x8x4xbf16>
    %122 = vector.shape_cast %121 : vector<4x8x4xbf16> to vector<32x4xbf16>
    %c0_206 = arith.constant 0 : index
    %c0_207 = arith.constant 0 : index
    %c0_208 = arith.constant 0 : index
    %c1_209 = arith.constant 1 : index
    %c1_210 = arith.constant 1 : index
    %c0_211 = arith.constant 0 : index
    %123 = vector.load %arg1[%c0_206, %c0_207, %c0_208, %c1_209, %c1_210, %c0_211] : memref<1x2x2x5x9x4xbf16, #tpu.memory_space<vmem>>, vector<1x1x1x4x8x4xbf16>
    %124 = vector.shape_cast %123 : vector<1x1x1x4x8x4xbf16> to vector<4x8x4xbf16>
    %125 = vector.shape_cast %124 : vector<4x8x4xbf16> to vector<32x4xbf16>
    %c0_212 = arith.constant 0 : index
    %c1_213 = arith.constant 1 : index
    %c1_214 = arith.constant 1 : index
    %c1_215 = arith.constant 1 : index
    %c0_216 = arith.constant 0 : index
    %c0_217 = arith.constant 0 : index
    %126 = vector.load %arg1[%c0_212, %c1_213, %c1_214, %c1_215, %c0_216, %c0_217] : memref<1x2x2x5x9x4xbf16, #tpu.memory_space<vmem>>, vector<1x1x1x4x8x4xbf16>
    %127 = vector.shape_cast %126 : vector<1x1x1x4x8x4xbf16> to vector<4x8x4xbf16>
    %128 = vector.shape_cast %127 : vector<4x8x4xbf16> to vector<32x4xbf16>
    %c0_218 = arith.constant 0 : index
    %c1_219 = arith.constant 1 : index
    %c0_220 = arith.constant 0 : index
    %c1_221 = arith.constant 1 : index
    %c1_222 = arith.constant 1 : index
    %c0_223 = arith.constant 0 : index
    %129 = vector.load %arg1[%c0_218, %c1_219, %c0_220, %c1_221, %c1_222, %c0_223] : memref<1x2x2x5x9x4xbf16, #tpu.memory_space<vmem>>, vector<1x1x1x4x8x4xbf16>
    %130 = vector.shape_cast %129 : vector<1x1x1x4x8x4xbf16> to vector<4x8x4xbf16>
    %131 = vector.shape_cast %130 : vector<4x8x4xbf16> to vector<32x4xbf16>
    %132 = tpu.concatenate %122, %125, %128, %131 in 0 : vector<32x4xbf16>, vector<32x4xbf16>, vector<32x4xbf16>, vector<32x4xbf16> -> vector<128x4xbf16>
    %c2_224 = arith.constant 2 : index
    %c1_225 = arith.constant 1 : index
    %c0_226 = arith.constant 0 : index
    %c0_227 = arith.constant 0 : index
    %133 = vector.load %arg2[%c2_224, %c1_225, %c0_226, %c0_227] : memref<3x3x4x128xbf16, #tpu.memory_space<vmem>>, vector<1x1x4x128xbf16>
    %134 = vector.shape_cast %133 : vector<1x1x4x128xbf16> to vector<4x128xbf16>
    %cst_228 = arith.constant dense<0.000000e+00> : vector<128x128xf32>
    %135 = tpu.matmul %132, %134, %cst_228 {dimension_numbers = #tpu.dot_dimension_numbers<[1], [0], [0], [1], [0, 0, 1, 1], [], []>} : vector<128x4xbf16>, vector<4x128xbf16>, vector<128x128xf32> -> vector<128x128xf32>
    %136 = arith.addf %119, %135 : vector<128x128xf32>
    %c0_229 = arith.constant 0 : index
    %c0_230 = arith.constant 0 : index
    %c0_231 = arith.constant 0 : index
    %c1_232 = arith.constant 1 : index
    %c1_233 = arith.constant 1 : index
    %c0_234 = arith.constant 0 : index
    %137 = vector.load %arg1[%c0_229, %c0_230, %c0_231, %c1_232, %c1_233, %c0_234] : memref<1x2x2x5x9x4xbf16, #tpu.memory_space<vmem>>, vector<1x1x1x4x8x4xbf16>
    %138 = vector.shape_cast %137 : vector<1x1x1x4x8x4xbf16> to vector<4x8x4xbf16>
    %139 = vector.shape_cast %138 : vector<4x8x4xbf16> to vector<32x4xbf16>
    %c0_235 = arith.constant 0 : index
    %c0_236 = arith.constant 0 : index
    %c1_237 = arith.constant 1 : index
    %c1_238 = arith.constant 1 : index
    %c1_239 = arith.constant 1 : index
    %c0_240 = arith.constant 0 : index
    %140 = vector.load %arg1[%c0_235, %c0_236, %c1_237, %c1_238, %c1_239, %c0_240] : memref<1x2x2x5x9x4xbf16, #tpu.memory_space<vmem>>, vector<1x1x1x4x8x4xbf16>
    %141 = vector.shape_cast %140 : vector<1x1x1x4x8x4xbf16> to vector<4x8x4xbf16>
    %142 = vector.shape_cast %141 : vector<4x8x4xbf16> to vector<32x4xbf16>
    %c0_241 = arith.constant 0 : index
    %c1_242 = arith.constant 1 : index
    %c0_243 = arith.constant 0 : index
    %c1_244 = arith.constant 1 : index
    %c1_245 = arith.constant 1 : index
    %c0_246 = arith.constant 0 : index
    %143 = vector.load %arg1[%c0_241, %c1_242, %c0_243, %c1_244, %c1_245, %c0_246] : memref<1x2x2x5x9x4xbf16, #tpu.memory_space<vmem>>, vector<1x1x1x4x8x4xbf16>
    %144 = vector.shape_cast %143 : vector<1x1x1x4x8x4xbf16> to vector<4x8x4xbf16>
    %145 = vector.shape_cast %144 : vector<4x8x4xbf16> to vector<32x4xbf16>
    %c0_247 = arith.constant 0 : index
    %c1_248 = arith.constant 1 : index
    %c1_249 = arith.constant 1 : index
    %c1_250 = arith.constant 1 : index
    %c1_251 = arith.constant 1 : index
    %c0_252 = arith.constant 0 : index
    %146 = vector.load %arg1[%c0_247, %c1_248, %c1_249, %c1_250, %c1_251, %c0_252] : memref<1x2x2x5x9x4xbf16, #tpu.memory_space<vmem>>, vector<1x1x1x4x8x4xbf16>
    %147 = vector.shape_cast %146 : vector<1x1x1x4x8x4xbf16> to vector<4x8x4xbf16>
    %148 = vector.shape_cast %147 : vector<4x8x4xbf16> to vector<32x4xbf16>
    %149 = tpu.concatenate %139, %142, %145, %148 in 0 : vector<32x4xbf16>, vector<32x4xbf16>, vector<32x4xbf16>, vector<32x4xbf16> -> vector<128x4xbf16>
    %c2_253 = arith.constant 2 : index
    %c2_254 = arith.constant 2 : index
    %c0_255 = arith.constant 0 : index
    %c0_256 = arith.constant 0 : index
    %150 = vector.load %arg2[%c2_253, %c2_254, %c0_255, %c0_256] : memref<3x3x4x128xbf16, #tpu.memory_space<vmem>>, vector<1x1x4x128xbf16>
    %151 = vector.shape_cast %150 : vector<1x1x4x128xbf16> to vector<4x128xbf16>
    %cst_257 = arith.constant dense<0.000000e+00> : vector<128x128xf32>
    %152 = tpu.matmul %149, %151, %cst_257 {dimension_numbers = #tpu.dot_dimension_numbers<[1], [0], [0], [1], [0, 0, 1, 1], [], []>} : vector<128x4xbf16>, vector<4x128xbf16>, vector<128x128xf32> -> vector<128x128xf32>
    %153 = arith.addf %136, %152 : vector<128x128xf32>
    %cst_258 = arith.constant dense<0.000000e+00> : vector<128xf32>
    %154 = vector.multi_reduction <add>, %153, %cst_258 [0] : vector<128x128xf32> to vector<128xf32>
    %155 = vector.shape_cast %154 : vector<128xf32> to vector<1x128xf32>
    %156 = arith.mulf %153, %153 : vector<128x128xf32>
    %cst_259 = arith.constant dense<0.000000e+00> : vector<128xf32>
    %157 = vector.multi_reduction <add>, %156, %cst_259 [0] : vector<128x128xf32> to vector<128xf32>
    %158 = vector.shape_cast %157 : vector<128xf32> to vector<1x128xf32>
    %c0_i32 = arith.constant 0 : i32
    %159 = arith.cmpi eq, %arg0, %c0_i32 : i32
    %160 = arith.extui %159 : i1 to i32
    %c0_i32_260 = arith.constant 0 : i32
    %161 = arith.cmpi ne, %160, %c0_i32_260 : i32
    scf.if %161 {
      %cst_265 = arith.constant 0.000000e+00 : f32
      %166 = vector.broadcast %cst_265 : f32 to vector<2x128xf32>
      %c0_266 = arith.constant 0 : index
      %c0_267 = arith.constant 0 : index
      %167 = vector.load %arg3[%c0_266, %c0_267] : memref<2x128xf32, #tpu.memory_space<vmem>>, vector<2x128xf32>
      tpu.vector_store %arg3[%c0_266, %c0_267], %166 {strides = array<i32>} : memref<2x128xf32, #tpu.memory_space<vmem>>, vector<2x128xf32>,
    } else {
    }
    %c0_261 = arith.constant 0 : index
    %c0_262 = arith.constant 0 : index
    %162 = vector.load %arg3[%c0_261, %c0_262] : memref<2x128xf32, #tpu.memory_space<vmem>>, vector<2x128xf32>
    %163 = tpu.concatenate %155, %158 in 0 : vector<1x128xf32>, vector<1x128xf32> -> vector<2x128xf32>
    %164 = arith.addf %162, %163 : vector<2x128xf32>
    %c0_263 = arith.constant 0 : index
    %c0_264 = arith.constant 0 : index
    %165 = vector.load %arg3[%c0_263, %c0_264] : memref<2x128xf32, #tpu.memory_space<vmem>>, vector<2x128xf32>
    tpu.vector_store %arg3[%c0_263, %c0_264], %164 {strides = array<i32>} : memref<2x128xf32, #tpu.memory_space<vmem>>, vector<2x128xf32>,
    return
  }
  func.func @transform_0(%arg0: i32) -> (i32, i32, i32, i32, i32, i32) {
    %c0_i32 = arith.constant 0 : i32
    %c0_i32_0 = arith.constant 0 : i32
    %c0_i32_1 = arith.constant 0 : i32
    %c0_i32_2 = arith.constant 0 : i32
    %c0_i32_3 = arith.constant 0 : i32
    %c0_i32_4 = arith.constant 0 : i32
    return %arg0, %c0_i32, %c0_i32_0, %c0_i32_1, %c0_i32_2, %c0_i32_3 : i32, i32, i32, i32, i32, i32
  }
  func.func @transform_1(%arg0: i32) -> (i32, i32, i32, i32) {
    %c0_i32 = arith.constant 0 : i32
    %c0_i32_0 = arith.constant 0 : i32
    %c0_i32_1 = arith.constant 0 : i32
    %c0_i32_2 = arith.constant 0 : i32
    %c0_i32_3 = arith.constant 0 : i32
    return %c0_i32, %c0_i32_0, %c0_i32_1, %c0_i32_2 : i32, i32, i32, i32
  }
  func.func @transform_2(%arg0: i32) -> (i32, i32) {
    %c0_i32 = arith.constant 0 : i32
    %c0_i32_0 = arith.constant 0 : i32
    %c0_i32_1 = arith.constant 0 : i32
    return %c0_i32, %c0_i32_0 : i32, i32
  }
}

module attributes {stable_mosaic.version = 11 : i64} {
  func.func @_apply_kernel(%arg0: i32, %arg1: memref<1x2x2x5x9x4xbf16, #tpu.memory_space<vmem>>, %arg2: memref<3x3x4x128xbf16, #tpu.memory_space<vmem>>, %arg3: memref<1x128xf32, #tpu.memory_space<vmem>>, %arg4: memref<1x128xf32, #tpu.memory_space<vmem>>, %arg5: memref<32x128xf32, #tpu.memory_space<vmem>>) attributes {dimension_semantics = [#tpu.dimension_semantics<parallel>], iteration_bounds = array<i64: 4>, scalar_prefetch = 0 : i64, scratch_operands = 0 : i64, tpu.core_type = #tpu.core_type<tc>, window_params = [{transform_indices = @transform_0, window_bounds = array<i64: 1, 2, 2, 5, 9, 4>}, {pipeline_mode = #tpu.pipeline_mode<synchronous>, transform_indices = @transform_1, window_bounds = array<i64: 3, 3, 4, 128>}, {pipeline_mode = #tpu.pipeline_mode<synchronous>, transform_indices = @transform_2, window_bounds = array<i64: 1, 128>}, {pipeline_mode = #tpu.pipeline_mode<synchronous>, transform_indices = @transform_3, window_bounds = array<i64: 1, 128>}, {transform_indices = @transform_4, window_bounds = array<i64: 32, 128>}]} {
    %cst = arith.constant 0.000000e+00 : f32
    %0 = vector.broadcast %cst : f32 to vector<128x128xf32>
    %c0 = arith.constant 0 : index
    %c0_0 = arith.constant 0 : index
    %c0_1 = arith.constant 0 : index
    %c0_2 = arith.constant 0 : index
    %c0_3 = arith.constant 0 : index
    %c0_4 = arith.constant 0 : index
    %1 = vector.load %arg1[%c0, %c0_0, %c0_1, %c0_2, %c0_3, %c0_4] : memref<1x2x2x5x9x4xbf16, #tpu.memory_space<vmem>>, vector<1x1x1x4x8x4xbf16>
    %2 = vector.shape_cast %1 : vector<1x1x1x4x8x4xbf16> to vector<4x8x4xbf16>
    %3 = vector.shape_cast %2 : vector<4x8x4xbf16> to vector<32x4xbf16>
    %c0_5 = arith.constant 0 : index
    %c0_6 = arith.constant 0 : index
    %c1 = arith.constant 1 : index
    %c0_7 = arith.constant 0 : index
    %c0_8 = arith.constant 0 : index
    %c0_9 = arith.constant 0 : index
    %4 = vector.load %arg1[%c0_5, %c0_6, %c1, %c0_7, %c0_8, %c0_9] : memref<1x2x2x5x9x4xbf16, #tpu.memory_space<vmem>>, vector<1x1x1x4x8x4xbf16>
    %5 = vector.shape_cast %4 : vector<1x1x1x4x8x4xbf16> to vector<4x8x4xbf16>
    %6 = vector.shape_cast %5 : vector<4x8x4xbf16> to vector<32x4xbf16>
    %c0_10 = arith.constant 0 : index
    %c1_11 = arith.constant 1 : index
    %c0_12 = arith.constant 0 : index
    %c0_13 = arith.constant 0 : index
    %c0_14 = arith.constant 0 : index
    %c0_15 = arith.constant 0 : index
    %7 = vector.load %arg1[%c0_10, %c1_11, %c0_12, %c0_13, %c0_14, %c0_15] : memref<1x2x2x5x9x4xbf16, #tpu.memory_space<vmem>>, vector<1x1x1x4x8x4xbf16>
    %8 = vector.shape_cast %7 : vector<1x1x1x4x8x4xbf16> to vector<4x8x4xbf16>
    %9 = vector.shape_cast %8 : vector<4x8x4xbf16> to vector<32x4xbf16>
    %c0_16 = arith.constant 0 : index
    %c1_17 = arith.constant 1 : index
    %c1_18 = arith.constant 1 : index
    %c0_19 = arith.constant 0 : index
    %c0_20 = arith.constant 0 : index
    %c0_21 = arith.constant 0 : index
    %10 = vector.load %arg1[%c0_16, %c1_17, %c1_18, %c0_19, %c0_20, %c0_21] : memref<1x2x2x5x9x4xbf16, #tpu.memory_space<vmem>>, vector<1x1x1x4x8x4xbf16>
    %11 = vector.shape_cast %10 : vector<1x1x1x4x8x4xbf16> to vector<4x8x4xbf16>
    %12 = vector.shape_cast %11 : vector<4x8x4xbf16> to vector<32x4xbf16>
    %13 = tpu.concatenate %3, %6, %9, %12 in 0 : vector<32x4xbf16>, vector<32x4xbf16>, vector<32x4xbf16>, vector<32x4xbf16> -> vector<128x4xbf16>
    %c0_22 = arith.constant 0 : index
    %c0_23 = arith.constant 0 : index
    %c0_24 = arith.constant 0 : index
    %c0_25 = arith.constant 0 : index
    %14 = vector.load %arg2[%c0_22, %c0_23, %c0_24, %c0_25] : memref<3x3x4x128xbf16, #tpu.memory_space<vmem>>, vector<1x1x4x128xbf16>
    %15 = vector.shape_cast %14 : vector<1x1x4x128xbf16> to vector<4x128xbf16>
    %cst_26 = arith.constant dense<0.000000e+00> : vector<128x128xf32>
    %16 = tpu.matmul %13, %15, %cst_26 {dimension_numbers = #tpu.dot_dimension_numbers<[1], [0], [0], [1], [0, 0, 1, 1], [], []>} : vector<128x4xbf16>, vector<4x128xbf16>, vector<128x128xf32> -> vector<128x128xf32>
    %17 = arith.addf %0, %16 : vector<128x128xf32>
    %c0_27 = arith.constant 0 : index
    %c0_28 = arith.constant 0 : index
    %c1_29 = arith.constant 1 : index
    %c0_30 = arith.constant 0 : index
    %c0_31 = arith.constant 0 : index
    %c0_32 = arith.constant 0 : index
    %18 = vector.load %arg1[%c0_27, %c0_28, %c1_29, %c0_30, %c0_31, %c0_32] : memref<1x2x2x5x9x4xbf16, #tpu.memory_space<vmem>>, vector<1x1x1x4x8x4xbf16>
    %19 = vector.shape_cast %18 : vector<1x1x1x4x8x4xbf16> to vector<4x8x4xbf16>
    %20 = vector.shape_cast %19 : vector<4x8x4xbf16> to vector<32x4xbf16>
    %c0_33 = arith.constant 0 : index
    %c0_34 = arith.constant 0 : index
    %c0_35 = arith.constant 0 : index
    %c0_36 = arith.constant 0 : index
    %c1_37 = arith.constant 1 : index
    %c0_38 = arith.constant 0 : index
    %21 = vector.load %arg1[%c0_33, %c0_34, %c0_35, %c0_36, %c1_37, %c0_38] : memref<1x2x2x5x9x4xbf16, #tpu.memory_space<vmem>>, vector<1x1x1x4x8x4xbf16>
    %22 = vector.shape_cast %21 : vector<1x1x1x4x8x4xbf16> to vector<4x8x4xbf16>
    %23 = vector.shape_cast %22 : vector<4x8x4xbf16> to vector<32x4xbf16>
    %c0_39 = arith.constant 0 : index
    %c1_40 = arith.constant 1 : index
    %c1_41 = arith.constant 1 : index
    %c0_42 = arith.constant 0 : index
    %c0_43 = arith.constant 0 : index
    %c0_44 = arith.constant 0 : index
    %24 = vector.load %arg1[%c0_39, %c1_40, %c1_41, %c0_42, %c0_43, %c0_44] : memref<1x2x2x5x9x4xbf16, #tpu.memory_space<vmem>>, vector<1x1x1x4x8x4xbf16>
    %25 = vector.shape_cast %24 : vector<1x1x1x4x8x4xbf16> to vector<4x8x4xbf16>
    %26 = vector.shape_cast %25 : vector<4x8x4xbf16> to vector<32x4xbf16>
    %c0_45 = arith.constant 0 : index
    %c1_46 = arith.constant 1 : index
    %c0_47 = arith.constant 0 : index
    %c0_48 = arith.constant 0 : index
    %c1_49 = arith.constant 1 : index
    %c0_50 = arith.constant 0 : index
    %27 = vector.load %arg1[%c0_45, %c1_46, %c0_47, %c0_48, %c1_49, %c0_50] : memref<1x2x2x5x9x4xbf16, #tpu.memory_space<vmem>>, vector<1x1x1x4x8x4xbf16>
    %28 = vector.shape_cast %27 : vector<1x1x1x4x8x4xbf16> to vector<4x8x4xbf16>
    %29 = vector.shape_cast %28 : vector<4x8x4xbf16> to vector<32x4xbf16>
    %30 = tpu.concatenate %20, %23, %26, %29 in 0 : vector<32x4xbf16>, vector<32x4xbf16>, vector<32x4xbf16>, vector<32x4xbf16> -> vector<128x4xbf16>
    %c0_51 = arith.constant 0 : index
    %c1_52 = arith.constant 1 : index
    %c0_53 = arith.constant 0 : index
    %c0_54 = arith.constant 0 : index
    %31 = vector.load %arg2[%c0_51, %c1_52, %c0_53, %c0_54] : memref<3x3x4x128xbf16, #tpu.memory_space<vmem>>, vector<1x1x4x128xbf16>
    %32 = vector.shape_cast %31 : vector<1x1x4x128xbf16> to vector<4x128xbf16>
    %cst_55 = arith.constant dense<0.000000e+00> : vector<128x128xf32>
    %33 = tpu.matmul %30, %32, %cst_55 {dimension_numbers = #tpu.dot_dimension_numbers<[1], [0], [0], [1], [0, 0, 1, 1], [], []>} : vector<128x4xbf16>, vector<4x128xbf16>, vector<128x128xf32> -> vector<128x128xf32>
    %34 = arith.addf %17, %33 : vector<128x128xf32>
    %c0_56 = arith.constant 0 : index
    %c0_57 = arith.constant 0 : index
    %c0_58 = arith.constant 0 : index
    %c0_59 = arith.constant 0 : index
    %c1_60 = arith.constant 1 : index
    %c0_61 = arith.constant 0 : index
    %35 = vector.load %arg1[%c0_56, %c0_57, %c0_58, %c0_59, %c1_60, %c0_61] : memref<1x2x2x5x9x4xbf16, #tpu.memory_space<vmem>>, vector<1x1x1x4x8x4xbf16>
    %36 = vector.shape_cast %35 : vector<1x1x1x4x8x4xbf16> to vector<4x8x4xbf16>
    %37 = vector.shape_cast %36 : vector<4x8x4xbf16> to vector<32x4xbf16>
    %c0_62 = arith.constant 0 : index
    %c0_63 = arith.constant 0 : index
    %c1_64 = arith.constant 1 : index
    %c0_65 = arith.constant 0 : index
    %c1_66 = arith.constant 1 : index
    %c0_67 = arith.constant 0 : index
    %38 = vector.load %arg1[%c0_62, %c0_63, %c1_64, %c0_65, %c1_66, %c0_67] : memref<1x2x2x5x9x4xbf16, #tpu.memory_space<vmem>>, vector<1x1x1x4x8x4xbf16>
    %39 = vector.shape_cast %38 : vector<1x1x1x4x8x4xbf16> to vector<4x8x4xbf16>
    %40 = vector.shape_cast %39 : vector<4x8x4xbf16> to vector<32x4xbf16>
    %c0_68 = arith.constant 0 : index
    %c1_69 = arith.constant 1 : index
    %c0_70 = arith.constant 0 : index
    %c0_71 = arith.constant 0 : index
    %c1_72 = arith.constant 1 : index
    %c0_73 = arith.constant 0 : index
    %41 = vector.load %arg1[%c0_68, %c1_69, %c0_70, %c0_71, %c1_72, %c0_73] : memref<1x2x2x5x9x4xbf16, #tpu.memory_space<vmem>>, vector<1x1x1x4x8x4xbf16>
    %42 = vector.shape_cast %41 : vector<1x1x1x4x8x4xbf16> to vector<4x8x4xbf16>
    %43 = vector.shape_cast %42 : vector<4x8x4xbf16> to vector<32x4xbf16>
    %c0_74 = arith.constant 0 : index
    %c1_75 = arith.constant 1 : index
    %c1_76 = arith.constant 1 : index
    %c0_77 = arith.constant 0 : index
    %c1_78 = arith.constant 1 : index
    %c0_79 = arith.constant 0 : index
    %44 = vector.load %arg1[%c0_74, %c1_75, %c1_76, %c0_77, %c1_78, %c0_79] : memref<1x2x2x5x9x4xbf16, #tpu.memory_space<vmem>>, vector<1x1x1x4x8x4xbf16>
    %45 = vector.shape_cast %44 : vector<1x1x1x4x8x4xbf16> to vector<4x8x4xbf16>
    %46 = vector.shape_cast %45 : vector<4x8x4xbf16> to vector<32x4xbf16>
    %47 = tpu.concatenate %37, %40, %43, %46 in 0 : vector<32x4xbf16>, vector<32x4xbf16>, vector<32x4xbf16>, vector<32x4xbf16> -> vector<128x4xbf16>
    %c0_80 = arith.constant 0 : index
    %c2 = arith.constant 2 : index
    %c0_81 = arith.constant 0 : index
    %c0_82 = arith.constant 0 : index
    %48 = vector.load %arg2[%c0_80, %c2, %c0_81, %c0_82] : memref<3x3x4x128xbf16, #tpu.memory_space<vmem>>, vector<1x1x4x128xbf16>
    %49 = vector.shape_cast %48 : vector<1x1x4x128xbf16> to vector<4x128xbf16>
    %cst_83 = arith.constant dense<0.000000e+00> : vector<128x128xf32>
    %50 = tpu.matmul %47, %49, %cst_83 {dimension_numbers = #tpu.dot_dimension_numbers<[1], [0], [0], [1], [0, 0, 1, 1], [], []>} : vector<128x4xbf16>, vector<4x128xbf16>, vector<128x128xf32> -> vector<128x128xf32>
    %51 = arith.addf %34, %50 : vector<128x128xf32>
    %c0_84 = arith.constant 0 : index
    %c1_85 = arith.constant 1 : index
    %c0_86 = arith.constant 0 : index
    %c0_87 = arith.constant 0 : index
    %c0_88 = arith.constant 0 : index
    %c0_89 = arith.constant 0 : index
    %52 = vector.load %arg1[%c0_84, %c1_85, %c0_86, %c0_87, %c0_88, %c0_89] : memref<1x2x2x5x9x4xbf16, #tpu.memory_space<vmem>>, vector<1x1x1x4x8x4xbf16>
    %53 = vector.shape_cast %52 : vector<1x1x1x4x8x4xbf16> to vector<4x8x4xbf16>
    %54 = vector.shape_cast %53 : vector<4x8x4xbf16> to vector<32x4xbf16>
    %c0_90 = arith.constant 0 : index
    %c1_91 = arith.constant 1 : index
    %c1_92 = arith.constant 1 : index
    %c0_93 = arith.constant 0 : index
    %c0_94 = arith.constant 0 : index
    %c0_95 = arith.constant 0 : index
    %55 = vector.load %arg1[%c0_90, %c1_91, %c1_92, %c0_93, %c0_94, %c0_95] : memref<1x2x2x5x9x4xbf16, #tpu.memory_space<vmem>>, vector<1x1x1x4x8x4xbf16>
    %56 = vector.shape_cast %55 : vector<1x1x1x4x8x4xbf16> to vector<4x8x4xbf16>
    %57 = vector.shape_cast %56 : vector<4x8x4xbf16> to vector<32x4xbf16>
    %c0_96 = arith.constant 0 : index
    %c0_97 = arith.constant 0 : index
    %c0_98 = arith.constant 0 : index
    %c1_99 = arith.constant 1 : index
    %c0_100 = arith.constant 0 : index
    %c0_101 = arith.constant 0 : index
    %58 = vector.load %arg1[%c0_96, %c0_97, %c0_98, %c1_99, %c0_100, %c0_101] : memref<1x2x2x5x9x4xbf16, #tpu.memory_space<vmem>>, vector<1x1x1x4x8x4xbf16>
    %59 = vector.shape_cast %58 : vector<1x1x1x4x8x4xbf16> to vector<4x8x4xbf16>
    %60 = vector.shape_cast %59 : vector<4x8x4xbf16> to vector<32x4xbf16>
    %c0_102 = arith.constant 0 : index
    %c0_103 = arith.constant 0 : index
    %c1_104 = arith.constant 1 : index
    %c1_105 = arith.constant 1 : index
    %c0_106 = arith.constant 0 : index
    %c0_107 = arith.constant 0 : index
    %61 = vector.load %arg1[%c0_102, %c0_103, %c1_104, %c1_105, %c0_106, %c0_107] : memref<1x2x2x5x9x4xbf16, #tpu.memory_space<vmem>>, vector<1x1x1x4x8x4xbf16>
    %62 = vector.shape_cast %61 : vector<1x1x1x4x8x4xbf16> to vector<4x8x4xbf16>
    %63 = vector.shape_cast %62 : vector<4x8x4xbf16> to vector<32x4xbf16>
    %64 = tpu.concatenate %54, %57, %60, %63 in 0 : vector<32x4xbf16>, vector<32x4xbf16>, vector<32x4xbf16>, vector<32x4xbf16> -> vector<128x4xbf16>
    %c1_108 = arith.constant 1 : index
    %c0_109 = arith.constant 0 : index
    %c0_110 = arith.constant 0 : index
    %c0_111 = arith.constant 0 : index
    %65 = vector.load %arg2[%c1_108, %c0_109, %c0_110, %c0_111] : memref<3x3x4x128xbf16, #tpu.memory_space<vmem>>, vector<1x1x4x128xbf16>
    %66 = vector.shape_cast %65 : vector<1x1x4x128xbf16> to vector<4x128xbf16>
    %cst_112 = arith.constant dense<0.000000e+00> : vector<128x128xf32>
    %67 = tpu.matmul %64, %66, %cst_112 {dimension_numbers = #tpu.dot_dimension_numbers<[1], [0], [0], [1], [0, 0, 1, 1], [], []>} : vector<128x4xbf16>, vector<4x128xbf16>, vector<128x128xf32> -> vector<128x128xf32>
    %68 = arith.addf %51, %67 : vector<128x128xf32>
    %c0_113 = arith.constant 0 : index
    %c1_114 = arith.constant 1 : index
    %c1_115 = arith.constant 1 : index
    %c0_116 = arith.constant 0 : index
    %c0_117 = arith.constant 0 : index
    %c0_118 = arith.constant 0 : index
    %69 = vector.load %arg1[%c0_113, %c1_114, %c1_115, %c0_116, %c0_117, %c0_118] : memref<1x2x2x5x9x4xbf16, #tpu.memory_space<vmem>>, vector<1x1x1x4x8x4xbf16>
    %70 = vector.shape_cast %69 : vector<1x1x1x4x8x4xbf16> to vector<4x8x4xbf16>
    %71 = vector.shape_cast %70 : vector<4x8x4xbf16> to vector<32x4xbf16>
    %c0_119 = arith.constant 0 : index
    %c1_120 = arith.constant 1 : index
    %c0_121 = arith.constant 0 : index
    %c0_122 = arith.constant 0 : index
    %c1_123 = arith.constant 1 : index
    %c0_124 = arith.constant 0 : index
    %72 = vector.load %arg1[%c0_119, %c1_120, %c0_121, %c0_122, %c1_123, %c0_124] : memref<1x2x2x5x9x4xbf16, #tpu.memory_space<vmem>>, vector<1x1x1x4x8x4xbf16>
    %73 = vector.shape_cast %72 : vector<1x1x1x4x8x4xbf16> to vector<4x8x4xbf16>
    %74 = vector.shape_cast %73 : vector<4x8x4xbf16> to vector<32x4xbf16>
    %c0_125 = arith.constant 0 : index
    %c0_126 = arith.constant 0 : index
    %c1_127 = arith.constant 1 : index
    %c1_128 = arith.constant 1 : index
    %c0_129 = arith.constant 0 : index
    %c0_130 = arith.constant 0 : index
    %75 = vector.load %arg1[%c0_125, %c0_126, %c1_127, %c1_128, %c0_129, %c0_130] : memref<1x2x2x5x9x4xbf16, #tpu.memory_space<vmem>>, vector<1x1x1x4x8x4xbf16>
    %76 = vector.shape_cast %75 : vector<1x1x1x4x8x4xbf16> to vector<4x8x4xbf16>
    %77 = vector.shape_cast %76 : vector<4x8x4xbf16> to vector<32x4xbf16>
    %c0_131 = arith.constant 0 : index
    %c0_132 = arith.constant 0 : index
    %c0_133 = arith.constant 0 : index
    %c1_134 = arith.constant 1 : index
    %c1_135 = arith.constant 1 : index
    %c0_136 = arith.constant 0 : index
    %78 = vector.load %arg1[%c0_131, %c0_132, %c0_133, %c1_134, %c1_135, %c0_136] : memref<1x2x2x5x9x4xbf16, #tpu.memory_space<vmem>>, vector<1x1x1x4x8x4xbf16>
    %79 = vector.shape_cast %78 : vector<1x1x1x4x8x4xbf16> to vector<4x8x4xbf16>
    %80 = vector.shape_cast %79 : vector<4x8x4xbf16> to vector<32x4xbf16>
    %81 = tpu.concatenate %71, %74, %77, %80 in 0 : vector<32x4xbf16>, vector<32x4xbf16>, vector<32x4xbf16>, vector<32x4xbf16> -> vector<128x4xbf16>
    %c1_137 = arith.constant 1 : index
    %c1_138 = arith.constant 1 : index
    %c0_139 = arith.constant 0 : index
    %c0_140 = arith.constant 0 : index
    %82 = vector.load %arg2[%c1_137, %c1_138, %c0_139, %c0_140] : memref<3x3x4x128xbf16, #tpu.memory_space<vmem>>, vector<1x1x4x128xbf16>
    %83 = vector.shape_cast %82 : vector<1x1x4x128xbf16> to vector<4x128xbf16>
    %cst_141 = arith.constant dense<0.000000e+00> : vector<128x128xf32>
    %84 = tpu.matmul %81, %83, %cst_141 {dimension_numbers = #tpu.dot_dimension_numbers<[1], [0], [0], [1], [0, 0, 1, 1], [], []>} : vector<128x4xbf16>, vector<4x128xbf16>, vector<128x128xf32> -> vector<128x128xf32>
    %85 = arith.addf %68, %84 : vector<128x128xf32>
    %c0_142 = arith.constant 0 : index
    %c1_143 = arith.constant 1 : index
    %c0_144 = arith.constant 0 : index
    %c0_145 = arith.constant 0 : index
    %c1_146 = arith.constant 1 : index
    %c0_147 = arith.constant 0 : index
    %86 = vector.load %arg1[%c0_142, %c1_143, %c0_144, %c0_145, %c1_146, %c0_147] : memref<1x2x2x5x9x4xbf16, #tpu.memory_space<vmem>>, vector<1x1x1x4x8x4xbf16>
    %87 = vector.shape_cast %86 : vector<1x1x1x4x8x4xbf16> to vector<4x8x4xbf16>
    %88 = vector.shape_cast %87 : vector<4x8x4xbf16> to vector<32x4xbf16>
    %c0_148 = arith.constant 0 : index
    %c1_149 = arith.constant 1 : index
    %c1_150 = arith.constant 1 : index
    %c0_151 = arith.constant 0 : index
    %c1_152 = arith.constant 1 : index
    %c0_153 = arith.constant 0 : index
    %89 = vector.load %arg1[%c0_148, %c1_149, %c1_150, %c0_151, %c1_152, %c0_153] : memref<1x2x2x5x9x4xbf16, #tpu.memory_space<vmem>>, vector<1x1x1x4x8x4xbf16>
    %90 = vector.shape_cast %89 : vector<1x1x1x4x8x4xbf16> to vector<4x8x4xbf16>
    %91 = vector.shape_cast %90 : vector<4x8x4xbf16> to vector<32x4xbf16>
    %c0_154 = arith.constant 0 : index
    %c0_155 = arith.constant 0 : index
    %c0_156 = arith.constant 0 : index
    %c1_157 = arith.constant 1 : index
    %c1_158 = arith.constant 1 : index
    %c0_159 = arith.constant 0 : index
    %92 = vector.load %arg1[%c0_154, %c0_155, %c0_156, %c1_157, %c1_158, %c0_159] : memref<1x2x2x5x9x4xbf16, #tpu.memory_space<vmem>>, vector<1x1x1x4x8x4xbf16>
    %93 = vector.shape_cast %92 : vector<1x1x1x4x8x4xbf16> to vector<4x8x4xbf16>
    %94 = vector.shape_cast %93 : vector<4x8x4xbf16> to vector<32x4xbf16>
    %c0_160 = arith.constant 0 : index
    %c0_161 = arith.constant 0 : index
    %c1_162 = arith.constant 1 : index
    %c1_163 = arith.constant 1 : index
    %c1_164 = arith.constant 1 : index
    %c0_165 = arith.constant 0 : index
    %95 = vector.load %arg1[%c0_160, %c0_161, %c1_162, %c1_163, %c1_164, %c0_165] : memref<1x2x2x5x9x4xbf16, #tpu.memory_space<vmem>>, vector<1x1x1x4x8x4xbf16>
    %96 = vector.shape_cast %95 : vector<1x1x1x4x8x4xbf16> to vector<4x8x4xbf16>
    %97 = vector.shape_cast %96 : vector<4x8x4xbf16> to vector<32x4xbf16>
    %98 = tpu.concatenate %88, %91, %94, %97 in 0 : vector<32x4xbf16>, vector<32x4xbf16>, vector<32x4xbf16>, vector<32x4xbf16> -> vector<128x4xbf16>
    %c1_166 = arith.constant 1 : index
    %c2_167 = arith.constant 2 : index
    %c0_168 = arith.constant 0 : index
    %c0_169 = arith.constant 0 : index
    %99 = vector.load %arg2[%c1_166, %c2_167, %c0_168, %c0_169] : memref<3x3x4x128xbf16, #tpu.memory_space<vmem>>, vector<1x1x4x128xbf16>
    %100 = vector.shape_cast %99 : vector<1x1x4x128xbf16> to vector<4x128xbf16>
    %cst_170 = arith.constant dense<0.000000e+00> : vector<128x128xf32>
    %101 = tpu.matmul %98, %100, %cst_170 {dimension_numbers = #tpu.dot_dimension_numbers<[1], [0], [0], [1], [0, 0, 1, 1], [], []>} : vector<128x4xbf16>, vector<4x128xbf16>, vector<128x128xf32> -> vector<128x128xf32>
    %102 = arith.addf %85, %101 : vector<128x128xf32>
    %c0_171 = arith.constant 0 : index
    %c0_172 = arith.constant 0 : index
    %c0_173 = arith.constant 0 : index
    %c1_174 = arith.constant 1 : index
    %c0_175 = arith.constant 0 : index
    %c0_176 = arith.constant 0 : index
    %103 = vector.load %arg1[%c0_171, %c0_172, %c0_173, %c1_174, %c0_175, %c0_176] : memref<1x2x2x5x9x4xbf16, #tpu.memory_space<vmem>>, vector<1x1x1x4x8x4xbf16>
    %104 = vector.shape_cast %103 : vector<1x1x1x4x8x4xbf16> to vector<4x8x4xbf16>
    %105 = vector.shape_cast %104 : vector<4x8x4xbf16> to vector<32x4xbf16>
    %c0_177 = arith.constant 0 : index
    %c0_178 = arith.constant 0 : index
    %c1_179 = arith.constant 1 : index
    %c1_180 = arith.constant 1 : index
    %c0_181 = arith.constant 0 : index
    %c0_182 = arith.constant 0 : index
    %106 = vector.load %arg1[%c0_177, %c0_178, %c1_179, %c1_180, %c0_181, %c0_182] : memref<1x2x2x5x9x4xbf16, #tpu.memory_space<vmem>>, vector<1x1x1x4x8x4xbf16>
    %107 = vector.shape_cast %106 : vector<1x1x1x4x8x4xbf16> to vector<4x8x4xbf16>
    %108 = vector.shape_cast %107 : vector<4x8x4xbf16> to vector<32x4xbf16>
    %c0_183 = arith.constant 0 : index
    %c1_184 = arith.constant 1 : index
    %c0_185 = arith.constant 0 : index
    %c1_186 = arith.constant 1 : index
    %c0_187 = arith.constant 0 : index
    %c0_188 = arith.constant 0 : index
    %109 = vector.load %arg1[%c0_183, %c1_184, %c0_185, %c1_186, %c0_187, %c0_188] : memref<1x2x2x5x9x4xbf16, #tpu.memory_space<vmem>>, vector<1x1x1x4x8x4xbf16>
    %110 = vector.shape_cast %109 : vector<1x1x1x4x8x4xbf16> to vector<4x8x4xbf16>
    %111 = vector.shape_cast %110 : vector<4x8x4xbf16> to vector<32x4xbf16>
    %c0_189 = arith.constant 0 : index
    %c1_190 = arith.constant 1 : index
    %c1_191 = arith.constant 1 : index
    %c1_192 = arith.constant 1 : index
    %c0_193 = arith.constant 0 : index
    %c0_194 = arith.constant 0 : index
    %112 = vector.load %arg1[%c0_189, %c1_190, %c1_191, %c1_192, %c0_193, %c0_194] : memref<1x2x2x5x9x4xbf16, #tpu.memory_space<vmem>>, vector<1x1x1x4x8x4xbf16>
    %113 = vector.shape_cast %112 : vector<1x1x1x4x8x4xbf16> to vector<4x8x4xbf16>
    %114 = vector.shape_cast %113 : vector<4x8x4xbf16> to vector<32x4xbf16>
    %115 = tpu.concatenate %105, %108, %111, %114 in 0 : vector<32x4xbf16>, vector<32x4xbf16>, vector<32x4xbf16>, vector<32x4xbf16> -> vector<128x4xbf16>
    %c2_195 = arith.constant 2 : index
    %c0_196 = arith.constant 0 : index
    %c0_197 = arith.constant 0 : index
    %c0_198 = arith.constant 0 : index
    %116 = vector.load %arg2[%c2_195, %c0_196, %c0_197, %c0_198] : memref<3x3x4x128xbf16, #tpu.memory_space<vmem>>, vector<1x1x4x128xbf16>
    %117 = vector.shape_cast %116 : vector<1x1x4x128xbf16> to vector<4x128xbf16>
    %cst_199 = arith.constant dense<0.000000e+00> : vector<128x128xf32>
    %118 = tpu.matmul %115, %117, %cst_199 {dimension_numbers = #tpu.dot_dimension_numbers<[1], [0], [0], [1], [0, 0, 1, 1], [], []>} : vector<128x4xbf16>, vector<4x128xbf16>, vector<128x128xf32> -> vector<128x128xf32>
    %119 = arith.addf %102, %118 : vector<128x128xf32>
    %c0_200 = arith.constant 0 : index
    %c0_201 = arith.constant 0 : index
    %c1_202 = arith.constant 1 : index
    %c1_203 = arith.constant 1 : index
    %c0_204 = arith.constant 0 : index
    %c0_205 = arith.constant 0 : index
    %120 = vector.load %arg1[%c0_200, %c0_201, %c1_202, %c1_203, %c0_204, %c0_205] : memref<1x2x2x5x9x4xbf16, #tpu.memory_space<vmem>>, vector<1x1x1x4x8x4xbf16>
    %121 = vector.shape_cast %120 : vector<1x1x1x4x8x4xbf16> to vector<4x8x4xbf16>
    %122 = vector.shape_cast %121 : vector<4x8x4xbf16> to vector<32x4xbf16>
    %c0_206 = arith.constant 0 : index
    %c0_207 = arith.constant 0 : index
    %c0_208 = arith.constant 0 : index
    %c1_209 = arith.constant 1 : index
    %c1_210 = arith.constant 1 : index
    %c0_211 = arith.constant 0 : index
    %123 = vector.load %arg1[%c0_206, %c0_207, %c0_208, %c1_209, %c1_210, %c0_211] : memref<1x2x2x5x9x4xbf16, #tpu.memory_space<vmem>>, vector<1x1x1x4x8x4xbf16>
    %124 = vector.shape_cast %123 : vector<1x1x1x4x8x4xbf16> to vector<4x8x4xbf16>
    %125 = vector.shape_cast %124 : vector<4x8x4xbf16> to vector<32x4xbf16>
    %c0_212 = arith.constant 0 : index
    %c1_213 = arith.constant 1 : index
    %c1_214 = arith.constant 1 : index
    %c1_215 = arith.constant 1 : index
    %c0_216 = arith.constant 0 : index
    %c0_217 = arith.constant 0 : index
    %126 = vector.load %arg1[%c0_212, %c1_213, %c1_214, %c1_215, %c0_216, %c0_217] : memref<1x2x2x5x9x4xbf16, #tpu.memory_space<vmem>>, vector<1x1x1x4x8x4xbf16>
    %127 = vector.shape_cast %126 : vector<1x1x1x4x8x4xbf16> to vector<4x8x4xbf16>
    %128 = vector.shape_cast %127 : vector<4x8x4xbf16> to vector<32x4xbf16>
    %c0_218 = arith.constant 0 : index
    %c1_219 = arith.constant 1 : index
    %c0_220 = arith.constant 0 : index
    %c1_221 = arith.constant 1 : index
    %c1_222 = arith.constant 1 : index
    %c0_223 = arith.constant 0 : index
    %129 = vector.load %arg1[%c0_218, %c1_219, %c0_220, %c1_221, %c1_222, %c0_223] : memref<1x2x2x5x9x4xbf16, #tpu.memory_space<vmem>>, vector<1x1x1x4x8x4xbf16>
    %130 = vector.shape_cast %129 : vector<1x1x1x4x8x4xbf16> to vector<4x8x4xbf16>
    %131 = vector.shape_cast %130 : vector<4x8x4xbf16> to vector<32x4xbf16>
    %132 = tpu.concatenate %122, %125, %128, %131 in 0 : vector<32x4xbf16>, vector<32x4xbf16>, vector<32x4xbf16>, vector<32x4xbf16> -> vector<128x4xbf16>
    %c2_224 = arith.constant 2 : index
    %c1_225 = arith.constant 1 : index
    %c0_226 = arith.constant 0 : index
    %c0_227 = arith.constant 0 : index
    %133 = vector.load %arg2[%c2_224, %c1_225, %c0_226, %c0_227] : memref<3x3x4x128xbf16, #tpu.memory_space<vmem>>, vector<1x1x4x128xbf16>
    %134 = vector.shape_cast %133 : vector<1x1x4x128xbf16> to vector<4x128xbf16>
    %cst_228 = arith.constant dense<0.000000e+00> : vector<128x128xf32>
    %135 = tpu.matmul %132, %134, %cst_228 {dimension_numbers = #tpu.dot_dimension_numbers<[1], [0], [0], [1], [0, 0, 1, 1], [], []>} : vector<128x4xbf16>, vector<4x128xbf16>, vector<128x128xf32> -> vector<128x128xf32>
    %136 = arith.addf %119, %135 : vector<128x128xf32>
    %c0_229 = arith.constant 0 : index
    %c0_230 = arith.constant 0 : index
    %c0_231 = arith.constant 0 : index
    %c1_232 = arith.constant 1 : index
    %c1_233 = arith.constant 1 : index
    %c0_234 = arith.constant 0 : index
    %137 = vector.load %arg1[%c0_229, %c0_230, %c0_231, %c1_232, %c1_233, %c0_234] : memref<1x2x2x5x9x4xbf16, #tpu.memory_space<vmem>>, vector<1x1x1x4x8x4xbf16>
    %138 = vector.shape_cast %137 : vector<1x1x1x4x8x4xbf16> to vector<4x8x4xbf16>
    %139 = vector.shape_cast %138 : vector<4x8x4xbf16> to vector<32x4xbf16>
    %c0_235 = arith.constant 0 : index
    %c0_236 = arith.constant 0 : index
    %c1_237 = arith.constant 1 : index
    %c1_238 = arith.constant 1 : index
    %c1_239 = arith.constant 1 : index
    %c0_240 = arith.constant 0 : index
    %140 = vector.load %arg1[%c0_235, %c0_236, %c1_237, %c1_238, %c1_239, %c0_240] : memref<1x2x2x5x9x4xbf16, #tpu.memory_space<vmem>>, vector<1x1x1x4x8x4xbf16>
    %141 = vector.shape_cast %140 : vector<1x1x1x4x8x4xbf16> to vector<4x8x4xbf16>
    %142 = vector.shape_cast %141 : vector<4x8x4xbf16> to vector<32x4xbf16>
    %c0_241 = arith.constant 0 : index
    %c1_242 = arith.constant 1 : index
    %c0_243 = arith.constant 0 : index
    %c1_244 = arith.constant 1 : index
    %c1_245 = arith.constant 1 : index
    %c0_246 = arith.constant 0 : index
    %143 = vector.load %arg1[%c0_241, %c1_242, %c0_243, %c1_244, %c1_245, %c0_246] : memref<1x2x2x5x9x4xbf16, #tpu.memory_space<vmem>>, vector<1x1x1x4x8x4xbf16>
    %144 = vector.shape_cast %143 : vector<1x1x1x4x8x4xbf16> to vector<4x8x4xbf16>
    %145 = vector.shape_cast %144 : vector<4x8x4xbf16> to vector<32x4xbf16>
    %c0_247 = arith.constant 0 : index
    %c1_248 = arith.constant 1 : index
    %c1_249 = arith.constant 1 : index
    %c1_250 = arith.constant 1 : index
    %c1_251 = arith.constant 1 : index
    %c0_252 = arith.constant 0 : index
    %146 = vector.load %arg1[%c0_247, %c1_248, %c1_249, %c1_250, %c1_251, %c0_252] : memref<1x2x2x5x9x4xbf16, #tpu.memory_space<vmem>>, vector<1x1x1x4x8x4xbf16>
    %147 = vector.shape_cast %146 : vector<1x1x1x4x8x4xbf16> to vector<4x8x4xbf16>
    %148 = vector.shape_cast %147 : vector<4x8x4xbf16> to vector<32x4xbf16>
    %149 = tpu.concatenate %139, %142, %145, %148 in 0 : vector<32x4xbf16>, vector<32x4xbf16>, vector<32x4xbf16>, vector<32x4xbf16> -> vector<128x4xbf16>
    %c2_253 = arith.constant 2 : index
    %c2_254 = arith.constant 2 : index
    %c0_255 = arith.constant 0 : index
    %c0_256 = arith.constant 0 : index
    %150 = vector.load %arg2[%c2_253, %c2_254, %c0_255, %c0_256] : memref<3x3x4x128xbf16, #tpu.memory_space<vmem>>, vector<1x1x4x128xbf16>
    %151 = vector.shape_cast %150 : vector<1x1x4x128xbf16> to vector<4x128xbf16>
    %cst_257 = arith.constant dense<0.000000e+00> : vector<128x128xf32>
    %152 = tpu.matmul %149, %151, %cst_257 {dimension_numbers = #tpu.dot_dimension_numbers<[1], [0], [0], [1], [0, 0, 1, 1], [], []>} : vector<128x4xbf16>, vector<4x128xbf16>, vector<128x128xf32> -> vector<128x128xf32>
    %153 = arith.addf %136, %152 : vector<128x128xf32>
    %c0_258 = arith.constant 0 : index
    %c0_259 = arith.constant 0 : index
    %154 = vector.load %arg3[%c0_258, %c0_259] : memref<1x128xf32, #tpu.memory_space<vmem>>, vector<1x128xf32>
    %155 = vector.broadcast %154 : vector<1x128xf32> to vector<128x128xf32>
    %156 = arith.mulf %153, %155 : vector<128x128xf32>
    %c0_260 = arith.constant 0 : index
    %c0_261 = arith.constant 0 : index
    %157 = vector.load %arg4[%c0_260, %c0_261] : memref<1x128xf32, #tpu.memory_space<vmem>>, vector<1x128xf32>
    %158 = vector.broadcast %157 : vector<1x128xf32> to vector<128x128xf32>
    %159 = arith.addf %156, %158 : vector<128x128xf32>
    %cst_262 = arith.constant 0.000000e+00 : f32
    %160 = vector.broadcast %cst_262 : f32 to vector<128x128xf32>
    %161 = arith.maximumf %159, %160 : vector<128x128xf32>
    %162 = vector.extract_strided_slice %161 {offsets = [0, 0], sizes = [32, 128], strides = [1, 1]} : vector<128x128xf32> to vector<32x128xf32>
    %163 = vector.extract_strided_slice %161 {offsets = [32, 0], sizes = [32, 128], strides = [1, 1]} : vector<128x128xf32> to vector<32x128xf32>
    %164 = arith.maximumf %162, %163 : vector<32x128xf32>
    %165 = vector.extract_strided_slice %161 {offsets = [64, 0], sizes = [32, 128], strides = [1, 1]} : vector<128x128xf32> to vector<32x128xf32>
    %166 = vector.extract_strided_slice %161 {offsets = [96, 0], sizes = [32, 128], strides = [1, 1]} : vector<128x128xf32> to vector<32x128xf32>
    %167 = arith.maximumf %165, %166 : vector<32x128xf32>
    %168 = arith.maximumf %164, %167 : vector<32x128xf32>
    %c0_263 = arith.constant 0 : index
    %c0_264 = arith.constant 0 : index
    %169 = vector.load %arg5[%c0_263, %c0_264] : memref<32x128xf32, #tpu.memory_space<vmem>>, vector<32x128xf32>
    tpu.vector_store %arg5[%c0_263, %c0_264], %168 {strides = array<i32>} : memref<32x128xf32, #tpu.memory_space<vmem>>, vector<32x128xf32>,
    return
  }
  func.func @transform_0(%arg0: i32) -> (i32, i32, i32, i32, i32, i32) {
    %c0_i32 = arith.constant 0 : i32
    %c0_i32_0 = arith.constant 0 : i32
    %c0_i32_1 = arith.constant 0 : i32
    %c0_i32_2 = arith.constant 0 : i32
    %c0_i32_3 = arith.constant 0 : i32
    %c0_i32_4 = arith.constant 0 : i32
    return %arg0, %c0_i32, %c0_i32_0, %c0_i32_1, %c0_i32_2, %c0_i32_3 : i32, i32, i32, i32, i32, i32
  }
  func.func @transform_1(%arg0: i32) -> (i32, i32, i32, i32) {
    %c0_i32 = arith.constant 0 : i32
    %c0_i32_0 = arith.constant 0 : i32
    %c0_i32_1 = arith.constant 0 : i32
    %c0_i32_2 = arith.constant 0 : i32
    %c0_i32_3 = arith.constant 0 : i32
    return %c0_i32, %c0_i32_0, %c0_i32_1, %c0_i32_2 : i32, i32, i32, i32
  }
  func.func @transform_2(%arg0: i32) -> (i32, i32) {
    %c0_i32 = arith.constant 0 : i32
    %c0_i32_0 = arith.constant 0 : i32
    %c0_i32_1 = arith.constant 0 : i32
    return %c0_i32, %c0_i32_0 : i32, i32
  }
  func.func @transform_3(%arg0: i32) -> (i32, i32) {
    %c0_i32 = arith.constant 0 : i32
    %c0_i32_0 = arith.constant 0 : i32
    %c0_i32_1 = arith.constant 0 : i32
    return %c0_i32, %c0_i32_0 : i32, i32
  }
  func.func @transform_4(%arg0: i32) -> (i32, i32) {
    %c0_i32 = arith.constant 0 : i32
    %c0_i32_0 = arith.constant 0 : i32
    return %arg0, %c0_i32 : i32, i32
  }
}

</mosaic_0001>

<bundles_post_ra>
// kernel: conv_block_forward.2
= control target key start
LH: loop header
LB: loop body
LE: loop exit
PB: predicated region body
PF: predicated region fallthrough
CT: control target
= control target key end

     0   :  { %s2660_s9 = smov 0   ;;  %s3118_s0 = inlined_call_operand.vmem [shape: bf16[4,2,2,5,9,4], index: 0, kind: input, shape index: {}]   ;;  %s3119_s1 = inlined_call_operand.vmem [shape: bf16[3,3,4,128], index: 1, kind: input, shape index: {}]   ;;  %s3120_s2 = inlined_call_operand.vmem [shape: f32[2,128], index: 2, kind: output, shape index: {}]  }
   0x1 LB: > { %s2666_s10 = sadd.s32 4294967295, %s2642_s9   ;;  %p2030_p0 = scmp.ge.s32.totalorder %s2642_s9, 1  ;;  %s2642_s9 = sphi %s2660_s9, %s12_s9  }
   0x2   : > { %p107_p1 = scmp.lt.s32.totalorder %s2642_s9, 5 }
   0x4   : > { %p108_p2 = pnand %p2030_p0, %p107_p1 }
   0x5   : > { %v2060_v0 = vld [vmem:[%s3119_s1 + $0x2] sm:$0x3] (!%p108_p2)  ;;  %vm352_vm0 = vcmask (!%p108_p2), 1041408   ;;  %v2676_v1 = vld [vmem:[%s3119_s1 + $0x8] sm:$0x3] (!%p108_p2)  ;;  %p124_p3 = scmp.lt.s32.totalorder (!%p108_p2), %s2666_s10, 3 }
   0x6   : > { %111 = sbr.rel (%p108_p2) target bundleno = 416 (0x1a0), region = 28  ;;  %2600 = vmatprep.subr.msk.bf16.mxu1 (!%p108_p2), %vm352_vm0, %v2060_v0  ;;  %2604 = vmatprep.subr.msk.bf16.mxu0 (!%p108_p2), %vm352_vm0, %v2676_v1  ;;  %v354_v2 = vsel (!%p108_p2), %vm352_vm0, %v2060_v0, 0  ;;  %v2685_v3 = vsel (!%p108_p2), %vm352_vm0, %v2676_v1, 0  ;;  %v189_v4 = vld [vmem:[%s3119_s1] sm:$0x3] (!%p108_p2)  ;;  %vm327_vm1 = vcmask (!%p108_p2), 31744  }
   0x7   : > { %2309 = vmatpush3.bf16.msra.mxu1 (!%p108_p2), %v354_v2  ;;  %2381 = vmatpush3.bf16.msra.mxu0 (!%p108_p2), %v2685_v3  ;;  %v2156_v5 = vld [vmem:[%s3119_s1 + $0xa] sm:$0x3] (!%p108_p2)  ;;  %v466_v6 = vsel (!%p108_p2), %vm352_vm0, %v189_v4, 0  ;;  %vm194_vm2 = vsmask.f32 (!%p108_p2), 3328  ;;  %p2224_p4 = scmp.ne.s32.totalorder (!%p108_p2), %s2666_s10, 0 }
   0x8   : > { %2601 = vmatprep.subr.msk.bf16.mxu1 (!%p108_p2), %vm352_vm0, %v189_v4  ;;  %2606 = vmatprep.subr.msk.bf16.mxu0 (!%p108_p2), %vm352_vm0, %v2156_v5  ;;  %v1268_v7 = vsel (!%p108_p2), %vm352_vm0, %v2156_v5, 0  ;;  %vm195_vm3 = vsmask.f32 (!%p108_p2), 7440  ;;  %v2713_v10 = vld [vmem:[%s3119_s1 + $0x4] sm:$0x3] (!%p108_p2) }
   0x9   : > { %v2723_v12 = vld [vmem:[%s3119_s1 + $0xc] sm:$0x3] (!%p108_p2)  ;;  %vm2767_vm4 = vmor (!%p108_p2), %vm194_vm2, %vm195_vm3 }
   0xd   : > { %s125_s17 = scalar_select %p124_p3, %s2666_s10, 3 }
   0xf   : > { %s2610_s20 = smul.u32 160, %s125_s17 }
  0x11   : > { %s2700_s23 = scalar_lea.vmem %s3118_s0, %s2610_s20 }
  0x12   : > { %v2705_v8 = vld [vmem:[%s2700_s23 + $0x28] ss:$8 sps:$4 sm:$0xff]   ;;  %v2708_v9 = vld [vmem:[%s2700_s23 + $0x78] ss:$8 sps:$4 sm:$0xff]   ;;  %v190_v16 = vld [vmem:[%s2700_s23 + $0x4] sm:$0x1] }
  0x13   : > { %2310 = vmatprep.mubr.msk.bf16.mxu1 %vm327_vm1, %v2705_v8  ;;  %v2718_v11 = vld [vmem:[%s2700_s23 + $0x38] ss:$8 sps:$4 sm:$0xff]   ;;  %2382 = vmatprep.mubr.msk.bf16.mxu0 %vm327_vm1, %v2708_v9  ;;  %v2728_v13 = vld [vmem:[%s2700_s23 + $0x88] ss:$8 sps:$4 sm:$0xff]   ;;  %v191_v17 = vld [vmem:[%s2700_s23 + $0xc] sm:$0x1] }
  0x14   : > { %2311 = vmatmul.mubr.msk.bf16.vlgmr.msra.gmra.mrb[0].mxu1 %vm327_vm1, %v2718_v11  ;;  %v2733_v14 = vld [vmem:[%s2700_s23] sm:$0xf]  ;;  %v2736_v15 = vld [vmem:[%s2700_s23 + $0x8] sm:$0xf]  ;;  %2383 = vmatmul.mubr.msk.bf16.vlgmr.msra.gmra.mrb[0].mxu0 %vm327_vm1, %v2728_v13  ;;  %v207_v20 = vshll.u32 %v190_v16, 16  ;;  %v221_v23 = vshll.u32 %v191_v17, 16 }
  0x15   : > { %2327 = vmatpush3.bf16.msra.mxu1 %v466_v6  ;;  %v198_v18 = vshrl.u32 %v2733_v14, 16  ;;  %v201_v19 = vshll.u32 %v2733_v14, 16  ;;  %v212_v21 = vshrl.u32 %v2736_v15, 16  ;;  %2399 = vmatpush3.bf16.msra.mxu0 %v1268_v7  ;;  %v215_v22 = vshll.u32 %v2736_v15, 16  ;;  %v2747_v24 = vld [vmem:[%s2700_s23 + $0x50] sm:$0xf] }
  0x16   : > { %v2750_v25 = vld [vmem:[%s2700_s23 + $0x58] sm:$0xf]  ;;  %2602 = vmatprep.subr.msk.bf16.mxu1 %vm352_vm0, %v2713_v10  ;;  %v209_v28 = vrot.slane %v207_v20, 5  ;;  %v2052_v30 = vld [vmem:[%s2700_s23 + $0x54] sm:$0x1]  ;;  %2607 = vmatprep.subr.msk.bf16.mxu0 %vm352_vm0, %v2723_v12  ;;  %v223_v32 = vrot.slane %v221_v23, 5 }
  0x17   : > { %v200_v26 = vrot.slane %v198_v18, 4  ;;  %v203_v27 = vrot.slane %v201_v19, 5  ;;  %v214_v29 = vrot.slane %v212_v21, 4  ;;  %v217_v31 = vrot.slane %v215_v22, 5  ;;  %v2053_v33 = vld [vmem:[%s2700_s23 + $0x5c] sm:$0x1] }
  0x18   : > { %v258_v34 = vshrl.u32 %v2747_v24, 16  ;;  %v261_v35 = vshll.u32 %v2747_v24, 16  ;;  %v267_v37 = vshll.u32 %v2052_v30, 16  ;;  %v272_v38 = vshrl.u32 %v2750_v25, 16  ;;  %v2763_v40 = vld [vmem:[%s2700_s23 + $0x10] sm:$0xf] }
  0x19   : > { %v204_v36 = vor.u32 %v203_v27, %v200_v26  ;;  %v275_v39 = vshll.u32 %v2750_v25, 16  ;;  %v218_v42 = vor.u32 %v217_v31, %v214_v29  ;;  %v281_v45 = vshll.u32 %v2053_v33, 16  ;;  %v2772_v46 = vld [vmem:[%s2700_s23 + $0x18] sm:$0xf]  ;;  %v192_v51 = vld [vmem:[%s2700_s23 + $0x14] sm:$0x1] }
  0x1a   : > { %v260_v43 = vrot.slane %v258_v34, 4  ;;  %v263_v44 = vrot.slane %v261_v35, 5  ;;  %v269_v48 = vrot.slane %v267_v37, 5  ;;  %v274_v49 = vrot.slane %v272_v38, 4  ;;  %v193_v58 = vld [vmem:[%s2700_s23 + $0x1c] sm:$0x1] }
  0x1b   : > { %v205_v47 = vrot.slane %v204_v36, 4  ;;  %v277_v50 = vrot.slane %v275_v39, 5  ;;  %v219_v52 = vrot.slane %v218_v42, 4  ;;  %v283_v54 = vrot.slane %v281_v45, 5  ;;  %v2784_v2 = vld [vmem:[%s2700_s23 + $0x60] sm:$0xf] }
  0x1c   : > { %v264_v53 = vor.u32 %v263_v44, %v260_v43  ;;  %v226_v55 = vshrl.u32 %v2763_v40, 16  ;;  %v229_v59 = vshll.u32 %v2763_v40, 16  ;;  %v235_v60 = vshll.u32 %v192_v51, 16  ;;  %v2054_v16 = vld [vmem:[%s2700_s23 + $0x64] sm:$0x1] }
  0x1d   : > { %v210_v56 = vsel %vm2767_vm4, %v205_v47, %v209_v28  ;;  %v278_v57 = vor.u32 %v277_v50, %v274_v49  ;;  %v224_v61 = vsel %vm2767_vm4, %v219_v52, %v223_v32  ;;  %v240_v0 = vshrl.u32 %v2772_v46, 16  ;;  %v2793_v21 = vld [vmem:[%s2700_s23 + $0x68] sm:$0xf]  ;;  %v2055_v26 = vld [vmem:[%s2700_s23 + $0x6c] sm:$0x1] }
  0x1e   : > { %v265_v62 = vrot.slane %v264_v53, 4  ;;  %v228_v63 = vrot.slane %v226_v55, 4  ;;  %v2786_v4 = vcombine.low %v210_v56, %v224_v61  ;;  %v231_v6 = vrot.slane %v229_v59, 5  ;;  %v2085_v33 = vld [vmem:[%s2700_s23 + $0x78] sm:$0xf] }
  0x1f   : > { %v279_v5 = vrot.slane %v278_v57, 4  ;;  %v237_v7 = vrot.slane %v235_v60, 5  ;;  %v242_v18 = vrot.slane %v240_v0, 4  ;;  %v243_v19 = vshll.u32 %v2772_v46, 16  ;;  %v2086_v38 = vld [vmem:[%s2700_s23 + $0x7c] sm:$0x1] }
  0x20   : > { %v270_v17 = vsel %vm2767_vm4, %v265_v62, %v269_v48  ;;  %v249_v20 = vshll.u32 %v193_v58, 16  ;;  %2314 = vmatprep.mubr.msk.bf16.mxu1 %vm327_vm1, %v2786_v4  ;;  %v232_v23 = vor.u32 %v231_v6, %v228_v63  ;;  %v286_v27 = vshrl.u32 %v2784_v2, 16  ;;  %v2087_v45 = vld [vmem:[%s2700_s23 + $0x80] sm:$0xf]  ;;  %v2089_v60 = vld [vmem:[%s2700_s23 + $0x88] sm:$0xf] }
  0x21   : > { %v284_v22 = vsel %vm2767_vm4, %v279_v5, %v283_v54  ;;  %v289_v28 = vshll.u32 %v2784_v2, 16  ;;  %v245_v30 = vrot.slane %v243_v19, 5  ;;  %v295_v32 = vshll.u32 %v2054_v16, 16  ;;  %v2088_v54 = vld [vmem:[%s2700_s23 + $0x84] sm:$0x1] }
  0x22   : > { %v2802_v29 = vcombine.low %v270_v17, %v284_v22  ;;  %v251_v31 = vrot.slane %v249_v20, 5  ;;  %v233_v34 = vrot.slane %v232_v23, 4  ;;  %v288_v35 = vrot.slane %v286_v27, 4  ;;  %v2090_v5 = vld [vmem:[%s2700_s23 + $0x8c] sm:$0x1] }
  0x23   : > { %v291_v36 = vrot.slane %v289_v28, 5  ;;  %v300_v37 = vshrl.u32 %v2793_v21, 16  ;;  %v246_v39 = vor.u32 %v245_v30, %v242_v18  ;;  %v297_v42 = vrot.slane %v295_v32, 5  ;;  %v2091_v6 = vld [vmem:[%s2700_s23 + $0x90] sm:$0xf] }
  0x24   : > { %2386 = vmatprep.mubr.msk.bf16.mxu0 %vm327_vm1, %v2802_v29  ;;  %v303_v43 = vshll.u32 %v2793_v21, 16  ;;  %v309_v44 = vshll.u32 %v2055_v26, 16  ;;  %v238_v47 = vsel %vm2767_vm4, %v233_v34, %v237_v7  ;;  %v638_v50 = vshrl.u32 %v2085_v33, 16 }
  0x25   : > { %v292_v48 = vor.u32 %v291_v36, %v288_v35  ;;  %v302_v49 = vrot.slane %v300_v37, 4  ;;  %v247_v51 = vrot.slane %v246_v39, 4  ;;  %v641_v55 = vshll.u32 %v2085_v33, 16  ;;  %v2092_v35 = vld [vmem:[%s2700_s23 + $0x94] sm:$0x1] }
  0x26   : > { %v305_v52 = vrot.slane %v303_v43, 5  ;;  %v311_v53 = vrot.slane %v309_v44, 5  ;;  %v640_v57 = vrot.slane %v638_v50, 4  ;;  %v647_v58 = vshll.u32 %v2086_v38, 16  ;;  %v2127_v36 = vld [vmem:[%s2700_s23 + $0x8] sm:$0xf] }
  0x27   : > { %v293_v56 = vrot.slane %v292_v48, 4  ;;  %v652_v59 = vshrl.u32 %v2087_v45, 16  ;;  %v252_v61 = vsel %vm2767_vm4, %v247_v51, %v251_v31  ;;  %v643_v63 = vrot.slane %v641_v55, 5  ;;  %v2129_v43 = vld [vmem:[%s2700_s23 + $0x10] sm:$0xf] }
  0x28   : > { %v306_v62 = vor.u32 %v305_v52, %v302_v49  ;;  %v655_v0 = vshll.u32 %v2087_v45, 16  ;;  %v2819_v7 = vcombine.low %v238_v47, %v252_v61  ;;  %v649_v17 = vrot.slane %v647_v58, 5  ;;  %v2128_v49 = vld [vmem:[%s2700_s23 + $0xc] sm:$0x1]  ;;  %v2131_v58 = vld [vmem:[%s2700_s23 + $0x18] sm:$0xf] }
  0x29   : > { %v298_v16 = vsel %vm2767_vm4, %v293_v56, %v297_v42  ;;  %v654_v18 = vrot.slane %v652_v59, 4  ;;  %v644_v20 = vor.u32 %v643_v63, %v640_v57  ;;  %v661_v23 = vshll.u32 %v2088_v54, 16  ;;  %v2130_v56 = vld [vmem:[%s2700_s23 + $0x14] sm:$0x1]  ;;  %v2132_v63 = vld [vmem:[%s2700_s23 + $0x1c] sm:$0x1] }
  0x2a   : > { %v307_v19 = vrot.slane %v306_v62, 4  ;;  %v657_v22 = vrot.slane %v655_v0, 5  ;;  %2315 = vmatmul.mubr.msk.bf16.gmra.mrb[4].mxu1 %vm327_vm1, %v2819_v7  ;;  %v666_v26 = vshrl.u32 %v2089_v60, 16  ;;  %v669_v27 = vshll.u32 %v2089_v60, 16 }
  0x2b   : > { %v675_v28 = vshll.u32 %v2090_v5, 16  ;;  %v680_v30 = vshrl.u32 %v2091_v6, 16  ;;  %2318 = vmatprep.mubr.msk.bf16.mxu1 %vm327_vm1, %v2708_v9  ;;  %v645_v32 = vrot.slane %v644_v20, 4  ;;  %v663_v34 = vrot.slane %v661_v23, 5 }
  0x2c   : > { %v312_v31 = vsel %vm2767_vm4, %v307_v19, %v311_v53  ;;  %v658_v33 = vor.u32 %v657_v22, %v654_v18  ;;  %v1428_v38 = vsel %vm352_vm0, %v2723_v12, 0  ;;  %v668_v39 = vrot.slane %v666_v26, 4 }
  0x2d   : > { %v2831_v37 = vcombine.low %v298_v16, %v312_v31  ;;  %v671_v42 = vrot.slane %v669_v27, 5  ;;  %v677_v45 = vrot.slane %v675_v28, 5  ;;  %v682_v47 = vrot.slane %v680_v30, 4  ;;  %v2146_v30 = vld [vmem:[%s2700_s23 + $0x30] sm:$0xf] }
  0x2e   : > { %v659_v44 = vrot.slane %v658_v33, 4  ;;  %v683_v48 = vshll.u32 %v2091_v6, 16  ;;  %v689_v51 = vshll.u32 %v2092_v35, 16  ;;  %v1004_v52 = vshrl.u32 %v2127_v36, 16  ;;  %v2866_v31 = vld [vmem:[%s3119_s1 + $0xe] sm:$0x3] }
  0x2f   : > { %2387 = vmatmul.mubr.msk.bf16.gmra.mrb[4].mxu0 %vm327_vm1, %v2831_v37  ;;  %v672_v50 = vor.u32 %v671_v42, %v668_v39  ;;  %v1007_v53 = vshll.u32 %v2127_v36, 16  ;;  %v650_v12 = vsel %vm2767_vm4, %v645_v32, %v649_v17  ;;  %v1018_v57 = vshrl.u32 %v2129_v43, 16  ;;  %v2133_v17 = vld [vmem:[%s2700_s23 + $0x20] sm:$0xf]  ;;  %v2147_v36 = vld [vmem:[%s2700_s23 + $0x34] sm:$0x1] }
  0x30   : > { %2400 = vmatprep.mubr.msk.bf16.mxu0 %vm327_vm1, %v2802_v29  ;;  %v664_v54 = vsel %vm2767_vm4, %v659_v44, %v663_v34  ;;  %v685_v55 = vrot.slane %v683_v48, 5  ;;  %v1006_v60 = vrot.slane %v1004_v52, 4  ;;  %v1013_v61 = vshll.u32 %v2128_v49, 16 }
  0x31   : > { %v673_v59 = vrot.slane %v672_v50, 4  ;;  %v2849_v62 = vsel %vm352_vm0, %v2713_v10, 0  ;;  %v691_v5 = vrot.slane %v689_v51, 5  ;;  %v1009_v6 = vrot.slane %v1007_v53, 5  ;;  %v2134_v10 = vld [vmem:[%s2700_s23 + $0x24] sm:$0x1] }
  0x32   : > { %v686_v0 = vor.u32 %v685_v55, %v682_v47  ;;  %v1020_v16 = vrot.slane %v1018_v57, 4  ;;  %2319 = vmatmul.mubr.msk.bf16.gmra.mrb[8].mxu1 %vm327_vm1, %v2728_v13  ;;  %v2855_v18 = vcombine.low %v650_v12, %v664_v54  ;;  %v1021_v20 = vshll.u32 %v2129_v43, 16  ;;  %v2148_v50 = vld [vmem:[%s2700_s23 + $0x38] sm:$0xf]  ;;  %v2149_v54 = vld [vmem:[%s2700_s23 + $0x3c] sm:$0x1] }
  0x33   : > { %v678_v19 = vsel %vm2767_vm4, %v673_v59, %v677_v45  ;;  %v1027_v22 = vshll.u32 %v2130_v56, 16  ;;  %2322 = vmatprep.mubr.msk.bf16.mxu1 %vm327_vm1, %v2802_v29  ;;  %v1010_v26 = vor.u32 %v1009_v6, %v1006_v60  ;;  %v1032_v27 = vshrl.u32 %v2131_v58, 16  ;;  %v2150_v55 = vld [vmem:[%s2700_s23 + $0x40] sm:$0xf]  ;;  %v2151_v6 = vld [vmem:[%s2700_s23 + $0x44] sm:$0x1] }
  0x34   : > { %v687_v23 = vrot.slane %v686_v0, 4  ;;  %v1035_v28 = vshll.u32 %v2131_v58, 16  ;;  %v1015_v32 = vrot.slane %v1013_v61, 5  ;;  %v1023_v33 = vrot.slane %v1021_v20, 5 }
  0x35   : > { %v1041_v34 = vshll.u32 %v2132_v63, 16  ;;  %v1046_v35 = vshrl.u32 %v2133_v17, 16  ;;  %v1011_v42 = vrot.slane %v1010_v26, 4  ;;  %v1034_v43 = vrot.slane %v1032_v27, 4  ;;  %v2153_v27 = vld [vmem:[%s2700_s23 + $0x4c] sm:$0x1] }
  0x36   : > { %v692_v39 = vsel %vm2767_vm4, %v687_v23, %v691_v5  ;;  %v1037_v44 = vrot.slane %v1035_v28, 5  ;;  %v2044_v47 = vcombine.low %v2733_v14, %v2736_v15  ;;  %v1024_v48 = vor.u32 %v1023_v33, %v1020_v16  ;;  %v2152_v16 = vld [vmem:[%s2700_s23 + $0x48] sm:$0xf] }
  0x37   : > { %2401 = vmatmul.mubr.msk.bf16.vlgmr.msra.gmra.mrb[0].mxu0 %vm327_vm1, %v2831_v37  ;;  %v2873_v45 = vcombine.low %v678_v19, %v692_v39  ;;  %v1029_v49 = vrot.slane %v1027_v22, 5  ;;  %v1048_v52 = vrot.slane %v1046_v35, 4  ;;  %v1049_v53 = vshll.u32 %v2133_v17, 16 }
  0x38   : > { %2417 = vmatpush3.bf16.msra.mxu0 %v1428_v38  ;;  %2404 = vmatprep.mubr.msk.bf16.mxu0 %vm327_vm1, %v2855_v18  ;;  %v1038_v51 = vor.u32 %v1037_v44, %v1034_v43  ;;  %v1055_v12 = vshll.u32 %v2134_v10, 16  ;;  %v1016_v56 = vsel %vm2767_vm4, %v1011_v42, %v1015_v32  ;;  %v1025_v57 = vrot.slane %v1024_v48, 4 }
  0x39   : > { %v1198_v14 = vshrl.u32 %v2146_v30, 16  ;;  %v1201_v15 = vshll.u32 %v2146_v30, 16  ;;  %2608 = vmatprep.subr.msk.bf16.mxu0 %vm352_vm0, %v2866_v31  ;;  %v1043_v38 = vrot.slane %v1041_v34, 5  ;;  %v1051_v58 = vrot.slane %v1049_v53, 5  ;;  %v2909_v53 = vld [vmem:[%s3119_s1 + $0x6] sm:$0x3] }
  0x3a   : > { %v1207_v59 = vshll.u32 %v2147_v36, 16  ;;  %v1212_v60 = vshrl.u32 %v2148_v50, 16  ;;  %2323 = vmatmul.mubr.msk.bf16.gmra.mrb[12].mxu1 %vm327_vm1, %v2831_v37  ;;  %v1030_v61 = vsel %vm2767_vm4, %v1025_v57, %v1029_v49  ;;  %v1039_v63 = vrot.slane %v1038_v51, 4 }
  0x3b   : > { %v1200_v0 = vrot.slane %v1198_v14, 4  ;;  %v1203_v5 = vrot.slane %v1201_v15, 5  ;;  %2328 = vmatprep.mubr.msk.bf16.mxu1 %vm327_vm1, %v2044_v47  ;;  %v2893_v17 = vcombine.low %v1016_v56, %v1030_v61  ;;  %v1052_v19 = vor.u32 %v1051_v58, %v1048_v52 }
  0x3c   : > { %v1057_v20 = vrot.slane %v1055_v12, 5  ;;  %v1214_v22 = vrot.slane %v1212_v60, 4  ;;  %v1215_v23 = vshll.u32 %v2148_v50, 16  ;;  %v1221_v26 = vshll.u32 %v2149_v54, 16 }
  0x3d   : > { %v1204_v10 = vor.u32 %v1203_v5, %v1200_v0  ;;  %v1226_v28 = vshrl.u32 %v2150_v55, 16  ;;  %v2045_v30 = vcombine.low %v2763_v40, %v2772_v46  ;;  %v1053_v32 = vrot.slane %v1052_v19, 4  ;;  %v2079_v0 = vld [vmem:[%s2700_s23 + $0x30] sm:$0xf] }
  0x3e   : > { %v1229_v33 = vshll.u32 %v2150_v55, 16  ;;  %v1240_v34 = vshrl.u32 %v2152_v16, 16  ;;  %v1209_v36 = vrot.slane %v1207_v59, 5  ;;  %v1217_v39 = vrot.slane %v1215_v23, 5 }
  0x3f   : > { %2405 = vmatmul.mubr.msk.bf16.gmra.mrb[4].mxu0 %vm327_vm1, %v2873_v45  ;;  %v1205_v35 = vrot.slane %v1204_v10, 4  ;;  %v1228_v42 = vrot.slane %v1226_v28, 4  ;;  %v1044_v43 = vsel %vm2767_vm4, %v1039_v63, %v1043_v38  ;;  %v1058_v44 = vsel %vm2767_vm4, %v1053_v32, %v1057_v20  ;;  %v2077_v63 = vld [vmem:[%s2700_s23 + $0x28] sm:$0xf]  ;;  %v2078_v28 = vld [vmem:[%s2700_s23 + $0x2c] sm:$0x1] }
  0x40   : > { %2408 = vmatprep.mubr.msk.bf16.mxu0 %vm327_vm1, %v2893_v17  ;;  %v1231_v40 = vrot.slane %v1229_v33, 5  ;;  %v1235_v46 = vshll.u32 %v2151_v6, 16  ;;  %v1218_v47 = vor.u32 %v1217_v39, %v1214_v22  ;;  %v1223_v48 = vrot.slane %v1221_v26, 5  ;;  %v2946_v6 = vld [vmem:[%s2700_s23 + $0x8] ss:$8 sps:$4 sm:$0xff]  }
  0x41   : > { %v1242_v49 = vrot.slane %v1240_v34, 4  ;;  %v1243_v50 = vshll.u32 %v2152_v16, 16  ;;  %v1249_v52 = vshll.u32 %v2153_v27, 16  ;;  %v2912_v12 = vcombine.low %v1044_v43, %v1058_v44  ;;  %v2081_v26 = vld [vmem:[%s2700_s23 + $0x38] sm:$0xf] }
  0x42   : > { %v1232_v51 = vor.u32 %v1231_v40, %v1228_v42  ;;  %2329 = vmatmul.mubr.msk.bf16.vlgmr.msra.gmra.mrb[0].mxu1 %vm327_vm1, %v2045_v30  ;;  %v1210_v54 = vsel %vm2767_vm4, %v1205_v35, %v1209_v36  ;;  %v1219_v55 = vrot.slane %v1218_v47, 4  ;;  %v1237_v14 = vrot.slane %v1235_v46, 5  ;;  %v2083_v27 = vld [vmem:[%s2700_s23 + $0x40] sm:$0xf]  ;;  %v2080_v30 = vld [vmem:[%s2700_s23 + $0x34] sm:$0x1] }
  0x43   : > { %v1245_v56 = vrot.slane %v1243_v50, 5  ;;  %2345 = vmatpush3.bf16.msra.mxu1 %v2849_v62  ;;  %2332 = vmatprep.mubr.msk.bf16.mxu1 %vm327_vm1, %v2705_v8  ;;  %v1251_v58 = vrot.slane %v1249_v52, 5  ;;  %v2933_v60 = vcombine.low %v2747_v24, %v2750_v25  ;;  %v574_v24 = vshrl.u32 %v2077_v63, 16  ;;  %v2963_v32 = vld [vmem:[%s2700_s23 + $0x18] ss:$8 sps:$4 sm:$0xff]  }
  0x44   : > { %v1233_v57 = vrot.slane %v1232_v51, 4  ;;  %v1224_v15 = vsel %vm2767_vm4, %v1219_v55, %v1223_v48  ;;  %2603 = vmatprep.subr.msk.bf16.mxu1 %vm352_vm0, %v2909_v53  ;;  %v577_v25 = vshll.u32 %v2077_v63, 16  ;;  %v588_v16 = vshrl.u32 %v2079_v0, 16  ;;  %v2215_v40 = vld [vmem:[%s3119_s1 + $0x10] sm:$0x3] }
  0x45   : > { %v1246_v38 = vor.u32 %v1245_v56, %v1242_v49  ;;  %v2923_v59 = vcombine.low %v1210_v54, %v1224_v15  ;;  %v591_v19 = vshll.u32 %v2079_v0, 16  ;;  %v576_v20 = vrot.slane %v574_v24, 4  ;;  %v2084_v55 = vld [vmem:[%s2700_s23 + $0x44] sm:$0x1]  ;;  %v2985_v56 = vld [vmem:[%s2700_s23 + $0x40] ss:$8 sps:$4 sm:$0xff]  }
  0x46   : > { %v1238_v8 = vsel %vm2767_vm4, %v1233_v57, %v1237_v14  ;;  %v579_v22 = vrot.slane %v577_v25, 5  ;;  %v590_v10 = vrot.slane %v588_v16, 4  ;;  %v602_v33 = vshrl.u32 %v2081_v26, 16  ;;  %v2632_v14 = vld [vmem:[%s2700_s23 + $0x58] ss:$8 sps:$4 sm:$0xff]  }
  0x47   : > { %2409 = vmatmul.mubr.msk.bf16.gmra.mrb[8].mxu0 %vm327_vm1, %v2912_v12  ;;  %v1247_v62 = vrot.slane %v1246_v38, 4  ;;  %v593_v23 = vrot.slane %v591_v19, 5  ;;  %v605_v34 = vshll.u32 %v2081_v26, 16  ;;  %v616_v35 = vshrl.u32 %v2083_v27, 16  ;;  %v2633_v16 = vld [vmem:[%s2700_s23 + $0x68] ss:$8 sps:$4 sm:$0xff]  }
  0x48   : > { %2412 = vmatprep.mubr.msk.bf16.mxu0 %vm327_vm1, %v2923_v59  ;;  %v619_v36 = vshll.u32 %v2083_v27, 16  ;;  %v580_v39 = vor.u32 %v579_v22, %v576_v20  ;;  %v583_v42 = vshll.u32 %v2078_v28, 16  ;;  %v597_v44 = vshll.u32 %v2080_v30, 16  ;;  %v2634_v19 = vld [vmem:[%s2700_s23 + $0x80] ss:$8 sps:$4 sm:$0xff]  }
  0x49   : > { %v1252_v61 = vsel %vm2767_vm4, %v1247_v62, %v1251_v58  ;;  %v594_v43 = vor.u32 %v593_v23, %v590_v10  ;;  %v604_v46 = vrot.slane %v602_v33, 4  ;;  %v607_v47 = vrot.slane %v605_v34, 5  ;;  %v2186_v10 = vld [vmem:[%s2700_s23 + $0x58] sm:$0xf]  ;;  %v2188_v23 = vld [vmem:[%s2700_s23 + $0x60] sm:$0xf] }
  0x4a   : > { %2333 = vmatmul.mubr.msk.bf16.gmra.mrb[4].mxu1 %vm327_vm1, %v2718_v11  ;;  %v2941_v5 = vcombine.low %v1238_v8, %v1252_v61  ;;  %v2952_v11 = vcombine.low %v2784_v2, %v2793_v21  ;;  %v1622_v2 = vsel %vm352_vm0, %v2866_v31, 0  ;;  %v2970_v21 = vld [vmem:[%s2700_s23 + $0x30] ss:$8 sps:$4 sm:$0xff]   ;;  %v2082_v31 = vld [vmem:[%s2700_s23 + $0x3c] sm:$0x1]  ;;  %v618_v48 = vrot.slane %v616_v35, 4 }
  0x4b   : > { %2336 = vmatprep.mubr.msk.bf16.mxu1 %vm327_vm1, %v2933_v60  ;;  %v621_v49 = vrot.slane %v619_v36, 5  ;;  %v581_v50 = vrot.slane %v580_v39, 4  ;;  %v585_v51 = vrot.slane %v583_v42, 5  ;;  %v595_v52 = vrot.slane %v594_v43, 4  ;;  %v2192_v36 = vld [vmem:[%s2700_s23 + $0x70] sm:$0xf] }
  0x4c   : > { %v599_v54 = vrot.slane %v597_v44, 5  ;;  %v611_v57 = vshll.u32 %v2082_v31, 16  ;;  %v608_v15 = vor.u32 %v607_v47, %v604_v46  ;;  %v625_v58 = vshll.u32 %v2084_v55, 16  ;;  %v2187_v39 = vld [vmem:[%s2700_s23 + $0x5c] sm:$0x1] }
  0x4d   : > { %v622_v38 = vor.u32 %v621_v49, %v618_v48  ;;  %v586_v62 = vsel %vm2767_vm4, %v581_v50, %v585_v51  ;;  %v880_v25 = vsel %vm352_vm0, %v2909_v53, 0  ;;  %v1555_v26 = vshll.u32 %v2186_v10, 16  ;;  %v2189_v42 = vld [vmem:[%s2700_s23 + $0x64] sm:$0x1]  ;;  %v2191_v48 = vld [vmem:[%s2700_s23 + $0x6c] sm:$0x1] }
  0x4e   : > { %v600_v8 = vsel %vm2767_vm4, %v595_v52, %v599_v54  ;;  %v613_v61 = vrot.slane %v611_v57, 5  ;;  %v627_v24 = vrot.slane %v625_v58, 5  ;;  %v1566_v27 = vshrl.u32 %v2188_v23, 16 }
  0x4f   : > { %2413 = vmatmul.mubr.msk.bf16.gmra.mrb[12].mxu0 %vm327_vm1, %v2941_v5  ;;  %v2093_v63 = vcombine.low %v586_v62, %v600_v8  ;;  %v623_v0 = vrot.slane %v622_v38, 4  ;;  %v1569_v28 = vshll.u32 %v2188_v23, 16  ;;  %v1816_v30 = vsel %vm352_vm0, %v2215_v40, 0 }
  0x50   : > { %2418 = vmatprep.mubr.msk.bf16.mxu0 %vm327_vm1, %v2946_v6  ;;  %v1557_v33 = vrot.slane %v1555_v26, 5  ;;  %v1568_v34 = vrot.slane %v1566_v27, 4  ;;  %v1594_v44 = vshrl.u32 %v2192_v36, 16  ;;  %v1561_v31 = vshll.u32 %v2187_v39, 16  ;;  %v2206_v26 = vld [vmem:[%s2700_s23 + $0x84] sm:$0x1] }
  0x51   : > { %v628_v22 = vsel %vm2767_vm4, %v623_v0, %v627_v24  ;;  %v1571_v35 = vrot.slane %v1569_v28, 5  ;;  %v1575_v47 = vshll.u32 %v2189_v42, 16  ;;  %v1589_v38 = vshll.u32 %v2191_v48, 16  ;;  %v2208_v27 = vld [vmem:[%s2700_s23 + $0x8c] sm:$0x1] }
  0x52   : > { %2337 = vmatmul.mubr.msk.bf16.gmra.mrb[8].mxu1 %vm327_vm1, %v2952_v11  ;;  %v1596_v51 = vrot.slane %v1594_v44, 4  ;;  %v1563_v55 = vrot.slane %v1561_v31, 5  ;;  %v2212_v31 = vld [vmem:[%s2700_s23 + $0x9c] sm:$0x1] }
  0x53   : > { %2340 = vmatprep.mubr.msk.bf16.mxu1 %vm327_vm1, %v2708_v9  ;;  %v1572_v46 = vor.u32 %v1571_v35, %v1568_v34  ;;  %v1769_v35 = vshll.u32 %v2208_v27, 16 }
  0x55   : > { %v1573_v57 = vrot.slane %v1572_v46, 4 }
  0x57   : > { %2419 = vmatmul.mubr.msk.bf16.vlgmr.msra.gmra.mrb[0].mxu0 %vm327_vm1, %v2963_v32 }
  0x58   : > { %2435 = vmatpush3.bf16.msra.mxu0 %v1622_v2  ;;  %2422 = vmatprep.mubr.msk.bf16.mxu0 %vm327_vm1, %v2970_v21 }
  0x59   : > { %2609 = vmatprep.subr.msk.bf16.mxu0 %vm352_vm0, %v2215_v40 }
  0x5a   : > { %2341 = vmatmul.mubr.msk.bf16.gmra.mrb[12].mxu1 %vm327_vm1, %v2728_v13 }
  0x5b   : > { %2346 = vmatprep.mubr.msk.bf16.mxu1 %vm327_vm1, %v2786_v4  ;;  %v609_v4 = vrot.slane %v608_v15, 4  ;;  %v2193_v15 = vld [vmem:[%s2700_s23 + $0x74] sm:$0x1] }
  0x5c   : > { %v1603_v62 = vshll.u32 %v2193_v15, 16 }
  0x5d   : > { %v614_v20 = vsel %vm2767_vm4, %v609_v4, %v613_v61  ;;  %v1591_v61 = vrot.slane %v1589_v38, 5 }
  0x5e   : > { %v2094_v53 = vcombine.low %v614_v20, %v628_v22  ;;  %v1605_v24 = vrot.slane %v1603_v62, 5 }
  0x5f   : > { %2423 = vmatmul.mubr.msk.bf16.gmra.mrb[4].mxu0 %vm327_vm1, %v2985_v56 }
  0x60   : > { %2426 = vmatprep.mubr.msk.bf16.mxu0 %vm327_vm1, %v2632_v14  ;;  %v1577_v14 = vrot.slane %v1575_v47, 5 }
  0x62   : > { %2347 = vmatmul.mubr.msk.bf16.vlgmr.msra.gmra.mrb[0].mxu1 %vm327_vm1, %v2819_v7  ;;  %v2635_v7 = vld [vmem:[%s2700_s23 + $0x90] ss:$8 sps:$4 sm:$0xff]   ;;  %v1578_v8 = vsel %vm2767_vm4, %v1573_v57, %v1577_v14 }
  0x63   : > { %2363 = vmatpush3.bf16.msra.mxu1 %v880_v25  ;;  %2350 = vmatprep.mubr.msk.bf16.mxu1 %vm327_vm1, %v2093_v63 }
  0x64   : > { %2605 = vmatprep.subr.msk.bf16.mxu1 %vm352_vm0, %v2676_v1  ;;  %v1552_v1 = vshrl.u32 %v2186_v10, 16 }
  0x66   : > { %v1554_v2 = vrot.slane %v1552_v1, 4  ;;  %v2211_v1 = vld [vmem:[%s2700_s23 + $0x98] sm:$0xf] }
  0x67   : > { %2427 = vmatmul.mubr.msk.bf16.gmra.mrb[8].mxu0 %vm327_vm1, %v2633_v16  ;;  %v2207_v16 = vld [vmem:[%s2700_s23 + $0x88] sm:$0xf] }
  0x68   : > { %2430 = vmatprep.mubr.msk.bf16.mxu0 %vm327_vm1, %v2634_v19  ;;  %v1558_v40 = vor.u32 %v1557_v33, %v1554_v2  ;;  %v1760_v22 = vshrl.u32 %v2207_v16, 16  ;;  %v1755_v33 = vshll.u32 %v2206_v26, 16 }
  0x6a   : > { %2351 = vmatmul.mubr.msk.bf16.gmra.mrb[4].mxu1 %vm327_vm1, %v2094_v53  ;;  %v1559_v54 = vrot.slane %v1558_v40, 4  ;;  %v1763_v53 = vshll.u32 %v2207_v16, 16  ;;  %v1762_v10 = vrot.slane %v1760_v22, 4  ;;  %v1757_v44 = vrot.slane %v1755_v33, 5 }
  0x6b   : > { %2354 = vmatprep.mubr.msk.bf16.mxu1 %vm327_vm1, %v2802_v29  ;;  %v2190_v29 = vld [vmem:[%s2700_s23 + $0x68] sm:$0xf]  ;;  %v1771_v40 = vrot.slane %v1769_v35, 5 }
  0x6c   : > { %v1583_v43 = vshll.u32 %v2190_v29, 16  ;;  %v1765_v23 = vrot.slane %v1763_v53, 5 }
  0x6e   : > { %v1585_v50 = vrot.slane %v1583_v43, 5  ;;  %v1766_v34 = vor.u32 %v1765_v23, %v1762_v10 }
  0x6f   : > { %2431 = vmatmul.mubr.msk.bf16.gmra.mrb[12].mxu0 %vm327_vm1, %v2635_v7 }
  0x70   : > { %2436 = vmatprep.mubr.msk.bf16.mxu0 %vm327_vm1, %v2970_v21 }
  0x72   : > { %2355 = vmatmul.mubr.msk.bf16.gmra.mrb[8].mxu1 %vm327_vm1, %v2831_v37  ;;  %v1580_v37 = vshrl.u32 %v2190_v29, 16  ;;  %v1791_v29 = vshll.u32 %v2211_v1, 16 }
  0x73   : > { %2358 = vmatprep.mubr.msk.bf16.mxu1 %vm327_vm1, %v2855_v18  ;;  %v1597_v18 = vshll.u32 %v2192_v36, 16  ;;  %v2210_v36 = vld [vmem:[%s2700_s23 + $0x94] sm:$0x1] }
  0x74   : > { %v1582_v49 = vrot.slane %v1580_v37, 4  ;;  %v1783_v46 = vshll.u32 %v2210_v36, 16 }
  0x75   : > { %v1599_v52 = vrot.slane %v1597_v18, 5  ;;  %v1767_v18 = vrot.slane %v1766_v34, 4 }
  0x77   : > { %2437 = vmatmul.mubr.msk.bf16.vlgmr.msra.gmra.mrb[0].mxu0 %vm327_vm1, %v2985_v56  ;;  %v1600_v58 = vor.u32 %v1599_v52, %v1596_v51  ;;  %v1785_v51 = vrot.slane %v1783_v46, 5 }
  0x78   : > { %2453 = vmatpush3.bf16.msra.mxu0 %v1816_v30  ;;  %2440 = vmatprep.mubr.msk.bf16.mxu0 %vm327_vm1, %v2893_v17  ;;  %v1788_v30 = vshrl.u32 %v2211_v1, 16 }
  0x79   : > { %v1601_v0 = vrot.slane %v1600_v58, 4 }
  0x7a   : > { %2359 = vmatmul.mubr.msk.bf16.gmra.mrb[12].mxu1 %vm327_vm1, %v2873_v45  ;;  %v1586_v45 = vor.u32 %v1585_v50, %v1582_v49  ;;  %v1790_v37 = vrot.slane %v1788_v30, 4  ;;  %v1797_v49 = vshll.u32 %v2212_v31, 16  ;;  %v1772_v50 = vsel %vm2767_vm4, %v1767_v18, %v1771_v40 }
  0x7b   : > { %2364 = vmatprep.mubr.msk.bf16.mxu1 %vm327_vm1, %v2933_v60  ;;  %v1564_v60 = vsel %vm2767_vm4, %v1559_v54, %v1563_v55 }
  0x7c   : > { %v2194_v63 = vcombine.low %v1564_v60, %v1578_v8  ;;  %v1587_v4 = vrot.slane %v1586_v45, 4  ;;  %v1799_v55 = vrot.slane %v1797_v49, 5 }
  0x7e   : > { %v1592_v25 = vsel %vm2767_vm4, %v1587_v4, %v1591_v61 }
  0x7f   : > { %2441 = vmatmul.mubr.msk.bf16.gmra.mrb[4].mxu0 %vm327_vm1, %v2912_v12 }
  0x80   : > { %2444 = vmatprep.mubr.msk.bf16.mxu0 %vm327_vm1, %v2634_v19 }
  0x82   : > { %2365 = vmatmul.mubr.msk.bf16.vlgmr.msra.gmra.mrb[0].mxu1 %vm327_vm1, %v2952_v11  ;;  %v1606_v11 = vsel %vm2767_vm4, %v1601_v0, %v1605_v24 }
  0x83   : > { %2471 = vmatpush3.bf16.msra.mxu1 %v2685_v3  ;;  %2368 = vmatprep.mubr.msk.bf16.mxu1 %vm327_vm1, %v2708_v9  ;;  %v2195_v3 = vcombine.low %v1592_v25, %v1606_v11  ;;  %v2205_v9 = vld [vmem:[%s2700_s23 + $0x80] sm:$0xf] }
  0x84   : > { %v1746_v19 = vshrl.u32 %v2205_v9, 16  ;;  %v1749_v20 = vshll.u32 %v2205_v9, 16 }
  0x87   : > { %2445 = vmatmul.mubr.msk.bf16.gmra.mrb[8].mxu0 %vm327_vm1, %v2635_v7  ;;  %v1751_v7 = vrot.slane %v1749_v20, 5 }
  0x88   : > { %2448 = vmatprep.mubr.msk.bf16.mxu0 %vm327_vm1, %v2194_v63 }
  0x8a   : > { %2369 = vmatmul.mubr.msk.bf16.gmra.mrb[4].mxu1 %vm327_vm1, %v2728_v13  ;;  %v2209_v13 = vld [vmem:[%s2700_s23 + $0x90] sm:$0xf] }
  0x8b   : > { %2372 = vmatprep.mubr.msk.bf16.mxu1 %vm327_vm1, %v2946_v6  ;;  %v1748_v6 = vrot.slane %v1746_v19, 4  ;;  %v1774_v28 = vshrl.u32 %v2209_v13, 16 }
  0x8d   : > { %v1752_v2 = vor.u32 %v1751_v7, %v1748_v6  ;;  %v1776_v39 = vrot.slane %v1774_v28, 4 }
  0x8f   : > { %2449 = vmatmul.mubr.msk.bf16.gmra.mrb[12].mxu0 %vm327_vm1, %v2195_v3  ;;  %v1753_v43 = vrot.slane %v1752_v2, 4 }
  0x90   : > { %2454 = vmatprep.mubr.msk.bf16.mxu0 %vm327_vm1, %v2893_v17 }
  0x92   : > { %2373 = vmatmul.mubr.msk.bf16.gmra.mrb[8].mxu1 %vm327_vm1, %v2963_v32  ;;  %v1777_v32 = vshll.u32 %v2209_v13, 16 }
  0x93   : > { %2376 = vmatprep.mubr.msk.bf16.mxu1 %vm327_vm1, %v2970_v21 }
  0x94   : > { %v1779_v42 = vrot.slane %v1777_v32, 5 }
  0x96   : > { %v1780_v47 = vor.u32 %v1779_v42, %v1776_v39 }
  0x97   : > { %2455 = vmatmul.mubr.msk.bf16.vlgmr.msra.gmra.mrb[0].mxu0 %vm327_vm1, %v2912_v12 }
  0x98   : > { %2458 = vmatprep.mubr.msk.bf16.mxu0 %vm327_vm1, %v2923_v59  ;;  %v1793_v59 = vrot.slane %v1791_v29, 5  ;;  %v1781_v52 = vrot.slane %v1780_v47, 4 }
  0x9a   : > { %2377 = vmatmul.mubr.msk.bf16.gmra.mrb[12].mxu1 %vm327_vm1, %v2985_v56  ;;  %v1794_v48 = vor.u32 %v1793_v59, %v1790_v37  ;;  %v1786_v57 = vsel %vm2767_vm4, %v1781_v52, %v1785_v51 }
  0x9b   : > { %2390 = vmatprep.mubr.msk.bf16.mxu1 %vm327_vm1, %v2970_v21  ;;  %v1758_v21 = vsel %vm2767_vm4, %v1753_v43, %v1757_v44 }
  0x9c   : > { %v1795_v54 = vrot.slane %v1794_v48, 4 }
  0x9e   : > { %v1800_v14 = vsel %vm2767_vm4, %v1795_v54, %v1799_v55 }
  0x9f   : > { %2459 = vmatmul.mubr.msk.bf16.gmra.mrb[4].mxu0 %vm327_vm1, %v2941_v5  ;;  %v2213_v5 = vcombine.low %v1758_v21, %v1772_v50 }
  0xa0   : > { %2462 = vmatprep.mubr.msk.bf16.mxu0 %vm327_vm1, %v2194_v63 }
  0xa2   : > { %2391 = vmatmul.mubr.msk.bf16.vlgmr.msra.gmra.mrb[8].mxu1 %vm327_vm1, %v2985_v56  ;;  %v2214_v56 = vcombine.low %v1786_v57, %v1800_v14 }
  0xa3   : > { %2394 = vmatprep.mubr.msk.bf16.mxu1 %vm327_vm1, %v2893_v17 }
  0xa7   : > { %2463 = vmatmul.mubr.msk.bf16.gmra.mrb[8].mxu0 %vm327_vm1, %v2195_v3 }
  0xa8   : > { %2466 = vmatprep.mubr.msk.bf16.mxu0 %vm327_vm1, %v2213_v5 }
  0xaa   : > { %2395 = vmatmul.mubr.msk.bf16.gmra.mrb[12].mxu1 %vm327_vm1, %v2912_v12 }
  0xaf   : > { %2467 = vmatmul.mubr.msk.bf16.gmra.mrb[12].mxu0 %vm327_vm1, %v2214_v56 }
 0x155   : > { %v2366_v17 = vpop.f32.mrb[0].mxu1 }
 0x156   : > { %v916_v15 = vpop.f32.mrb[1].mxu1 }
 0x157   : > { %v2367_v38 = vpop.f32.mrb[2].mxu1 }
 0x158   : > { %v919_v45 = vpop.f32.mrb[3].mxu1 }
 0x15d   : > { %v2370_v58 = vpop.f32.mrb[4].mxu1 }
 0x15e   : > { %v932_v62 = vpop.f32.mrb[5].mxu1 }
 0x15f   : > { %v2371_v60 = vpop.f32.mrb[6].mxu1 }
 0x160   : > { %v935_v8 = vpop.f32.mrb[7].mxu1 }
 0x16a   : > { %v2456_v61 = vpop.f32.mrb[0].mxu0 }
 0x16b   : > { %v2472_v63 = vadd.f32 %v2456_v61, %v2366_v17  ;;  %v1852_v4 = vpop.f32.mrb[1].mxu0 }
 0x16c   : > { %v2473_v0 = vadd.f32 %v1852_v4, %v916_v15  ;;  %v2457_v41 = vpop.f32.mrb[2].mxu0 }
 0x16d   : > { %v2474_v24 = vadd.f32 %v2457_v41, %v2367_v38  ;;  %v1855_v25 = vpop.f32.mrb[3].mxu0  ;;  %v1954_v16 = vmul.f32 %v2472_v63, %v2472_v63 }
 0x16e   : > { %v2475_v11 = vadd.f32 %v1855_v25, %v919_v45  ;;  %v1952_v12 = vmul.f32 %v2473_v0, %v2473_v0 }
 0x16f   : > { %v1955_v6 = vmul.f32 %v2474_v24, %v2474_v24 }
 0x170   : > { %v1931_v3 = vadd.f32 %v2475_v11, %v2473_v0  ;;  %v1953_v9 = vmul.f32 %v2475_v11, %v2475_v11 }
 0x172   : > { %v1932_v19 = vadd.f32 %v2472_v63, %v1931_v3  ;;  %v1968_v20 = vadd.f32 %v1953_v9, %v1952_v12  ;;  %v2460_v22 = vpop.f32.mrb[4].mxu0 }
 0x173   : > { %v2476_v53 = vadd.f32 %v2460_v22, %v2370_v58  ;;  %v1868_v13 = vpop.f32.mrb[5].mxu0 }
 0x174   : > { %v1969_v7 = vadd.f32 %v1968_v20, %v1954_v16  ;;  %v2477_v10 = vadd.f32 %v1868_v13, %v932_v62  ;;  %v1933_v23 = vadd.f32 %v2474_v24, %v1932_v19  ;;  %v2461_v1 = vpop.f32.mrb[6].mxu0 }
 0x175   : > { %v2478_v26 = vadd.f32 %v2461_v1, %v2371_v60  ;;  %v1871_v27 = vpop.f32.mrb[7].mxu0  ;;  %v2392_v2 = vpop.f32.mrb[8].mxu1  ;;  %v1958_v37 = vmul.f32 %v2476_v53, %v2476_v53 }
 0x176   : > { %v1934_v28 = vadd.f32 %v2477_v10, %v1933_v23  ;;  %v1956_v32 = vmul.f32 %v2477_v10, %v2477_v10  ;;  %v1970_v30 = vadd.f32 %v1969_v7, %v1955_v6  ;;  %v2479_v29 = vadd.f32 %v1871_v27, %v935_v8  ;;  %v1142_v33 = vpop.f32.mrb[9].mxu1 }
 0x177   : > { %v2393_v39 = vpop.f32.mrb[10].mxu1  ;;  %v1959_v31 = vmul.f32 %v2478_v26, %v2478_v26 }
 0x178   : > { %v1971_v34 = vadd.f32 %v1970_v30, %v1956_v32  ;;  %v1935_v35 = vadd.f32 %v2479_v29, %v1934_v28  ;;  %v1957_v36 = vmul.f32 %v2479_v29, %v2479_v29  ;;  %v1145_v42 = vpop.f32.mrb[11].mxu1 }
 0x17a   : > { %v1936_v59 = vadd.f32 %v2476_v53, %v1935_v35  ;;  %v1972_v43 = vadd.f32 %v1971_v34, %v1957_v36  ;;  %v2464_v44 = vpop.f32.mrb[8].mxu0 }
 0x17b   : > { %v2480_v18 = vadd.f32 %v2464_v44, %v2392_v2  ;;  %v1884_v40 = vpop.f32.mrb[9].mxu0 }
 0x17c   : > { %v1973_v46 = vadd.f32 %v1972_v43, %v1958_v37  ;;  %v2481_v47 = vadd.f32 %v1884_v40, %v1142_v33  ;;  %v1937_v48 = vadd.f32 %v2478_v26, %v1936_v59  ;;  %v2465_v49 = vpop.f32.mrb[10].mxu0 }
 0x17d   : > { %v2482_v21 = vadd.f32 %v2465_v49, %v2393_v39  ;;  %v1887_v50 = vpop.f32.mrb[11].mxu0  ;;  %v2396_v55 = vpop.f32.mrb[12].mxu1  ;;  %v1962_v45 = vmul.f32 %v2480_v18, %v2480_v18 }
 0x17e   : > { %v1938_v51 = vadd.f32 %v2481_v47, %v1937_v48  ;;  %v1960_v5 = vmul.f32 %v2481_v47, %v2481_v47  ;;  %v1974_v52 = vadd.f32 %v1973_v46, %v1959_v31  ;;  %v2483_v54 = vadd.f32 %v1887_v50, %v1145_v42  ;;  %v1158_v57 = vpop.f32.mrb[13].mxu1 }
 0x17f   : > { %v2397_v15 = vpop.f32.mrb[14].mxu1  ;;  %v1963_v63 = vmul.f32 %v2482_v21, %v2482_v21  ;;  %v2644_v42 = vmov (!%p2224_p4), 0.0  }
 0x180   : > { %v1975_v14 = vadd.f32 %v1974_v52, %v1960_v5  ;;  %v1939_v56 = vadd.f32 %v2483_v54, %v1938_v51  ;;  %v1961_v17 = vmul.f32 %v2483_v54, %v2483_v54  ;;  %v1161_v38 = vpop.f32.mrb[15].mxu1  ;;  %1993 = vst [vmem:[%s3120_s2] sm:$0x3] (!%p2224_p4), %v2644_v42 }
 0x182   : > { %v1940_v58 = vadd.f32 %v2480_v18, %v1939_v56  ;;  %v1976_v62 = vadd.f32 %v1975_v14, %v1961_v17  ;;  %v2468_v60 = vpop.f32.mrb[12].mxu0 }
 0x183   : > { %v2484_v8 = vadd.f32 %v2468_v60, %v2396_v55  ;;  %v1900_v61 = vpop.f32.mrb[13].mxu0 }
 0x184   : > { %v1977_v4 = vadd.f32 %v1976_v62, %v1962_v45  ;;  %v2485_v0 = vadd.f32 %v1900_v61, %v1158_v57  ;;  %v1941_v41 = vadd.f32 %v2482_v21, %v1940_v58  ;;  %v2469_v24 = vpop.f32.mrb[14].mxu0 }
 0x185   : > { %v2486_v25 = vadd.f32 %v2469_v24, %v2397_v15  ;;  %v1903_v11 = vpop.f32.mrb[15].mxu0  ;;  %v1966_v53 = vmul.f32 %v2484_v8, %v2484_v8 }
 0x186   : > { %v1942_v12 = vadd.f32 %v2485_v0, %v1941_v41  ;;  %v1964_v3 = vmul.f32 %v2485_v0, %v2485_v0  ;;  %v1978_v9 = vadd.f32 %v1977_v4, %v1963_v63  ;;  %v2487_v16 = vadd.f32 %v1903_v11, %v1161_v38 }
 0x187   : > { %v1967_v7 = vmul.f32 %v2486_v25, %v2486_v25 }
 0x188   : > { %v1979_v19 = vadd.f32 %v1978_v9, %v1964_v3  ;;  %v1943_v20 = vadd.f32 %v2487_v16, %v1942_v12  ;;  %v1965_v22 = vmul.f32 %v2487_v16, %v2487_v16 }
 0x18a   : > { %v1944_v13 = vadd.f32 %v2484_v8, %v1943_v20  ;;  %v1980_v6 = vadd.f32 %v1979_v19, %v1965_v22 }
 0x18c   : > { %v1945_v10 = vadd.f32 %v2486_v25, %v1944_v13  ;;  %v1981_v23 = vadd.f32 %v1980_v6, %v1966_v53 }
 0x18e   : > { %v1946_v1 = vrot.slane %v1945_v10, 4  ;;  %v1982_v26 = vadd.f32 %v1981_v23, %v1967_v7 }
 0x190   : > { %v1947_v27 = vadd.f32 %v1946_v1, %v1945_v10  ;;  %v1983_v28 = vrot.slane %v1982_v26, 4 }
 0x192   : > { %v1948_v32 = vrot.slane %v1947_v27, 2  ;;  %v1984_v30 = vadd.f32 %v1983_v28, %v1982_v26 }
 0x194   : > { %v1949_v29 = vadd.f32 %v1948_v32, %v1947_v27  ;;  %v1985_v2 = vrot.slane %v1984_v30, 2  ;;  %1992 = sbr.rel (%p2224_p4) target bundleno = 411 (0x19b), region = 32 }
 0x196   : > { %v1950_v33 = vrot.slane %v1949_v29, 1  ;;  %v1986_v34 = vadd.f32 %v1985_v2, %v1984_v30 }
 0x198   : > { %v1951_v35 = vadd.f32 %v1950_v33, %v1949_v29  ;;  %v1987_v36 = vrot.slane %v1986_v34, 1 }
 0x19a   : > { %v1988_v39 = vadd.f32 %v1987_v36, %v1986_v34 }
 0x19b PF: > { %v1994_v37 = vld [vmem:[%s3120_s2] sm:$0x3]  ;;  %vm1995_vm5 = vcmask 1040384  }
 0x19c   : > { %v1996_v59 = vsel %vm1995_vm5, %v1951_v35, %v1988_v39 }
 0x19d   : > { %v1997_v43 = vadd.f32 %v1996_v59, %v1994_v37 }
 0x19f   : > { %1998 = vst [vmem:[%s3120_s2] sm:$0x3] %v1997_v43 }
 0x1a0 PF: > { %s12_s9 = sadd.s32 1, %s2642_s9  }
 0x1a1   : > { %p9_p5 = scmp.ge.s32.totalorder %s12_s9, 6  }
 0x1a3   :  { %11 = sbr.rel (!%p9_p5) target bundleno = 1 (0x1), region = 73 }

// kernel: conv_block_forward.3
= control target key start
LH: loop header
LB: loop body
LE: loop exit
PB: predicated region body
PF: predicated region fallthrough
CT: control target
= control target key end

     0   :  { %s2780_s15 = smov 0   ;;  %s3274_s0 = inlined_call_operand.vmem [shape: bf16[4,2,2,5,9,4], index: 0, kind: input, shape index: {}]   ;;  %s3275_s1 = inlined_call_operand.vmem [shape: bf16[3,3,4,128], index: 1, kind: input, shape index: {}]   ;;  %s3276_s2 = inlined_call_operand.vmem [shape: f32[1,128], index: 2, kind: input, shape index: {}]   ;;  %s3277_s3 = inlined_call_operand.vmem [shape: f32[1,128], index: 3, kind: input, shape index: {}]   ;;  %s3278_s4 = inlined_call_operand.vmem [shape: f32[128,128], index: 4, kind: output, shape index: {}]  }
   0x1 LB: > { %s2786_s16 = sadd.s32 4294967295, %s2753_s15   ;;  %p2139_p0 = scmp.ge.s32.totalorder %s2753_s15, 1  ;;  %s2753_s15 = sphi %s2780_s15, %s14_s15  }
   0x2   : > { %p162_p1 = scmp.lt.s32.totalorder %s2753_s15, 5 }
   0x4   : > { %p163_p2 = pnand %p2139_p0, %p162_p1 }
   0x5   : > { %v2171_v0 = vld [vmem:[%s3275_s1 + $0x2] sm:$0x3] (!%p163_p2)  ;;  %vm422_vm0 = vcmask (!%p163_p2), 1041408   ;;  %v2796_v1 = vld [vmem:[%s3275_s1 + $0x8] sm:$0x3] (!%p163_p2)  ;;  %p188_p3 = scmp.lt.s32.totalorder (!%p163_p2), %s2786_s16, 3 }
   0x6   : > { %166 = sbr.rel (%p163_p2) target bundleno = 403 (0x193), region = 36  ;;  %2712 = vmatprep.subr.msk.bf16.mxu1 (!%p163_p2), %vm422_vm0, %v2171_v0  ;;  %2716 = vmatprep.subr.msk.bf16.mxu0 (!%p163_p2), %vm422_vm0, %v2796_v1  ;;  %v424_v2 = vsel (!%p163_p2), %vm422_vm0, %v2171_v0, 0  ;;  %v2805_v3 = vsel (!%p163_p2), %vm422_vm0, %v2796_v1, 0  ;;  %v259_v4 = vld [vmem:[%s3275_s1] sm:$0x3] (!%p163_p2)  ;;  %vm397_vm1 = vcmask (!%p163_p2), 31744  }
   0x7   : > { %2421 = vmatpush3.bf16.msra.mxu1 (!%p163_p2), %v424_v2  ;;  %2493 = vmatpush3.bf16.msra.mxu0 (!%p163_p2), %v2805_v3  ;;  %v2267_v5 = vld [vmem:[%s3275_s1 + $0xa] sm:$0x3] (!%p163_p2)  ;;  %v536_v6 = vsel (!%p163_p2), %vm422_vm0, %v259_v4, 0  ;;  %vm264_vm2 = vsmask.f32 (!%p163_p2), 3328  ;;  %s2141_s20 = sshll.u32 (!%p163_p2), %s2786_s16, 2 }
   0x8   : > { %2713 = vmatprep.subr.msk.bf16.mxu1 (!%p163_p2), %vm422_vm0, %v259_v4  ;;  %2718 = vmatprep.subr.msk.bf16.mxu0 (!%p163_p2), %vm422_vm0, %v2267_v5  ;;  %v1338_v7 = vsel (!%p163_p2), %vm422_vm0, %v2267_v5, 0  ;;  %vm265_vm3 = vsmask.f32 (!%p163_p2), 7440  ;;  %v2833_v10 = vld [vmem:[%s3275_s1 + $0x4] sm:$0x3] (!%p163_p2)  ;;  %p194_p4 = scmp.lt.s32.totalorder (!%p163_p2), %s2141_s20, 15 }
   0x9   : > { %v2843_v12 = vld [vmem:[%s3275_s1 + $0xc] sm:$0x3] (!%p163_p2)  ;;  %vm2887_vm4 = vmor (!%p163_p2), %vm264_vm2, %vm265_vm3 }
   0xd   : > { %s189_s23 = scalar_select %p188_p3, %s2786_s16, 3 }
   0xe   : > { %s3282_s20 = smov (!%p194_p4, %s2141_s20), 15 }
   0xf   : > { %s2722_s26 = smul.u32 160, %s189_s23  ;;  %s2142_s16 = sshll.u32 %s3282_s20, 3 }
  0x10   : > { %s197_s23 = scalar_lea.vmem %s3278_s4, %s2142_s16 }
  0x11   : > { %s2820_s29 = scalar_lea.vmem %s3274_s0, %s2722_s26 }
  0x12   : > { %v2825_v8 = vld [vmem:[%s2820_s29 + $0x28] ss:$8 sps:$4 sm:$0xff]   ;;  %v2828_v9 = vld [vmem:[%s2820_s29 + $0x78] ss:$8 sps:$4 sm:$0xff]   ;;  %v260_v16 = vld [vmem:[%s2820_s29 + $0x4] sm:$0x1] }
  0x13   : > { %2422 = vmatprep.mubr.msk.bf16.mxu1 %vm397_vm1, %v2825_v8  ;;  %v2838_v11 = vld [vmem:[%s2820_s29 + $0x38] ss:$8 sps:$4 sm:$0xff]   ;;  %2494 = vmatprep.mubr.msk.bf16.mxu0 %vm397_vm1, %v2828_v9  ;;  %v2848_v13 = vld [vmem:[%s2820_s29 + $0x88] ss:$8 sps:$4 sm:$0xff]   ;;  %v261_v17 = vld [vmem:[%s2820_s29 + $0xc] sm:$0x1] }
  0x14   : > { %2423 = vmatmul.mubr.msk.bf16.vlgmr.msra.gmra.mrb[0].mxu1 %vm397_vm1, %v2838_v11  ;;  %v2853_v14 = vld [vmem:[%s2820_s29] sm:$0xf]  ;;  %v2856_v15 = vld [vmem:[%s2820_s29 + $0x8] sm:$0xf]  ;;  %2495 = vmatmul.mubr.msk.bf16.vlgmr.msra.gmra.mrb[0].mxu0 %vm397_vm1, %v2848_v13  ;;  %v277_v20 = vshll.u32 %v260_v16, 16  ;;  %v291_v23 = vshll.u32 %v261_v17, 16 }
  0x15   : > { %2439 = vmatpush3.bf16.msra.mxu1 %v536_v6  ;;  %v268_v18 = vshrl.u32 %v2853_v14, 16  ;;  %v271_v19 = vshll.u32 %v2853_v14, 16  ;;  %v282_v21 = vshrl.u32 %v2856_v15, 16  ;;  %2511 = vmatpush3.bf16.msra.mxu0 %v1338_v7  ;;  %v285_v22 = vshll.u32 %v2856_v15, 16  ;;  %v2867_v24 = vld [vmem:[%s2820_s29 + $0x50] sm:$0xf] }
  0x16   : > { %v2870_v25 = vld [vmem:[%s2820_s29 + $0x58] sm:$0xf]  ;;  %2714 = vmatprep.subr.msk.bf16.mxu1 %vm422_vm0, %v2833_v10  ;;  %v279_v28 = vrot.slane %v277_v20, 5  ;;  %v2163_v30 = vld [vmem:[%s2820_s29 + $0x54] sm:$0x1]  ;;  %2719 = vmatprep.subr.msk.bf16.mxu0 %vm422_vm0, %v2843_v12  ;;  %v293_v32 = vrot.slane %v291_v23, 5 }
  0x17   : > { %v270_v26 = vrot.slane %v268_v18, 4  ;;  %v273_v27 = vrot.slane %v271_v19, 5  ;;  %v284_v29 = vrot.slane %v282_v21, 4  ;;  %v287_v31 = vrot.slane %v285_v22, 5  ;;  %v2164_v33 = vld [vmem:[%s2820_s29 + $0x5c] sm:$0x1] }
  0x18   : > { %v328_v34 = vshrl.u32 %v2867_v24, 16  ;;  %v331_v35 = vshll.u32 %v2867_v24, 16  ;;  %v337_v37 = vshll.u32 %v2163_v30, 16  ;;  %v342_v38 = vshrl.u32 %v2870_v25, 16  ;;  %v2883_v40 = vld [vmem:[%s2820_s29 + $0x10] sm:$0xf] }
  0x19   : > { %v274_v36 = vor.u32 %v273_v27, %v270_v26  ;;  %v345_v39 = vshll.u32 %v2870_v25, 16  ;;  %v288_v42 = vor.u32 %v287_v31, %v284_v29  ;;  %v351_v45 = vshll.u32 %v2164_v33, 16  ;;  %v2892_v46 = vld [vmem:[%s2820_s29 + $0x18] sm:$0xf]  ;;  %v262_v51 = vld [vmem:[%s2820_s29 + $0x14] sm:$0x1] }
  0x1a   : > { %v330_v43 = vrot.slane %v328_v34, 4  ;;  %v333_v44 = vrot.slane %v331_v35, 5  ;;  %v339_v48 = vrot.slane %v337_v37, 5  ;;  %v344_v49 = vrot.slane %v342_v38, 4  ;;  %v263_v58 = vld [vmem:[%s2820_s29 + $0x1c] sm:$0x1] }
  0x1b   : > { %v275_v47 = vrot.slane %v274_v36, 4  ;;  %v347_v50 = vrot.slane %v345_v39, 5  ;;  %v289_v52 = vrot.slane %v288_v42, 4  ;;  %v353_v54 = vrot.slane %v351_v45, 5  ;;  %v2904_v2 = vld [vmem:[%s2820_s29 + $0x60] sm:$0xf] }
  0x1c   : > { %v334_v53 = vor.u32 %v333_v44, %v330_v43  ;;  %v296_v55 = vshrl.u32 %v2883_v40, 16  ;;  %v299_v59 = vshll.u32 %v2883_v40, 16  ;;  %v305_v60 = vshll.u32 %v262_v51, 16  ;;  %v2165_v16 = vld [vmem:[%s2820_s29 + $0x64] sm:$0x1] }
  0x1d   : > { %v280_v56 = vsel %vm2887_vm4, %v275_v47, %v279_v28  ;;  %v348_v57 = vor.u32 %v347_v50, %v344_v49  ;;  %v294_v61 = vsel %vm2887_vm4, %v289_v52, %v293_v32  ;;  %v310_v0 = vshrl.u32 %v2892_v46, 16  ;;  %v2913_v21 = vld [vmem:[%s2820_s29 + $0x68] sm:$0xf]  ;;  %v2166_v26 = vld [vmem:[%s2820_s29 + $0x6c] sm:$0x1] }
  0x1e   : > { %v335_v62 = vrot.slane %v334_v53, 4  ;;  %v298_v63 = vrot.slane %v296_v55, 4  ;;  %v2906_v4 = vcombine.low %v280_v56, %v294_v61  ;;  %v301_v6 = vrot.slane %v299_v59, 5  ;;  %v2196_v33 = vld [vmem:[%s2820_s29 + $0x78] sm:$0xf] }
  0x1f   : > { %v349_v5 = vrot.slane %v348_v57, 4  ;;  %v307_v7 = vrot.slane %v305_v60, 5  ;;  %v312_v18 = vrot.slane %v310_v0, 4  ;;  %v313_v19 = vshll.u32 %v2892_v46, 16  ;;  %v2197_v38 = vld [vmem:[%s2820_s29 + $0x7c] sm:$0x1] }
  0x20   : > { %v340_v17 = vsel %vm2887_vm4, %v335_v62, %v339_v48  ;;  %v319_v20 = vshll.u32 %v263_v58, 16  ;;  %2426 = vmatprep.mubr.msk.bf16.mxu1 %vm397_vm1, %v2906_v4  ;;  %v302_v23 = vor.u32 %v301_v6, %v298_v63  ;;  %v356_v27 = vshrl.u32 %v2904_v2, 16  ;;  %v2198_v45 = vld [vmem:[%s2820_s29 + $0x80] sm:$0xf]  ;;  %v2200_v60 = vld [vmem:[%s2820_s29 + $0x88] sm:$0xf] }
  0x21   : > { %v354_v22 = vsel %vm2887_vm4, %v349_v5, %v353_v54  ;;  %v359_v28 = vshll.u32 %v2904_v2, 16  ;;  %v315_v30 = vrot.slane %v313_v19, 5  ;;  %v365_v32 = vshll.u32 %v2165_v16, 16  ;;  %v2199_v54 = vld [vmem:[%s2820_s29 + $0x84] sm:$0x1] }
  0x22   : > { %v2922_v29 = vcombine.low %v340_v17, %v354_v22  ;;  %v321_v31 = vrot.slane %v319_v20, 5  ;;  %v303_v34 = vrot.slane %v302_v23, 4  ;;  %v358_v35 = vrot.slane %v356_v27, 4  ;;  %v2201_v5 = vld [vmem:[%s2820_s29 + $0x8c] sm:$0x1] }
  0x23   : > { %v361_v36 = vrot.slane %v359_v28, 5  ;;  %v370_v37 = vshrl.u32 %v2913_v21, 16  ;;  %v316_v39 = vor.u32 %v315_v30, %v312_v18  ;;  %v367_v42 = vrot.slane %v365_v32, 5  ;;  %v2202_v6 = vld [vmem:[%s2820_s29 + $0x90] sm:$0xf] }
  0x24   : > { %2498 = vmatprep.mubr.msk.bf16.mxu0 %vm397_vm1, %v2922_v29  ;;  %v373_v43 = vshll.u32 %v2913_v21, 16  ;;  %v379_v44 = vshll.u32 %v2166_v26, 16  ;;  %v308_v47 = vsel %vm2887_vm4, %v303_v34, %v307_v7  ;;  %v708_v50 = vshrl.u32 %v2196_v33, 16 }
  0x25   : > { %v362_v48 = vor.u32 %v361_v36, %v358_v35  ;;  %v372_v49 = vrot.slane %v370_v37, 4  ;;  %v317_v51 = vrot.slane %v316_v39, 4  ;;  %v711_v55 = vshll.u32 %v2196_v33, 16  ;;  %v2203_v35 = vld [vmem:[%s2820_s29 + $0x94] sm:$0x1] }
  0x26   : > { %v375_v52 = vrot.slane %v373_v43, 5  ;;  %v381_v53 = vrot.slane %v379_v44, 5  ;;  %v710_v57 = vrot.slane %v708_v50, 4  ;;  %v717_v58 = vshll.u32 %v2197_v38, 16  ;;  %v2238_v36 = vld [vmem:[%s2820_s29 + $0x8] sm:$0xf] }
  0x27   : > { %v363_v56 = vrot.slane %v362_v48, 4  ;;  %v722_v59 = vshrl.u32 %v2198_v45, 16  ;;  %v322_v61 = vsel %vm2887_vm4, %v317_v51, %v321_v31  ;;  %v713_v63 = vrot.slane %v711_v55, 5  ;;  %v2240_v43 = vld [vmem:[%s2820_s29 + $0x10] sm:$0xf] }
  0x28   : > { %v376_v62 = vor.u32 %v375_v52, %v372_v49  ;;  %v725_v0 = vshll.u32 %v2198_v45, 16  ;;  %v2939_v7 = vcombine.low %v308_v47, %v322_v61  ;;  %v719_v17 = vrot.slane %v717_v58, 5  ;;  %v2239_v49 = vld [vmem:[%s2820_s29 + $0xc] sm:$0x1]  ;;  %v2242_v58 = vld [vmem:[%s2820_s29 + $0x18] sm:$0xf] }
  0x29   : > { %v368_v16 = vsel %vm2887_vm4, %v363_v56, %v367_v42  ;;  %v724_v18 = vrot.slane %v722_v59, 4  ;;  %v714_v20 = vor.u32 %v713_v63, %v710_v57  ;;  %v731_v23 = vshll.u32 %v2199_v54, 16  ;;  %v2241_v56 = vld [vmem:[%s2820_s29 + $0x14] sm:$0x1]  ;;  %v2243_v63 = vld [vmem:[%s2820_s29 + $0x1c] sm:$0x1] }
  0x2a   : > { %v377_v19 = vrot.slane %v376_v62, 4  ;;  %v727_v22 = vrot.slane %v725_v0, 5  ;;  %2427 = vmatmul.mubr.msk.bf16.gmra.mrb[4].mxu1 %vm397_vm1, %v2939_v7  ;;  %v736_v26 = vshrl.u32 %v2200_v60, 16  ;;  %v739_v27 = vshll.u32 %v2200_v60, 16 }
  0x2b   : > { %v745_v28 = vshll.u32 %v2201_v5, 16  ;;  %v750_v30 = vshrl.u32 %v2202_v6, 16  ;;  %2430 = vmatprep.mubr.msk.bf16.mxu1 %vm397_vm1, %v2828_v9  ;;  %v715_v32 = vrot.slane %v714_v20, 4  ;;  %v733_v34 = vrot.slane %v731_v23, 5 }
  0x2c   : > { %v382_v31 = vsel %vm2887_vm4, %v377_v19, %v381_v53  ;;  %v728_v33 = vor.u32 %v727_v22, %v724_v18  ;;  %v1498_v38 = vsel %vm422_vm0, %v2843_v12, 0  ;;  %v738_v39 = vrot.slane %v736_v26, 4 }
  0x2d   : > { %v2951_v37 = vcombine.low %v368_v16, %v382_v31  ;;  %v741_v42 = vrot.slane %v739_v27, 5  ;;  %v747_v45 = vrot.slane %v745_v28, 5  ;;  %v752_v47 = vrot.slane %v750_v30, 4  ;;  %v2257_v30 = vld [vmem:[%s2820_s29 + $0x30] sm:$0xf] }
  0x2e   : > { %v729_v44 = vrot.slane %v728_v33, 4  ;;  %v753_v48 = vshll.u32 %v2202_v6, 16  ;;  %v759_v51 = vshll.u32 %v2203_v35, 16  ;;  %v1074_v52 = vshrl.u32 %v2238_v36, 16  ;;  %v2986_v31 = vld [vmem:[%s3275_s1 + $0xe] sm:$0x3] }
  0x2f   : > { %2499 = vmatmul.mubr.msk.bf16.gmra.mrb[4].mxu0 %vm397_vm1, %v2951_v37  ;;  %v742_v50 = vor.u32 %v741_v42, %v738_v39  ;;  %v1077_v53 = vshll.u32 %v2238_v36, 16  ;;  %v720_v12 = vsel %vm2887_vm4, %v715_v32, %v719_v17  ;;  %v1088_v57 = vshrl.u32 %v2240_v43, 16  ;;  %v2244_v17 = vld [vmem:[%s2820_s29 + $0x20] sm:$0xf]  ;;  %v2258_v36 = vld [vmem:[%s2820_s29 + $0x34] sm:$0x1] }
  0x30   : > { %2512 = vmatprep.mubr.msk.bf16.mxu0 %vm397_vm1, %v2922_v29  ;;  %v734_v54 = vsel %vm2887_vm4, %v729_v44, %v733_v34  ;;  %v755_v55 = vrot.slane %v753_v48, 5  ;;  %v1076_v60 = vrot.slane %v1074_v52, 4  ;;  %v1083_v61 = vshll.u32 %v2239_v49, 16 }
  0x31   : > { %v743_v59 = vrot.slane %v742_v50, 4  ;;  %v2969_v62 = vsel %vm422_vm0, %v2833_v10, 0  ;;  %v761_v5 = vrot.slane %v759_v51, 5  ;;  %v1079_v6 = vrot.slane %v1077_v53, 5  ;;  %v2245_v10 = vld [vmem:[%s2820_s29 + $0x24] sm:$0x1] }
  0x32   : > { %v756_v0 = vor.u32 %v755_v55, %v752_v47  ;;  %v1090_v16 = vrot.slane %v1088_v57, 4  ;;  %2431 = vmatmul.mubr.msk.bf16.gmra.mrb[8].mxu1 %vm397_vm1, %v2848_v13  ;;  %v2975_v18 = vcombine.low %v720_v12, %v734_v54  ;;  %v1091_v20 = vshll.u32 %v2240_v43, 16  ;;  %v2259_v50 = vld [vmem:[%s2820_s29 + $0x38] sm:$0xf]  ;;  %v2260_v54 = vld [vmem:[%s2820_s29 + $0x3c] sm:$0x1] }
  0x33   : > { %v748_v19 = vsel %vm2887_vm4, %v743_v59, %v747_v45  ;;  %v1097_v22 = vshll.u32 %v2241_v56, 16  ;;  %2434 = vmatprep.mubr.msk.bf16.mxu1 %vm397_vm1, %v2922_v29  ;;  %v1080_v26 = vor.u32 %v1079_v6, %v1076_v60  ;;  %v1102_v27 = vshrl.u32 %v2242_v58, 16  ;;  %v2261_v55 = vld [vmem:[%s2820_s29 + $0x40] sm:$0xf]  ;;  %v2262_v6 = vld [vmem:[%s2820_s29 + $0x44] sm:$0x1] }
  0x34   : > { %v757_v23 = vrot.slane %v756_v0, 4  ;;  %v1105_v28 = vshll.u32 %v2242_v58, 16  ;;  %v1085_v32 = vrot.slane %v1083_v61, 5  ;;  %v1093_v33 = vrot.slane %v1091_v20, 5 }
  0x35   : > { %v1111_v34 = vshll.u32 %v2243_v63, 16  ;;  %v1116_v35 = vshrl.u32 %v2244_v17, 16  ;;  %v1081_v42 = vrot.slane %v1080_v26, 4  ;;  %v1104_v43 = vrot.slane %v1102_v27, 4  ;;  %v2264_v27 = vld [vmem:[%s2820_s29 + $0x4c] sm:$0x1] }
  0x36   : > { %v762_v39 = vsel %vm2887_vm4, %v757_v23, %v761_v5  ;;  %v1107_v44 = vrot.slane %v1105_v28, 5  ;;  %v2155_v47 = vcombine.low %v2853_v14, %v2856_v15  ;;  %v1094_v48 = vor.u32 %v1093_v33, %v1090_v16  ;;  %v2263_v16 = vld [vmem:[%s2820_s29 + $0x48] sm:$0xf] }
  0x37   : > { %2513 = vmatmul.mubr.msk.bf16.vlgmr.msra.gmra.mrb[0].mxu0 %vm397_vm1, %v2951_v37  ;;  %v2993_v45 = vcombine.low %v748_v19, %v762_v39  ;;  %v1099_v49 = vrot.slane %v1097_v22, 5  ;;  %v1118_v52 = vrot.slane %v1116_v35, 4  ;;  %v1119_v53 = vshll.u32 %v2244_v17, 16 }
  0x38   : > { %2529 = vmatpush3.bf16.msra.mxu0 %v1498_v38  ;;  %2516 = vmatprep.mubr.msk.bf16.mxu0 %vm397_vm1, %v2975_v18  ;;  %v1108_v51 = vor.u32 %v1107_v44, %v1104_v43  ;;  %v1125_v12 = vshll.u32 %v2245_v10, 16  ;;  %v1086_v56 = vsel %vm2887_vm4, %v1081_v42, %v1085_v32  ;;  %v1095_v57 = vrot.slane %v1094_v48, 4 }
  0x39   : > { %v1268_v14 = vshrl.u32 %v2257_v30, 16  ;;  %v1271_v15 = vshll.u32 %v2257_v30, 16  ;;  %2720 = vmatprep.subr.msk.bf16.mxu0 %vm422_vm0, %v2986_v31  ;;  %v1113_v38 = vrot.slane %v1111_v34, 5  ;;  %v1121_v58 = vrot.slane %v1119_v53, 5  ;;  %v3029_v53 = vld [vmem:[%s3275_s1 + $0x6] sm:$0x3] }
  0x3a   : > { %v1277_v59 = vshll.u32 %v2258_v36, 16  ;;  %v1282_v60 = vshrl.u32 %v2259_v50, 16  ;;  %2435 = vmatmul.mubr.msk.bf16.gmra.mrb[12].mxu1 %vm397_vm1, %v2951_v37  ;;  %v1100_v61 = vsel %vm2887_vm4, %v1095_v57, %v1099_v49  ;;  %v1109_v63 = vrot.slane %v1108_v51, 4 }
  0x3b   : > { %v1270_v0 = vrot.slane %v1268_v14, 4  ;;  %v1273_v5 = vrot.slane %v1271_v15, 5  ;;  %2440 = vmatprep.mubr.msk.bf16.mxu1 %vm397_vm1, %v2155_v47  ;;  %v3013_v17 = vcombine.low %v1086_v56, %v1100_v61  ;;  %v1122_v19 = vor.u32 %v1121_v58, %v1118_v52 }
  0x3c   : > { %v1127_v20 = vrot.slane %v1125_v12, 5  ;;  %v1284_v22 = vrot.slane %v1282_v60, 4  ;;  %v1285_v23 = vshll.u32 %v2259_v50, 16  ;;  %v1291_v26 = vshll.u32 %v2260_v54, 16 }
  0x3d   : > { %v1274_v10 = vor.u32 %v1273_v5, %v1270_v0  ;;  %v1296_v28 = vshrl.u32 %v2261_v55, 16  ;;  %v2156_v30 = vcombine.low %v2883_v40, %v2892_v46  ;;  %v1123_v32 = vrot.slane %v1122_v19, 4  ;;  %v2190_v0 = vld [vmem:[%s2820_s29 + $0x30] sm:$0xf] }
  0x3e   : > { %v1299_v33 = vshll.u32 %v2261_v55, 16  ;;  %v1310_v34 = vshrl.u32 %v2263_v16, 16  ;;  %v1279_v36 = vrot.slane %v1277_v59, 5  ;;  %v1287_v39 = vrot.slane %v1285_v23, 5 }
  0x3f   : > { %2517 = vmatmul.mubr.msk.bf16.gmra.mrb[4].mxu0 %vm397_vm1, %v2993_v45  ;;  %v1275_v35 = vrot.slane %v1274_v10, 4  ;;  %v1298_v42 = vrot.slane %v1296_v28, 4  ;;  %v1114_v43 = vsel %vm2887_vm4, %v1109_v63, %v1113_v38  ;;  %v1128_v44 = vsel %vm2887_vm4, %v1123_v32, %v1127_v20  ;;  %v2188_v63 = vld [vmem:[%s2820_s29 + $0x28] sm:$0xf]  ;;  %v2189_v28 = vld [vmem:[%s2820_s29 + $0x2c] sm:$0x1] }
  0x40   : > { %2520 = vmatprep.mubr.msk.bf16.mxu0 %vm397_vm1, %v3013_v17  ;;  %v1301_v40 = vrot.slane %v1299_v33, 5  ;;  %v1305_v46 = vshll.u32 %v2262_v6, 16  ;;  %v1288_v47 = vor.u32 %v1287_v39, %v1284_v22  ;;  %v1293_v48 = vrot.slane %v1291_v26, 5  ;;  %v3066_v6 = vld [vmem:[%s2820_s29 + $0x8] ss:$8 sps:$4 sm:$0xff]  }
  0x41   : > { %v1312_v49 = vrot.slane %v1310_v34, 4  ;;  %v1313_v50 = vshll.u32 %v2263_v16, 16  ;;  %v1319_v52 = vshll.u32 %v2264_v27, 16  ;;  %v3032_v12 = vcombine.low %v1114_v43, %v1128_v44  ;;  %v2192_v26 = vld [vmem:[%s2820_s29 + $0x38] sm:$0xf] }
  0x42   : > { %v1302_v51 = vor.u32 %v1301_v40, %v1298_v42  ;;  %2441 = vmatmul.mubr.msk.bf16.vlgmr.msra.gmra.mrb[0].mxu1 %vm397_vm1, %v2156_v30  ;;  %v1280_v54 = vsel %vm2887_vm4, %v1275_v35, %v1279_v36  ;;  %v1289_v55 = vrot.slane %v1288_v47, 4  ;;  %v1307_v14 = vrot.slane %v1305_v46, 5  ;;  %v2194_v27 = vld [vmem:[%s2820_s29 + $0x40] sm:$0xf]  ;;  %v2191_v30 = vld [vmem:[%s2820_s29 + $0x34] sm:$0x1] }
  0x43   : > { %v1315_v56 = vrot.slane %v1313_v50, 5  ;;  %2457 = vmatpush3.bf16.msra.mxu1 %v2969_v62  ;;  %2444 = vmatprep.mubr.msk.bf16.mxu1 %vm397_vm1, %v2825_v8  ;;  %v1321_v58 = vrot.slane %v1319_v52, 5  ;;  %v3053_v60 = vcombine.low %v2867_v24, %v2870_v25  ;;  %v644_v24 = vshrl.u32 %v2188_v63, 16  ;;  %v3083_v32 = vld [vmem:[%s2820_s29 + $0x18] ss:$8 sps:$4 sm:$0xff]  }
  0x44   : > { %v1303_v57 = vrot.slane %v1302_v51, 4  ;;  %v1294_v15 = vsel %vm2887_vm4, %v1289_v55, %v1293_v48  ;;  %2715 = vmatprep.subr.msk.bf16.mxu1 %vm422_vm0, %v3029_v53  ;;  %v647_v25 = vshll.u32 %v2188_v63, 16  ;;  %v658_v16 = vshrl.u32 %v2190_v0, 16  ;;  %v2326_v40 = vld [vmem:[%s3275_s1 + $0x10] sm:$0x3] }
  0x45   : > { %v1316_v38 = vor.u32 %v1315_v56, %v1312_v49  ;;  %v3043_v59 = vcombine.low %v1280_v54, %v1294_v15  ;;  %v661_v19 = vshll.u32 %v2190_v0, 16  ;;  %v646_v20 = vrot.slane %v644_v24, 4  ;;  %v2195_v55 = vld [vmem:[%s2820_s29 + $0x44] sm:$0x1]  ;;  %v3105_v56 = vld [vmem:[%s2820_s29 + $0x40] ss:$8 sps:$4 sm:$0xff]  }
  0x46   : > { %v1308_v8 = vsel %vm2887_vm4, %v1303_v57, %v1307_v14  ;;  %v649_v22 = vrot.slane %v647_v25, 5  ;;  %v660_v10 = vrot.slane %v658_v16, 4  ;;  %v672_v33 = vshrl.u32 %v2192_v26, 16  ;;  %v2743_v14 = vld [vmem:[%s2820_s29 + $0x58] ss:$8 sps:$4 sm:$0xff]  }
  0x47   : > { %2521 = vmatmul.mubr.msk.bf16.gmra.mrb[8].mxu0 %vm397_vm1, %v3032_v12  ;;  %v1317_v62 = vrot.slane %v1316_v38, 4  ;;  %v663_v23 = vrot.slane %v661_v19, 5  ;;  %v675_v34 = vshll.u32 %v2192_v26, 16  ;;  %v686_v35 = vshrl.u32 %v2194_v27, 16  ;;  %v2744_v16 = vld [vmem:[%s2820_s29 + $0x68] ss:$8 sps:$4 sm:$0xff]  }
  0x48   : > { %2524 = vmatprep.mubr.msk.bf16.mxu0 %vm397_vm1, %v3043_v59  ;;  %v689_v36 = vshll.u32 %v2194_v27, 16  ;;  %v650_v39 = vor.u32 %v649_v22, %v646_v20  ;;  %v653_v42 = vshll.u32 %v2189_v28, 16  ;;  %v667_v44 = vshll.u32 %v2191_v30, 16  ;;  %v2745_v19 = vld [vmem:[%s2820_s29 + $0x80] ss:$8 sps:$4 sm:$0xff]  }
  0x49   : > { %v1322_v61 = vsel %vm2887_vm4, %v1317_v62, %v1321_v58  ;;  %v664_v43 = vor.u32 %v663_v23, %v660_v10  ;;  %v674_v46 = vrot.slane %v672_v33, 4  ;;  %v677_v47 = vrot.slane %v675_v34, 5  ;;  %v2297_v10 = vld [vmem:[%s2820_s29 + $0x58] sm:$0xf]  ;;  %v2299_v23 = vld [vmem:[%s2820_s29 + $0x60] sm:$0xf] }
  0x4a   : > { %2445 = vmatmul.mubr.msk.bf16.gmra.mrb[4].mxu1 %vm397_vm1, %v2838_v11  ;;  %v3061_v5 = vcombine.low %v1308_v8, %v1322_v61  ;;  %v3072_v11 = vcombine.low %v2904_v2, %v2913_v21  ;;  %v1692_v2 = vsel %vm422_vm0, %v2986_v31, 0  ;;  %v3090_v21 = vld [vmem:[%s2820_s29 + $0x30] ss:$8 sps:$4 sm:$0xff]   ;;  %v2193_v31 = vld [vmem:[%s2820_s29 + $0x3c] sm:$0x1]  ;;  %v688_v48 = vrot.slane %v686_v35, 4 }
  0x4b   : > { %2448 = vmatprep.mubr.msk.bf16.mxu1 %vm397_vm1, %v3053_v60  ;;  %v691_v49 = vrot.slane %v689_v36, 5  ;;  %v651_v50 = vrot.slane %v650_v39, 4  ;;  %v655_v51 = vrot.slane %v653_v42, 5  ;;  %v665_v52 = vrot.slane %v664_v43, 4  ;;  %v2303_v36 = vld [vmem:[%s2820_s29 + $0x70] sm:$0xf] }
  0x4c   : > { %v669_v54 = vrot.slane %v667_v44, 5  ;;  %v681_v57 = vshll.u32 %v2193_v31, 16  ;;  %v678_v15 = vor.u32 %v677_v47, %v674_v46  ;;  %v695_v58 = vshll.u32 %v2195_v55, 16  ;;  %v2298_v39 = vld [vmem:[%s2820_s29 + $0x5c] sm:$0x1] }
  0x4d   : > { %v692_v38 = vor.u32 %v691_v49, %v688_v48  ;;  %v656_v62 = vsel %vm2887_vm4, %v651_v50, %v655_v51  ;;  %v950_v25 = vsel %vm422_vm0, %v3029_v53, 0  ;;  %v1625_v26 = vshll.u32 %v2297_v10, 16  ;;  %v2300_v42 = vld [vmem:[%s2820_s29 + $0x64] sm:$0x1]  ;;  %v2302_v48 = vld [vmem:[%s2820_s29 + $0x6c] sm:$0x1] }
  0x4e   : > { %v670_v8 = vsel %vm2887_vm4, %v665_v52, %v669_v54  ;;  %v683_v61 = vrot.slane %v681_v57, 5  ;;  %v697_v24 = vrot.slane %v695_v58, 5  ;;  %v1636_v27 = vshrl.u32 %v2299_v23, 16 }
  0x4f   : > { %2525 = vmatmul.mubr.msk.bf16.gmra.mrb[12].mxu0 %vm397_vm1, %v3061_v5  ;;  %v2204_v63 = vcombine.low %v656_v62, %v670_v8  ;;  %v693_v0 = vrot.slane %v692_v38, 4  ;;  %v1639_v28 = vshll.u32 %v2299_v23, 16  ;;  %v1886_v30 = vsel %vm422_vm0, %v2326_v40, 0 }
  0x50   : > { %2530 = vmatprep.mubr.msk.bf16.mxu0 %vm397_vm1, %v3066_v6  ;;  %v1627_v33 = vrot.slane %v1625_v26, 5  ;;  %v1638_v34 = vrot.slane %v1636_v27, 4  ;;  %v1664_v44 = vshrl.u32 %v2303_v36, 16  ;;  %v1631_v31 = vshll.u32 %v2298_v39, 16  ;;  %v2317_v26 = vld [vmem:[%s2820_s29 + $0x84] sm:$0x1] }
  0x51   : > { %v698_v22 = vsel %vm2887_vm4, %v693_v0, %v697_v24  ;;  %v1641_v35 = vrot.slane %v1639_v28, 5  ;;  %v1645_v47 = vshll.u32 %v2300_v42, 16  ;;  %v1659_v38 = vshll.u32 %v2302_v48, 16  ;;  %v2319_v27 = vld [vmem:[%s2820_s29 + $0x8c] sm:$0x1] }
  0x52   : > { %2449 = vmatmul.mubr.msk.bf16.gmra.mrb[8].mxu1 %vm397_vm1, %v3072_v11  ;;  %v1666_v51 = vrot.slane %v1664_v44, 4  ;;  %v1633_v55 = vrot.slane %v1631_v31, 5  ;;  %v2323_v31 = vld [vmem:[%s2820_s29 + $0x9c] sm:$0x1] }
  0x53   : > { %2452 = vmatprep.mubr.msk.bf16.mxu1 %vm397_vm1, %v2828_v9  ;;  %v1642_v46 = vor.u32 %v1641_v35, %v1638_v34  ;;  %v1839_v35 = vshll.u32 %v2319_v27, 16 }
  0x55   : > { %v1643_v57 = vrot.slane %v1642_v46, 4 }
  0x57   : > { %2531 = vmatmul.mubr.msk.bf16.vlgmr.msra.gmra.mrb[0].mxu0 %vm397_vm1, %v3083_v32 }
  0x58   : > { %2547 = vmatpush3.bf16.msra.mxu0 %v1692_v2  ;;  %2534 = vmatprep.mubr.msk.bf16.mxu0 %vm397_vm1, %v3090_v21 }
  0x59   : > { %2721 = vmatprep.subr.msk.bf16.mxu0 %vm422_vm0, %v2326_v40 }
  0x5a   : > { %2453 = vmatmul.mubr.msk.bf16.gmra.mrb[12].mxu1 %vm397_vm1, %v2848_v13 }
  0x5b   : > { %2458 = vmatprep.mubr.msk.bf16.mxu1 %vm397_vm1, %v2906_v4  ;;  %v679_v4 = vrot.slane %v678_v15, 4  ;;  %v2304_v15 = vld [vmem:[%s2820_s29 + $0x74] sm:$0x1] }
  0x5c   : > { %v1673_v62 = vshll.u32 %v2304_v15, 16 }
  0x5d   : > { %v684_v20 = vsel %vm2887_vm4, %v679_v4, %v683_v61  ;;  %v1661_v61 = vrot.slane %v1659_v38, 5 }
  0x5e   : > { %v2205_v53 = vcombine.low %v684_v20, %v698_v22  ;;  %v1675_v24 = vrot.slane %v1673_v62, 5 }
  0x5f   : > { %2535 = vmatmul.mubr.msk.bf16.gmra.mrb[4].mxu0 %vm397_vm1, %v3105_v56 }
  0x60   : > { %2538 = vmatprep.mubr.msk.bf16.mxu0 %vm397_vm1, %v2743_v14  ;;  %v1647_v14 = vrot.slane %v1645_v47, 5 }
  0x62   : > { %2459 = vmatmul.mubr.msk.bf16.vlgmr.msra.gmra.mrb[0].mxu1 %vm397_vm1, %v2939_v7  ;;  %v2746_v7 = vld [vmem:[%s2820_s29 + $0x90] ss:$8 sps:$4 sm:$0xff]   ;;  %v1648_v8 = vsel %vm2887_vm4, %v1643_v57, %v1647_v14 }
  0x63   : > { %2475 = vmatpush3.bf16.msra.mxu1 %v950_v25  ;;  %2462 = vmatprep.mubr.msk.bf16.mxu1 %vm397_vm1, %v2204_v63 }
  0x64   : > { %2717 = vmatprep.subr.msk.bf16.mxu1 %vm422_vm0, %v2796_v1  ;;  %v1622_v1 = vshrl.u32 %v2297_v10, 16 }
  0x66   : > { %v1624_v2 = vrot.slane %v1622_v1, 4  ;;  %v2322_v1 = vld [vmem:[%s2820_s29 + $0x98] sm:$0xf] }
  0x67   : > { %2539 = vmatmul.mubr.msk.bf16.gmra.mrb[8].mxu0 %vm397_vm1, %v2744_v16  ;;  %v2318_v16 = vld [vmem:[%s2820_s29 + $0x88] sm:$0xf] }
  0x68   : > { %2542 = vmatprep.mubr.msk.bf16.mxu0 %vm397_vm1, %v2745_v19  ;;  %v1628_v40 = vor.u32 %v1627_v33, %v1624_v2  ;;  %v1830_v22 = vshrl.u32 %v2318_v16, 16  ;;  %v1825_v33 = vshll.u32 %v2317_v26, 16 }
  0x6a   : > { %2463 = vmatmul.mubr.msk.bf16.gmra.mrb[4].mxu1 %vm397_vm1, %v2205_v53  ;;  %v1629_v54 = vrot.slane %v1628_v40, 4  ;;  %v1833_v53 = vshll.u32 %v2318_v16, 16  ;;  %v1832_v10 = vrot.slane %v1830_v22, 4  ;;  %v1827_v44 = vrot.slane %v1825_v33, 5 }
  0x6b   : > { %2466 = vmatprep.mubr.msk.bf16.mxu1 %vm397_vm1, %v2922_v29  ;;  %v2301_v29 = vld [vmem:[%s2820_s29 + $0x68] sm:$0xf]  ;;  %v1841_v40 = vrot.slane %v1839_v35, 5 }
  0x6c   : > { %v1653_v43 = vshll.u32 %v2301_v29, 16  ;;  %v1835_v23 = vrot.slane %v1833_v53, 5 }
  0x6e   : > { %v1655_v50 = vrot.slane %v1653_v43, 5  ;;  %v1836_v34 = vor.u32 %v1835_v23, %v1832_v10 }
  0x6f   : > { %2543 = vmatmul.mubr.msk.bf16.gmra.mrb[12].mxu0 %vm397_vm1, %v2746_v7 }
  0x70   : > { %2548 = vmatprep.mubr.msk.bf16.mxu0 %vm397_vm1, %v3090_v21 }
  0x72   : > { %2467 = vmatmul.mubr.msk.bf16.gmra.mrb[8].mxu1 %vm397_vm1, %v2951_v37  ;;  %v1650_v37 = vshrl.u32 %v2301_v29, 16  ;;  %v1861_v29 = vshll.u32 %v2322_v1, 16 }
  0x73   : > { %2470 = vmatprep.mubr.msk.bf16.mxu1 %vm397_vm1, %v2975_v18  ;;  %v1667_v18 = vshll.u32 %v2303_v36, 16  ;;  %v2321_v36 = vld [vmem:[%s2820_s29 + $0x94] sm:$0x1] }
  0x74   : > { %v1652_v49 = vrot.slane %v1650_v37, 4  ;;  %v1853_v46 = vshll.u32 %v2321_v36, 16 }
  0x75   : > { %v1669_v52 = vrot.slane %v1667_v18, 5  ;;  %v1837_v18 = vrot.slane %v1836_v34, 4 }
  0x77   : > { %2549 = vmatmul.mubr.msk.bf16.vlgmr.msra.gmra.mrb[0].mxu0 %vm397_vm1, %v3105_v56  ;;  %v1670_v58 = vor.u32 %v1669_v52, %v1666_v51  ;;  %v1855_v51 = vrot.slane %v1853_v46, 5 }
  0x78   : > { %2565 = vmatpush3.bf16.msra.mxu0 %v1886_v30  ;;  %2552 = vmatprep.mubr.msk.bf16.mxu0 %vm397_vm1, %v3013_v17  ;;  %v1858_v30 = vshrl.u32 %v2322_v1, 16 }
  0x79   : > { %v1671_v0 = vrot.slane %v1670_v58, 4 }
  0x7a   : > { %2471 = vmatmul.mubr.msk.bf16.gmra.mrb[12].mxu1 %vm397_vm1, %v2993_v45  ;;  %v1656_v45 = vor.u32 %v1655_v50, %v1652_v49  ;;  %v1860_v37 = vrot.slane %v1858_v30, 4  ;;  %v1867_v49 = vshll.u32 %v2323_v31, 16  ;;  %v1842_v50 = vsel %vm2887_vm4, %v1837_v18, %v1841_v40 }
  0x7b   : > { %2476 = vmatprep.mubr.msk.bf16.mxu1 %vm397_vm1, %v3053_v60  ;;  %v1634_v60 = vsel %vm2887_vm4, %v1629_v54, %v1633_v55 }
  0x7c   : > { %v2305_v63 = vcombine.low %v1634_v60, %v1648_v8  ;;  %v1657_v4 = vrot.slane %v1656_v45, 4  ;;  %v1869_v55 = vrot.slane %v1867_v49, 5 }
  0x7e   : > { %v1662_v25 = vsel %vm2887_vm4, %v1657_v4, %v1661_v61 }
  0x7f   : > { %2553 = vmatmul.mubr.msk.bf16.gmra.mrb[4].mxu0 %vm397_vm1, %v3032_v12 }
  0x80   : > { %2556 = vmatprep.mubr.msk.bf16.mxu0 %vm397_vm1, %v2745_v19 }
  0x82   : > { %2477 = vmatmul.mubr.msk.bf16.vlgmr.msra.gmra.mrb[0].mxu1 %vm397_vm1, %v3072_v11  ;;  %v1676_v11 = vsel %vm2887_vm4, %v1671_v0, %v1675_v24 }
  0x83   : > { %2583 = vmatpush3.bf16.msra.mxu1 %v2805_v3  ;;  %2480 = vmatprep.mubr.msk.bf16.mxu1 %vm397_vm1, %v2828_v9  ;;  %v2306_v3 = vcombine.low %v1662_v25, %v1676_v11  ;;  %v2316_v9 = vld [vmem:[%s2820_s29 + $0x80] sm:$0xf] }
  0x84   : > { %v1816_v19 = vshrl.u32 %v2316_v9, 16  ;;  %v1819_v20 = vshll.u32 %v2316_v9, 16  ;;  %v3234_v9 = vld [vmem:[%s3277_s3] ss:$0 sm:$0xff] }
  0x87   : > { %2557 = vmatmul.mubr.msk.bf16.gmra.mrb[8].mxu0 %vm397_vm1, %v2746_v7  ;;  %v1821_v7 = vrot.slane %v1819_v20, 5 }
  0x88   : > { %2560 = vmatprep.mubr.msk.bf16.mxu0 %vm397_vm1, %v2305_v63 }
  0x8a   : > { %2481 = vmatmul.mubr.msk.bf16.gmra.mrb[4].mxu1 %vm397_vm1, %v2848_v13  ;;  %v2320_v13 = vld [vmem:[%s2820_s29 + $0x90] sm:$0xf] }
  0x8b   : > { %2484 = vmatprep.mubr.msk.bf16.mxu1 %vm397_vm1, %v3066_v6  ;;  %v1818_v6 = vrot.slane %v1816_v19, 4  ;;  %v1844_v28 = vshrl.u32 %v2320_v13, 16 }
  0x8d   : > { %v1822_v2 = vor.u32 %v1821_v7, %v1818_v6  ;;  %v1846_v39 = vrot.slane %v1844_v28, 4 }
  0x8f   : > { %2561 = vmatmul.mubr.msk.bf16.gmra.mrb[12].mxu0 %vm397_vm1, %v2306_v3  ;;  %v1823_v43 = vrot.slane %v1822_v2, 4 }
  0x90   : > { %2566 = vmatprep.mubr.msk.bf16.mxu0 %vm397_vm1, %v3013_v17 }
  0x92   : > { %2485 = vmatmul.mubr.msk.bf16.gmra.mrb[8].mxu1 %vm397_vm1, %v3083_v32  ;;  %v1847_v32 = vshll.u32 %v2320_v13, 16 }
  0x93   : > { %2488 = vmatprep.mubr.msk.bf16.mxu1 %vm397_vm1, %v3090_v21 }
  0x94   : > { %v1849_v42 = vrot.slane %v1847_v32, 5 }
  0x96   : > { %v1850_v47 = vor.u32 %v1849_v42, %v1846_v39 }
  0x97   : > { %2567 = vmatmul.mubr.msk.bf16.vlgmr.msra.gmra.mrb[0].mxu0 %vm397_vm1, %v3032_v12 }
  0x98   : > { %2570 = vmatprep.mubr.msk.bf16.mxu0 %vm397_vm1, %v3043_v59  ;;  %v1863_v59 = vrot.slane %v1861_v29, 5  ;;  %v1851_v52 = vrot.slane %v1850_v47, 4 }
  0x9a   : > { %2489 = vmatmul.mubr.msk.bf16.gmra.mrb[12].mxu1 %vm397_vm1, %v3105_v56  ;;  %v1864_v48 = vor.u32 %v1863_v59, %v1860_v37  ;;  %v1856_v57 = vsel %vm2887_vm4, %v1851_v52, %v1855_v51 }
  0x9b   : > { %2502 = vmatprep.mubr.msk.bf16.mxu1 %vm397_vm1, %v3090_v21  ;;  %v1828_v21 = vsel %vm2887_vm4, %v1823_v43, %v1827_v44 }
  0x9c   : > { %v1865_v54 = vrot.slane %v1864_v48, 4 }
  0x9e   : > { %v1870_v14 = vsel %vm2887_vm4, %v1865_v54, %v1869_v55 }
  0x9f   : > { %2571 = vmatmul.mubr.msk.bf16.gmra.mrb[4].mxu0 %vm397_vm1, %v3061_v5  ;;  %v2324_v5 = vcombine.low %v1828_v21, %v1842_v50 }
  0xa0   : > { %2574 = vmatprep.mubr.msk.bf16.mxu0 %vm397_vm1, %v2305_v63 }
  0xa2   : > { %2503 = vmatmul.mubr.msk.bf16.vlgmr.msra.gmra.mrb[8].mxu1 %vm397_vm1, %v3105_v56  ;;  %v2325_v56 = vcombine.low %v1856_v57, %v1870_v14 }
  0xa3   : > { %2506 = vmatprep.mubr.msk.bf16.mxu1 %vm397_vm1, %v3013_v17 }
  0xa7   : > { %2575 = vmatmul.mubr.msk.bf16.gmra.mrb[8].mxu0 %vm397_vm1, %v2306_v3 }
  0xa8   : > { %2578 = vmatprep.mubr.msk.bf16.mxu0 %vm397_vm1, %v2324_v5 }
  0xaa   : > { %2507 = vmatmul.mubr.msk.bf16.gmra.mrb[12].mxu1 %vm397_vm1, %v3032_v12  ;;  %v3228_v12 = vld [vmem:[%s3276_s2] ss:$0 sm:$0xff] }
  0xaf   : > { %2579 = vmatmul.mubr.msk.bf16.gmra.mrb[12].mxu0 %vm397_vm1, %v2325_v56 }
 0x155   : > { %v2478_v17 = vpop.f32.mrb[0].mxu1 }
 0x156   : > { %v986_v15 = vpop.f32.mrb[1].mxu1 }
 0x157   : > { %v2479_v38 = vpop.f32.mrb[2].mxu1 }
 0x158   : > { %v989_v45 = vpop.f32.mrb[3].mxu1 }
 0x15d   : > { %v2482_v58 = vpop.f32.mrb[4].mxu1 }
 0x15e   : > { %v1002_v62 = vpop.f32.mrb[5].mxu1 }
 0x15f   : > { %v2483_v60 = vpop.f32.mrb[6].mxu1 }
 0x160   : > { %v1005_v8 = vpop.f32.mrb[7].mxu1 }
 0x16a   : > { %v2568_v61 = vpop.f32.mrb[0].mxu0 }
 0x16b   : > { %v2584_v63 = vadd.f32 %v2568_v61, %v2478_v17  ;;  %v1922_v4 = vpop.f32.mrb[1].mxu0 }
 0x16c   : > { %v2585_v0 = vadd.f32 %v1922_v4, %v986_v15  ;;  %v2569_v41 = vpop.f32.mrb[2].mxu0 }
 0x16d   : > { %v2586_v24 = vadd.f32 %v2569_v41, %v2479_v38  ;;  %v1925_v25 = vpop.f32.mrb[3].mxu0  ;;  %v2010_v3 = vmul.f32 %v2584_v63, %v3228_v12 }
 0x16e   : > { %v2587_v11 = vadd.f32 %v1925_v25, %v989_v45  ;;  %v2008_v16 = vmul.f32 %v2585_v0, %v3228_v12 }
 0x16f   : > { %v2011_v20 = vmul.f32 %v2586_v24, %v3228_v12  ;;  %v2033_v10 = vadd.f32 %v3234_v9, %v2010_v3 }
 0x170   : > { %v2009_v13 = vmul.f32 %v2587_v11, %v3228_v12  ;;  %v2031_v27 = vadd.f32 %v3234_v9, %v2008_v16 }
 0x171   : > { %v2034_v29 = vadd.f32 %v3234_v9, %v2011_v20  ;;  %v2049_v37 = vmax.f32 %v2033_v10, 0.0 }
 0x172   : > { %v2572_v19 = vpop.f32.mrb[4].mxu0  ;;  %v2032_v35 = vadd.f32 %v3234_v9, %v2009_v13  ;;  %v2047_v18 = vmax.f32 %v2031_v27, 0.0 }
 0x173   : > { %v2588_v22 = vadd.f32 %v2572_v19, %v2482_v58  ;;  %v1938_v53 = vpop.f32.mrb[5].mxu0  ;;  %v2050_v47 = vmax.f32 %v2034_v29, 0.0 }
 0x174   : > { %v2589_v6 = vadd.f32 %v1938_v53, %v1002_v62  ;;  %v2573_v7 = vpop.f32.mrb[6].mxu0  ;;  %v2048_v51 = vmax.f32 %v2032_v35, 0.0 }
 0x175   : > { %v2014_v23 = vmul.f32 %v2588_v22, %v3228_v12  ;;  %v2590_v1 = vadd.f32 %v2573_v7, %v2483_v60  ;;  %v1941_v26 = vpop.f32.mrb[7].mxu0  ;;  %v2504_v30 = vpop.f32.mrb[8].mxu1 }
 0x176   : > { %v2012_v28 = vmul.f32 %v2589_v6, %v3228_v12  ;;  %v2591_v32 = vadd.f32 %v1941_v26, %v1005_v8  ;;  %v1212_v34 = vpop.f32.mrb[9].mxu1 }
 0x177   : > { %v2037_v2 = vadd.f32 %v3234_v9, %v2014_v23  ;;  %v2015_v33 = vmul.f32 %v2590_v1, %v3228_v12  ;;  %v2505_v42 = vpop.f32.mrb[10].mxu1 }
 0x178   : > { %v2035_v36 = vadd.f32 %v3234_v9, %v2012_v28  ;;  %v2013_v39 = vmul.f32 %v2591_v32, %v3228_v12  ;;  %v1215_v44 = vpop.f32.mrb[11].mxu1 }
 0x179   : > { %v2053_v59 = vmax.f32 %v2037_v2, 0.0  ;;  %v2038_v43 = vadd.f32 %v3234_v9, %v2015_v33 }
 0x17a   : > { %v2051_v40 = vmax.f32 %v2035_v36, 0.0  ;;  %v2036_v31 = vadd.f32 %v3234_v9, %v2013_v39  ;;  %v2576_v46 = vpop.f32.mrb[8].mxu0 }
 0x17b   : > { %v2065_v48 = vmax.f32 %v2049_v37, %v2053_v59  ;;  %v2054_v49 = vmax.f32 %v2038_v43, 0.0  ;;  %v2592_v21 = vadd.f32 %v2576_v46, %v2504_v30  ;;  %v1954_v50 = vpop.f32.mrb[9].mxu0 }
 0x17c   : > { %v2063_v5 = vmax.f32 %v2047_v18, %v2051_v40  ;;  %v2052_v52 = vmax.f32 %v2036_v31, 0.0  ;;  %v2593_v54 = vadd.f32 %v1954_v50, %v1212_v34  ;;  %v2577_v55 = vpop.f32.mrb[10].mxu0 }
 0x17d   : > { %v2066_v57 = vmax.f32 %v2050_v47, %v2054_v49  ;;  %v2594_v14 = vadd.f32 %v2577_v55, %v2505_v42  ;;  %v1957_v56 = vpop.f32.mrb[11].mxu0  ;;  %v2508_v38 = vpop.f32.mrb[12].mxu1  ;;  %v2018_v62 = vmul.f32 %v2592_v21, %v3228_v12 }
 0x17e   : > { %v2064_v17 = vmax.f32 %v2048_v51, %v2052_v52  ;;  %v2595_v15 = vadd.f32 %v1957_v56, %v1215_v44  ;;  %v1228_v45 = vpop.f32.mrb[13].mxu1  ;;  %v2016_v8 = vmul.f32 %v2593_v54, %v3228_v12 }
 0x17f   : > { %v2509_v58 = vpop.f32.mrb[14].mxu1  ;;  %v2019_v63 = vmul.f32 %v2594_v14, %v3228_v12  ;;  %v2041_v11 = vadd.f32 %v3234_v9, %v2018_v62 }
 0x180   : > { %v1231_v60 = vpop.f32.mrb[15].mxu1  ;;  %v2017_v41 = vmul.f32 %v2595_v15, %v3228_v12  ;;  %v2039_v20 = vadd.f32 %v3234_v9, %v2016_v8 }
 0x181   : > { %v2042_v13 = vadd.f32 %v3234_v9, %v2019_v63  ;;  %v2057_v26 = vmax.f32 %v2041_v11, 0.0 }
 0x182   : > { %v2580_v61 = vpop.f32.mrb[12].mxu0  ;;  %v2040_v10 = vadd.f32 %v3234_v9, %v2017_v41  ;;  %v2055_v32 = vmax.f32 %v2039_v20, 0.0 }
 0x183   : > { %v2596_v4 = vadd.f32 %v2580_v61, %v2508_v38  ;;  %v1970_v0 = vpop.f32.mrb[13].mxu0  ;;  %v2058_v2 = vmax.f32 %v2042_v13, 0.0 }
 0x184   : > { %v2597_v24 = vadd.f32 %v1970_v0, %v1228_v45  ;;  %v2581_v25 = vpop.f32.mrb[14].mxu0  ;;  %v2056_v35 = vmax.f32 %v2040_v10, 0.0 }
 0x185   : > { %v2022_v3 = vmul.f32 %v2596_v4, %v3228_v12  ;;  %v2598_v16 = vadd.f32 %v2581_v25, %v2509_v58  ;;  %v1973_v19 = vpop.f32.mrb[15].mxu0 }
 0x186   : > { %v2020_v22 = vmul.f32 %v2597_v24, %v3228_v12  ;;  %v2599_v53 = vadd.f32 %v1973_v19, %v1231_v60 }
 0x187   : > { %v2045_v6 = vadd.f32 %v3234_v9, %v2022_v3  ;;  %v2023_v7 = vmul.f32 %v2598_v16, %v3228_v12 }
 0x188   : > { %v2043_v23 = vadd.f32 %v3234_v9, %v2020_v22  ;;  %v2021_v1 = vmul.f32 %v2599_v53, %v3228_v12 }
 0x189   : > { %v2061_v27 = vmax.f32 %v2045_v6, 0.0  ;;  %v2046_v28 = vadd.f32 %v3234_v9, %v2023_v7 }
 0x18a   : > { %v2059_v30 = vmax.f32 %v2043_v23, 0.0  ;;  %v2044_v29 = vadd.f32 %v3234_v9, %v2021_v1 }
 0x18b   : > { %v2069_v33 = vmax.f32 %v2057_v26, %v2061_v27  ;;  %v2062_v34 = vmax.f32 %v2046_v28, 0.0 }
 0x18c   : > { %v2067_v36 = vmax.f32 %v2055_v32, %v2059_v30  ;;  %v2060_v39 = vmax.f32 %v2044_v29, 0.0 }
 0x18d   : > { %v2073_v12 = vmax.f32 %v2065_v48, %v2069_v33  ;;  %v2070_v42 = vmax.f32 %v2058_v2, %v2062_v34 }
 0x18e   : > { %v2071_v37 = vmax.f32 %v2063_v5, %v2067_v36  ;;  %v2068_v59 = vmax.f32 %v2056_v35, %v2060_v39 }
 0x18f   : > { %2077 = vst [vmem:[%s197_s23 + $0x10] sm:$0xff] %v2073_v12  ;;  %v2074_v43 = vmax.f32 %v2066_v57, %v2070_v42 }
 0x190   : > { %2075 = vst [vmem:[%s197_s23] sm:$0xff] %v2071_v37  ;;  %v2072_v44 = vmax.f32 %v2064_v17, %v2068_v59 }
 0x191   : > { %2078 = vst [vmem:[%s197_s23 + $0x18] sm:$0xff] %v2074_v43 }
 0x192   : > { %2076 = vst [vmem:[%s197_s23 + $0x8] sm:$0xff] %v2072_v44 }
 0x193 PF: > { %s14_s15 = sadd.s32 1, %s2753_s15  }
 0x194   : > { %p11_p5 = scmp.ge.s32.totalorder %s14_s15, 6  }
 0x196   :  { %13 = sbr.rel (!%p11_p5) target bundleno = 1 (0x1), region = 81 }

</bundles_post_ra>
